<compile_context>
chip_gen: v5e
topology: v5e:2x2
jax: 0.10.0
libtpu: 0.0.40
codegen_flags: <defaults>
</compile_context>

<pallas_src>
import jax
import jax.numpy as jnp
from jax.experimental import pallas as pl
from jax.experimental.pallas import tpu as pltpu


# --------------------------------------------------------------------------- #
# Kernel
# --------------------------------------------------------------------------- #
def mlp_kernel(x_ref,
               w1_ref, b1_ref,
               w2_ref, b2_ref,
               w3_ref, b3_ref,
               w4_ref, b4_ref,
               o_ref):
    # x arrives as bf16 (halved input DMA); LN statistics in f32.
    x = x_ref[...].astype(jnp.float32)                     # (TM, D)

    # ---- LayerNorm statistics, single pass (biased variance, eps=1e-5).
    #      The gamma/beta affine is folded into w1/b1 in the wrapper. ----
    mean = jnp.mean(x, axis=-1, keepdims=True)
    ex2 = jnp.mean(x * x, axis=-1, keepdims=True)
    var = jnp.maximum(ex2 - mean * mean, 0.0)
    xn = (x - mean) * jax.lax.rsqrt(var + 1e-5)

    # ---- Linear(512->1024) [LN affine + BN1 folded in] + ReLU ----
    h = jnp.dot(xn.astype(w1_ref.dtype), w1_ref[...],
                preferred_element_type=jnp.float32) + b1_ref[...]
    h = jnp.maximum(h, 0.0)               # Dropout(0.4): identity in eval mode

    # ---- Linear(1024->512) [BN2 folded in] + ReLU ----
    h = jnp.dot(h.astype(w2_ref.dtype), w2_ref[...],
                preferred_element_type=jnp.float32) + b2_ref[...]
    h = jnp.maximum(h, 0.0)               # Dropout(0.3): identity in eval mode

    # ---- Linear(512->256) + ReLU ----
    h = jnp.dot(h.astype(w3_ref.dtype), w3_ref[...],
                preferred_element_type=jnp.float32) + b3_ref[...]
    h = jnp.maximum(h, 0.0)

    # ---- Linear(256->C_pad) (columns zero-padded to 128 lanes) ----
    o_ref[...] = (jnp.dot(h.astype(w4_ref.dtype), w4_ref[...],
                          preferred_element_type=jnp.float32)
                  + b4_ref[...]).astype(o_ref.dtype)


# --------------------------------------------------------------------------- #
# Wrapper
# --------------------------------------------------------------------------- #
def _round_up(v, m):
    return ((v + m - 1) // m) * m


def improved_whisper_mlp(x, folded, num_classes):
    """x: [B, input_dim] float32.  folded: dict from fold_params()."""
    B, D = x.shape
    c_pad = folded["w4"].shape[1]

    # --- batch tiling: big tiles to amortize per-step overhead, but keep the
    #     grid length >= 2 whenever possible so v7x's 2 TensorCores both run.
    b_pad = _round_up(B, 8)
    if b_pad >= 16:
        TM = min(512, _round_up(pl.cdiv(b_pad, 2), 8))
    else:
        TM = b_pad
    b_pad = _round_up(b_pad, TM)          # grid divides evenly
    grid = (pl.cdiv(b_pad, TM),)

    # bf16 input stream (halves the only per-row HBM input DMA); pad rows.
    x_in = x.astype(jnp.bfloat16)
    if b_pad != B:
        x_in = jnp.pad(x_in, ((0, b_pad - B), (0, 0)))

    def tile_map(i):                      # batch-tiled operands
        return (i, 0)

    def const_map(i):                     # weights resident across steps
        return (0, 0)

    operands = (x_in,
                folded["w1"], folded["b1"],
                folded["w2"], folded["b2"],
                folded["w3"], folded["b3"],
                folded["w4"], folded["b4"])

    in_specs = [pl.BlockSpec((TM, D), tile_map)]
    # Constant operands: block index never changes -> single-buffer them.
    in_specs += [pl.BlockSpec(a.shape, const_map, pipeline_mode=pl.Buffered(1))
                 for a in operands[1:]]
    out_specs = pl.BlockSpec((TM, c_pad), tile_map)

    flops = 2 * b_pad * (D * 1024 + 1024 * 512 + 512 * 256 + 256 * c_pad)
    bytes_accessed = (sum(int(a.size) * a.dtype.itemsize for a in operands)
                      + b_pad * c_pad * 4)
    cost = pl.CostEstimate(flops=flops, transcendentals=b_pad,
                           bytes_accessed=bytes_accessed)

    out = pl.pallas_call(
        mlp_kernel,
        grid=grid,
        in_specs=in_specs,
        out_specs=out_specs,
        out_shape=jax.ShapeDtypeStruct((b_pad, c_pad), jnp.float32),
        compiler_params=pltpu.CompilerParams(
            dimension_semantics=("parallel",),
            # > v5e's 16 MiB default scoped limit (needed at TM=512),
            # < v7x's 64 MiB physical VMEM.
            vmem_limit_bytes=48 * 1024 * 1024),
        cost_estimate=cost,
    )(*operands)
    return out[:B, :num_classes]


# --------------------------------------------------------------------------- #
# Parameter construction / folding
# --------------------------------------------------------------------------- #
def init_params(key, input_dim=512, num_classes=8):
    """Deterministic synthetic parameters (PyTorch-module shapes, eval-mode BN)."""
    dims = [(input_dim, 1024), (1024, 512), (512, 256), (256, num_classes)]
    keys = jax.random.split(key, 12)
    p = {}
    # LayerNorm affine (non-trivial so the folding is actually exercised)
    p["ln_g"] = 1.0 + 0.1 * jax.random.normal(keys[0], (input_dim,))
    p["ln_b"] = 0.05 * jax.random.normal(keys[1], (input_dim,))
    # Linear weights stored as [in, out]  (PyTorch stores [out, in]; y = x @ W.T + b)
    for i, (din, dout) in enumerate(dims, start=1):
        p[f"w{i}"] = 0.02 * jax.random.normal(keys[2 * i], (din, dout))
        p[f"b{i}"] = 0.01 * jax.random.normal(keys[2 * i + 1], (dout,))
    # BatchNorm1d eval-mode parameters (gamma, beta, running mean/var)
    for j, (name, dout) in enumerate((("bn1", 1024), ("bn2", 512))):
        kg, kb, km, kv = jax.random.split(keys[10 + j], 4)
        p[f"{name}_g"] = 1.0 + 0.1 * jax.random.normal(kg, (dout,))
        p[f"{name}_b"] = 0.05 * jax.random.normal(kb, (dout,))
        p[f"{name}_rm"] = 0.05 * jax.random.normal(km, (dout,))
        p[f"{name}_rv"] = 1.0 + 0.1 * jnp.abs(jax.random.normal(kv, (dout,)))
    return {k: v.astype(jnp.float32) for k, v in p.items()}


def fold_params(p, num_classes, weight_dtype=jnp.bfloat16, eps=1e-5):
    """Fold LN affine + eval-mode BN affines into the Linear weights, cast to bf16."""
    def row(v):
        return v.reshape(1, -1).astype(jnp.float32)

    # BatchNorm1d (eval) -> per-feature scale/shift
    s1 = p["bn1_g"] * jax.lax.rsqrt(p["bn1_rv"] + eps)
    t1 = p["bn1_b"] - p["bn1_rm"] * s1
    s2 = p["bn2_g"] * jax.lax.rsqrt(p["bn2_rv"] + eps)
    t2 = p["bn2_b"] - p["bn2_rm"] * s2

    # (xn*g + b) @ W1 + b1, then *s1 + t1  ==  xn @ (g[:,None]*W1*s1) + ((b@W1 + b1)*s1 + t1)
    w1 = (p["ln_g"][:, None] * p["w1"]) * s1[None, :]
    b1 = (p["ln_b"] @ p["w1"] + p["b1"]) * s1 + t1
    w2 = p["w2"] * s2[None, :]
    b2 = p["b2"] * s2 + t2
    w3, b3 = p["w3"], p["b3"]

    # Pad the final projection to a lane-dense multiple of 128 output columns.
    c_pad = ((num_classes + 127) // 128) * 128
    w4 = jnp.pad(p["w4"], ((0, 0), (0, c_pad - num_classes)))
    b4 = jnp.pad(p["b4"], (0, c_pad - num_classes))

    return {
        "w1": w1.astype(weight_dtype), "b1": row(b1),
        "w2": w2.astype(weight_dtype), "b2": row(b2),
        "w3": w3.astype(weight_dtype), "b3": row(b3),
        "w4": w4.astype(weight_dtype), "b4": row(b4),
    }


# --------------------------------------------------------------------------- #
# Pure-JAX reference (unfolded, f32) for a correctness check
# --------------------------------------------------------------------------- #
def reference_forward(x, p, eps=1e-5):
    mean = jnp.mean(x, axis=-1, keepdims=True)
    var = jnp.mean(jnp.square(x - mean), axis=-1, keepdims=True)
    h = (x - mean) * jax.lax.rsqrt(var + eps) * p["ln_g"] + p["ln_b"]
    h = h @ p["w1"] + p["b1"]
    h = (h - p["bn1_rm"]) * jax.lax.rsqrt(p["bn1_rv"] + eps) * p["bn1_g"] + p["bn1_b"]
    h = jnp.maximum(h, 0.0)
    h = h @ p["w2"] + p["b2"]
    h = (h - p["bn2_rm"]) * jax.lax.rsqrt(p["bn2_rv"] + eps) * p["bn2_g"] + p["bn2_b"]
    h = jnp.maximum(h, 0.0)
    h = jnp.maximum(h @ p["w3"] + p["b3"], 0.0)
    return h @ p["w4"] + p["b4"]


if __name__ == "__main__":
    INPUT_DIM = 512
    NUM_CLASSES = 8
    BATCH = 8

    root = jax.random.PRNGKey(0)
    kx, kp = jax.random.split(root)
    x = jax.random.normal(kx, (BATCH, INPUT_DIM), dtype=jnp.float32)
    params = init_params(kp, input_dim=INPUT_DIM, num_classes=NUM_CLASSES)
    folded = fold_params(params, NUM_CLASSES)

    out = jax.block_until_ready(improved_whisper_mlp(x, folded, NUM_CLASSES))
    ref = jax.block_until_ready(reference_forward(x, params))

    assert out.shape == (BATCH, NUM_CLASSES), out.shape
    # bf16 weights + bf16 input/activation casts -> relaxed tolerance vs f32 ref.
    err = float(jnp.max(jnp.abs(out - ref)))
    assert jnp.allclose(out, ref, atol=8e-3, rtol=5e-2), err

    print("KERNEL_OK")
</pallas_src>

<mosaic_0001>
module attributes {stable_mosaic.version = 11 : i64} {
  func.func @mlp_kernel(%arg0: i32, %arg1: memref<8x512xbf16, #tpu.memory_space<vmem>>, %arg2: memref<512x1024xbf16, #tpu.memory_space<vmem>>, %arg3: memref<1x1024xf32, #tpu.memory_space<vmem>>, %arg4: memref<1024x512xbf16, #tpu.memory_space<vmem>>, %arg5: memref<1x512xf32, #tpu.memory_space<vmem>>, %arg6: memref<512x256xbf16, #tpu.memory_space<vmem>>, %arg7: memref<1x256xf32, #tpu.memory_space<vmem>>, %arg8: memref<256x128xbf16, #tpu.memory_space<vmem>>, %arg9: memref<1x128xf32, #tpu.memory_space<vmem>>, %arg10: memref<8x128xf32, #tpu.memory_space<vmem>>) attributes {dimension_semantics = [#tpu.dimension_semantics<parallel>], iteration_bounds = array<i64: 1>, scalar_prefetch = 0 : i64, scratch_operands = 0 : i64, tpu.core_type = #tpu.core_type<tc>, window_params = [{transform_indices = @transform_0, window_bounds = array<i64: 8, 512>}, {pipeline_mode = #tpu.pipeline_mode<synchronous>, transform_indices = @transform_1, window_bounds = array<i64: 512, 1024>}, {pipeline_mode = #tpu.pipeline_mode<synchronous>, transform_indices = @transform_2, window_bounds = array<i64: 1, 1024>}, {pipeline_mode = #tpu.pipeline_mode<synchronous>, transform_indices = @transform_3, window_bounds = array<i64: 1024, 512>}, {pipeline_mode = #tpu.pipeline_mode<synchronous>, transform_indices = @transform_4, window_bounds = array<i64: 1, 512>}, {pipeline_mode = #tpu.pipeline_mode<synchronous>, transform_indices = @transform_5, window_bounds = array<i64: 512, 256>}, {pipeline_mode = #tpu.pipeline_mode<synchronous>, transform_indices = @transform_6, window_bounds = array<i64: 1, 256>}, {pipeline_mode = #tpu.pipeline_mode<synchronous>, transform_indices = @transform_7, window_bounds = array<i64: 256, 128>}, {pipeline_mode = #tpu.pipeline_mode<synchronous>, transform_indices = @transform_8, window_bounds = array<i64: 1, 128>}, {transform_indices = @transform_9, window_bounds = array<i64: 8, 128>}]} {
    %c0 = arith.constant 0 : index
    %c0_0 = arith.constant 0 : index
    %0 = vector.load %arg1[%c0, %c0_0] : memref<8x512xbf16, #tpu.memory_space<vmem>>, vector<8x512xbf16>
    %1 = arith.extf %0 : vector<8x512xbf16> to vector<8x512xf32>
    %cst = arith.constant dense<0.000000e+00> : vector<8xf32>
    %2 = vector.multi_reduction <add>, %1, %cst [1] : vector<8x512xf32> to vector<8xf32>
    %3 = vector.shape_cast %2 : vector<8xf32> to vector<8x1xf32>
    %cst_1 = arith.constant 5.120000e+02 : f32
    %4 = vector.broadcast %cst_1 : f32 to vector<8x1xf32>
    %5 = arith.divf %3, %4 : vector<8x1xf32>
    %6 = arith.mulf %1, %1 : vector<8x512xf32>
    %cst_2 = arith.constant dense<0.000000e+00> : vector<8xf32>
    %7 = vector.multi_reduction <add>, %6, %cst_2 [1] : vector<8x512xf32> to vector<8xf32>
    %8 = vector.shape_cast %7 : vector<8xf32> to vector<8x1xf32>
    %cst_3 = arith.constant 5.120000e+02 : f32
    %9 = vector.broadcast %cst_3 : f32 to vector<8x1xf32>
    %10 = arith.divf %8, %9 : vector<8x1xf32>
    %11 = arith.mulf %5, %5 : vector<8x1xf32>
    %12 = arith.subf %10, %11 : vector<8x1xf32>
    %cst_4 = arith.constant 0.000000e+00 : f32
    %13 = vector.broadcast %cst_4 : f32 to vector<8x1xf32>
    %14 = arith.maximumf %12, %13 : vector<8x1xf32>
    %15 = vector.broadcast %5 : vector<8x1xf32> to vector<8x512xf32>
    %16 = arith.subf %1, %15 : vector<8x512xf32>
    %cst_5 = arith.constant 9.99999974E-6 : f32
    %17 = vector.broadcast %cst_5 : f32 to vector<8x1xf32>
    %18 = arith.addf %14, %17 : vector<8x1xf32>
    %19 = math.rsqrt %18 : vector<8x1xf32>
    %20 = vector.broadcast %19 : vector<8x1xf32> to vector<8x512xf32>
    %21 = arith.mulf %16, %20 : vector<8x512xf32>
    %22 = arith.truncf %21 : vector<8x512xf32> to vector<8x512xbf16>
    %c0_6 = arith.constant 0 : index
    %c0_7 = arith.constant 0 : index
    %23 = vector.load %arg2[%c0_6, %c0_7] : memref<512x1024xbf16, #tpu.memory_space<vmem>>, vector<512x1024xbf16>
    %cst_8 = arith.constant dense<0.000000e+00> : vector<8x1024xf32>
    %24 = tpu.matmul %22, %23, %cst_8 {dimension_numbers = #tpu.dot_dimension_numbers<[1], [0], [0], [1], [0, 0, 1, 1], [], []>} : vector<8x512xbf16>, vector<512x1024xbf16>, vector<8x1024xf32> -> vector<8x1024xf32>
    %c0_9 = arith.constant 0 : index
    %c0_10 = arith.constant 0 : index
    %25 = vector.load %arg3[%c0_9, %c0_10] : memref<1x1024xf32, #tpu.memory_space<vmem>>, vector<1x1024xf32>
    %26 = vector.broadcast %25 : vector<1x1024xf32> to vector<8x1024xf32>
    %27 = arith.addf %24, %26 : vector<8x1024xf32>
    %cst_11 = arith.constant 0.000000e+00 : f32
    %28 = vector.broadcast %cst_11 : f32 to vector<8x1024xf32>
    %29 = arith.maximumf %27, %28 : vector<8x1024xf32>
    %30 = arith.truncf %29 : vector<8x1024xf32> to vector<8x1024xbf16>
    %c0_12 = arith.constant 0 : index
    %c0_13 = arith.constant 0 : index
    %31 = vector.load %arg4[%c0_12, %c0_13] : memref<1024x512xbf16, #tpu.memory_space<vmem>>, vector<1024x512xbf16>
    %cst_14 = arith.constant dense<0.000000e+00> : vector<8x512xf32>
    %32 = tpu.matmul %30, %31, %cst_14 {dimension_numbers = #tpu.dot_dimension_numbers<[1], [0], [0], [1], [0, 0, 1, 1], [], []>} : vector<8x1024xbf16>, vector<1024x512xbf16>, vector<8x512xf32> -> vector<8x512xf32>
    %c0_15 = arith.constant 0 : index
    %c0_16 = arith.constant 0 : index
    %33 = vector.load %arg5[%c0_15, %c0_16] : memref<1x512xf32, #tpu.memory_space<vmem>>, vector<1x512xf32>
    %34 = vector.broadcast %33 : vector<1x512xf32> to vector<8x512xf32>
    %35 = arith.addf %32, %34 : vector<8x512xf32>
    %cst_17 = arith.constant 0.000000e+00 : f32
    %36 = vector.broadcast %cst_17 : f32 to vector<8x512xf32>
    %37 = arith.maximumf %35, %36 : vector<8x512xf32>
    %38 = arith.truncf %37 : vector<8x512xf32> to vector<8x512xbf16>
    %c0_18 = arith.constant 0 : index
    %c0_19 = arith.constant 0 : index
    %39 = vector.load %arg6[%c0_18, %c0_19] : memref<512x256xbf16, #tpu.memory_space<vmem>>, vector<512x256xbf16>
    %cst_20 = arith.constant dense<0.000000e+00> : vector<8x256xf32>
    %40 = tpu.matmul %38, %39, %cst_20 {dimension_numbers = #tpu.dot_dimension_numbers<[1], [0], [0], [1], [0, 0, 1, 1], [], []>} : vector<8x512xbf16>, vector<512x256xbf16>, vector<8x256xf32> -> vector<8x256xf32>
    %c0_21 = arith.constant 0 : index
    %c0_22 = arith.constant 0 : index
    %41 = vector.load %arg7[%c0_21, %c0_22] : memref<1x256xf32, #tpu.memory_space<vmem>>, vector<1x256xf32>
    %42 = vector.broadcast %41 : vector<1x256xf32> to vector<8x256xf32>
    %43 = arith.addf %40, %42 : vector<8x256xf32>
    %cst_23 = arith.constant 0.000000e+00 : f32
    %44 = vector.broadcast %cst_23 : f32 to vector<8x256xf32>
    %45 = arith.maximumf %43, %44 : vector<8x256xf32>
    %46 = arith.truncf %45 : vector<8x256xf32> to vector<8x256xbf16>
    %c0_24 = arith.constant 0 : index
    %c0_25 = arith.constant 0 : index
    %47 = vector.load %arg8[%c0_24, %c0_25] : memref<256x128xbf16, #tpu.memory_space<vmem>>, vector<256x128xbf16>
    %cst_26 = arith.constant dense<0.000000e+00> : vector<8x128xf32>
    %48 = tpu.matmul %46, %47, %cst_26 {dimension_numbers = #tpu.dot_dimension_numbers<[1], [0], [0], [1], [0, 0, 1, 1], [], []>} : vector<8x256xbf16>, vector<256x128xbf16>, vector<8x128xf32> -> vector<8x128xf32>
    %c0_27 = arith.constant 0 : index
    %c0_28 = arith.constant 0 : index
    %49 = vector.load %arg9[%c0_27, %c0_28] : memref<1x128xf32, #tpu.memory_space<vmem>>, vector<1x128xf32>
    %50 = vector.broadcast %49 : vector<1x128xf32> to vector<8x128xf32>
    %51 = arith.addf %48, %50 : vector<8x128xf32>
    %c0_29 = arith.constant 0 : index
    %c0_30 = arith.constant 0 : index
    %52 = vector.load %arg10[%c0_29, %c0_30] : memref<8x128xf32, #tpu.memory_space<vmem>>, vector<8x128xf32>
    tpu.vector_store %arg10[%c0_29, %c0_30], %51 {strides = array<i32>} : memref<8x128xf32, #tpu.memory_space<vmem>>, vector<8x128xf32>,
    return
  }
  func.func @transform_0(%arg0: i32) -> (i32, i32) {
    %c0_i32 = arith.constant 0 : i32
    %c0_i32_0 = arith.constant 0 : i32
    return %arg0, %c0_i32 : i32, i32
  }
  func.func @transform_1(%arg0: i32) -> (i32, i32) {
    %c0_i32 = arith.constant 0 : i32
    %c0_i32_0 = arith.constant 0 : i32
    %c0_i32_1 = arith.constant 0 : i32
    return %c0_i32, %c0_i32_0 : i32, i32
  }
  func.func @transform_2(%arg0: i32) -> (i32, i32) {
    %c0_i32 = arith.constant 0 : i32
    %c0_i32_0 = arith.constant 0 : i32
    %c0_i32_1 = arith.constant 0 : i32
    return %c0_i32, %c0_i32_0 : i32, i32
  }
  func.func @transform_3(%arg0: i32) -> (i32, i32) {
    %c0_i32 = arith.constant 0 : i32
    %c0_i32_0 = arith.constant 0 : i32
    %c0_i32_1 = arith.constant 0 : i32
    return %c0_i32, %c0_i32_0 : i32, i32
  }
  func.func @transform_4(%arg0: i32) -> (i32, i32) {
    %c0_i32 = arith.constant 0 : i32
    %c0_i32_0 = arith.constant 0 : i32
    %c0_i32_1 = arith.constant 0 : i32
    return %c0_i32, %c0_i32_0 : i32, i32
  }
  func.func @transform_5(%arg0: i32) -> (i32, i32) {
    %c0_i32 = arith.constant 0 : i32
    %c0_i32_0 = arith.constant 0 : i32
    %c0_i32_1 = arith.constant 0 : i32
    return %c0_i32, %c0_i32_0 : i32, i32
  }
  func.func @transform_6(%arg0: i32) -> (i32, i32) {
    %c0_i32 = arith.constant 0 : i32
    %c0_i32_0 = arith.constant 0 : i32
    %c0_i32_1 = arith.constant 0 : i32
    return %c0_i32, %c0_i32_0 : i32, i32
  }
  func.func @transform_7(%arg0: i32) -> (i32, i32) {
    %c0_i32 = arith.constant 0 : i32
    %c0_i32_0 = arith.constant 0 : i32
    %c0_i32_1 = arith.constant 0 : i32
    return %c0_i32, %c0_i32_0 : i32, i32
  }
  func.func @transform_8(%arg0: i32) -> (i32, i32) {
    %c0_i32 = arith.constant 0 : i32
    %c0_i32_0 = arith.constant 0 : i32
    %c0_i32_1 = arith.constant 0 : i32
    return %c0_i32, %c0_i32_0 : i32, i32
  }
  func.func @transform_9(%arg0: i32) -> (i32, i32) {
    %c0_i32 = arith.constant 0 : i32
    %c0_i32_0 = arith.constant 0 : i32
    return %arg0, %c0_i32 : i32, i32
  }
}

</mosaic_0001>

<bundles_post_ra>
// kernel: tpu_custom_call.1
= control target key start
LH: loop header
LB: loop body
LE: loop exit
PB: predicated region body
PF: predicated region fallthrough
CT: control target
= control target key end

     0   :  { %14 = vsyncpa [#allocation3], 0  ;;  %s8321_s0 = inlined_call_operand.hbm [shape: bf16[8,512], index: 0, kind: input, shape index: {}]   ;;  %s8322_s1 = inlined_call_operand.hbm [shape: bf16[512,1024], index: 1, kind: input, shape index: {}]   ;;  %s8323_s2 = inlined_call_operand.hbm [shape: f32[1,1024], index: 2, kind: input, shape index: {}]   ;;  %s8324_s3 = inlined_call_operand.hbm [shape: bf16[1024,512], index: 3, kind: input, shape index: {}]   ;;  %s8325_s4 = inlined_call_operand.hbm [shape: f32[1,512], index: 4, kind: input, shape index: {}]   ;;  %s8326_s5 = inlined_call_operand.hbm [shape: bf16[512,256], index: 5, kind: input, shape index: {}]   ;;  %s8327_s6 = inlined_call_operand.vmem [shape: f32[1,256], index: 6, kind: input, shape index: {}]   ;;  %s8328_s7 = inlined_call_operand.hbm [shape: bf16[256,128], index: 7, kind: input, shape index: {}]   ;;  %s8329_s8 = inlined_call_operand.vmem [shape: f32[1,128], index: 8, kind: input, shape index: {}]   ;;  %s8330_s9 = inlined_call_operand.hbm [shape: f32[8,128], index: 9, kind: output, shape index: {}]  }
   0x1   :  { %15 = vsyncpa [#allocation6], 0 }
   0x2   :  { %16 = vsyncpa [#allocation9], 0 }
   0x3   :  { %17 = vsyncpa [#allocation12], 0  ;;  %s34_s11 = sshll.u32 %s8322_s1, 4  ;;  %s35_s11 = int_to_ptr.hbm [resolvable:$true] %s34_s11 }
   0x4   :  { %18 = vsyncpa [#allocation4], 0  ;;  %s8010_s12 = smov [#allocation5]   ;;  %s58_s16 = sshll.u32 %s8324_s3, 4  ;;  %s59_s16 = int_to_ptr.hbm [resolvable:$true] %s58_s16 }
   0x5   :  { %s36_s13 = sshll.u32 %s8010_s12, 4  ;;  %s8011_s17 = smov 512   ;;  %s37_s13 = int_to_ptr.vmem [resolvable:$true] %s36_s13 }
   0x6   :  { %s8012_s18 = smov 32   ;;  %s8013_s19 = smov [#allocation8]  }
   0x7   :  { %42 = dma.hbm_to_vmem [thread:$0]  %s35_s11, 32768, %s37_s13, [#allocation6], %s8011_s17, %s8011_s17, %s8012_s18  }
   0x8   :  { %s60_s20 = sshll.u32 %s8013_s19, 4  ;;  %s8014_s21 = smov 256   ;;  %s61_s20 = int_to_ptr.vmem [resolvable:$true] %s60_s20 }
   0x9   :  { %s8015_s22 = smov 16   ;;  %s82_s24 = sshll.u32 %s8326_s5, 4  ;;  %s83_s24 = int_to_ptr.hbm [resolvable:$true] %s82_s24 }
   0xa   :  { %66 = dma.hbm_to_vmem [thread:$0]  %s59_s16, 32768, %s61_s20, [#allocation9], %s8014_s21, %s8014_s21, %s8015_s22  }
   0xb   :  { %s8016_s25 = smov [#allocation11]   ;;  %s24_s28 = sshll.u32 %s8321_s0, 4  ;;  %s25_s28 = int_to_ptr.hbm [resolvable:$true] %s24_s28 }
   0xc   :  { %s84_s26 = sshll.u32 %s8016_s25, 4  ;;  %s8017_s29 = smov 128   ;;  %s85_s26 = int_to_ptr.vmem [resolvable:$true] %s84_s26 }
   0xd   :  { %s8018_s30 = smov 8   ;;  %s8019_s10 = smov [#allocation2]  }
   0xe   :  { %90 = dma.hbm_to_vmem [thread:$0]  %s83_s24, 8192, %s85_s26, [#allocation12], %s8017_s29, %s8017_s29, %s8018_s30  }
   0xf   :  { %s26_s11 = sshll.u32 %s8019_s10, 4  ;;  %s48_s14 = sshll.u32 %s8323_s2, 4  ;;  %s27_s11 = int_to_ptr.vmem [resolvable:$true] %s26_s11  ;;  %s49_s14 = int_to_ptr.hbm [resolvable:$true] %s48_s14 }
  0x10   :  { %29 = dma.hbm_to_vmem [thread:$0]  %s25_s28, 256, %s27_s11, [#allocation3]  }
  0x11   :  { %s72_s16 = sshll.u32 %s8325_s4, 4  ;;  %s8020_s17 = smov [#allocation7]   ;;  %s73_s16 = int_to_ptr.hbm [resolvable:$true] %s72_s16 }
  0x12   :  { %s50_s18 = sshll.u32 %s8020_s17, 4  ;;  %s8021_s0 = smov [#allocation10]   ;;  %s51_s18 = int_to_ptr.vmem [resolvable:$true] %s50_s18 }
  0x13   :  { %53 = dma.hbm_to_vmem [thread:$0]  %s49_s14, 128, %s51_s18, [#allocation6]  }
  0x14   :  { %s74_s19 = sshll.u32 %s8021_s0, 4  ;;  %s97_s22 = sshll.u32 %s8328_s7, 4  ;;  %s75_s19 = int_to_ptr.vmem [resolvable:$true] %s74_s19  ;;  %s98_s22 = int_to_ptr.hbm [resolvable:$true] %s97_s22 }
  0x15   :  { %77 = dma.hbm_to_vmem [thread:$0]  %s73_s16, 64, %s75_s19, [#allocation9]  }
  0x16   :  { %s8022_s2 = smov [#allocation13]   ;;  %s8023_s23 = smov 64  }
  0x17   :  { %s99_s1 = sshll.u32 %s8022_s2, 4  ;;  %s8024_s24 = smov 4   ;;  %s100_s1 = int_to_ptr.vmem [resolvable:$true] %s99_s1 }
  0x18   :  { %105 = dma.hbm_to_vmem [thread:$0]  %s98_s22, 2048, %s100_s1, [#allocation12], %s8023_s23, %s8023_s23, %s8024_s24  }
  0x19   :  { %8000 = dma.done.wait [#allocation3], 256  }
  0x1a   :  { %8001 = vsyncadd [#allocation3], 4294967040 }
  0x1b   :  { %8002 = dma.done.wait [#allocation6], 32896  }
  0x1c   :  { %8003 = vsyncadd [#allocation6], 4294934400 }
  0x1d   :  { %8004 = dma.done.wait [#allocation9], 32832  }
  0x1e   :  { %8005 = vsyncadd [#allocation9], 4294934464 }
  0x1f   :  { %8006 = dma.done.wait [#allocation12], 10240  }
  0x20   :  { %8007 = vsyncadd [#allocation12], 4294957056  ;;  %v136_v0 = vld [vmem:[#allocation2] sm:$0xff]  ;;  %v137_v1 = vld [vmem:[#allocation2 + $0x8] sm:$0xff]  ;;  %s8026_s26 = smov [#allocation14]   ;;  %s4811_s29 = sshll.u32 %s8330_s9, 4  ;;  %s4812_s29 = int_to_ptr.hbm [resolvable:$true] %s4811_s29 }
  0x21   :  { %v5050_v2 = vld [vmem:[#allocation5 + $0x1c0] sm:$0xf]  ;;  %v8098_v3 = vunpack.c.l.bf16 %v136_v0  ;;  %v8100_v4 = vunpack.c.h.bf16 %v136_v0  ;;  %v8102_v5 = vunpack.c.l.bf16 %v137_v1  ;;  %v8104_v14 = vunpack.c.h.bf16 %v137_v1  ;;  %s4809_s27 = sshll.u32 %s8026_s26, 4  ;;  %s4810_s27 = int_to_ptr.vmem [resolvable:$true] %s4809_s27 }
  0x22   :  { %v7252_v6 = vld [vmem:[#allocation5 + $0x1dc] sm:$0xf0] }
  0x23   :  { %v5306_v7 = vld [vmem:[#allocation5 + $0x3c0] sm:$0xf]  ;;  %v5051_v9 = vor.u32 %v7252_v6, %v5050_v2  ;;  %v142_v15 = vadd.f32 %v8100_v4, %v8098_v3  ;;  %v155_v16 = vmul.f32 %v8098_v3, %v8098_v3  ;;  %v156_v17 = vmul.f32 %v8100_v4, %v8100_v4 }
  0x24   :  { %v7316_v8 = vld [vmem:[#allocation5 + $0x3dc] sm:$0xf0]  ;;  %v157_v21 = vmul.f32 %v8102_v5, %v8102_v5  ;;  %v158_v48 = vmul.f32 %v8104_v14, %v8104_v14 }
  0x25   :  { %v5307_v10 = vor.u32 %v7316_v8, %v5306_v7  ;;  %v5562_v11 = vld [vmem:[#allocation5 + $0x5c0] sm:$0xf]  ;;  %1745 = vmatpush.bf16.msra.mxu0 %v5051_v9  ;;  %v143_v27 = vadd.f32 %v142_v15, %v8102_v5  ;;  %v159_v28 = vadd.f32 %v156_v17, %v155_v16 }
  0x26   :  { %v7380_v12 = vld [vmem:[#allocation5 + $0x5dc] sm:$0xf0] }
  0x27   :  { %v5818_v13 = vld [vmem:[#allocation5 + $0x7c0] sm:$0xf]  ;;  %1758 = vmatpush.bf16.msra.mxu1 %v5307_v10  ;;  %v5563_v22 = vor.u32 %v7380_v12, %v5562_v11  ;;  %v144_v39 = vadd.f32 %v143_v27, %v8104_v14  ;;  %v160_v49 = vadd.f32 %v159_v28, %v157_v21 }
  0x28   :  { %v7444_v18 = vld [vmem:[#allocation5 + $0x7dc] sm:$0xf0] }
  0x29   :  { %v5018_v19 = vld [vmem:[#allocation5 + $0x180] sm:$0xf]  ;;  %v5819_v23 = vor.u32 %v7444_v18, %v5818_v13  ;;  %1771 = vmatpush.bf16.msra.mxu2 %v5563_v22  ;;  %145 = vadd.xlane.f32.xlu0 %v144_v39  ;;  %v161_v62 = vadd.f32 %v160_v49, %v158_v48 }
  0x2a   :  { %v7244_v20 = vld [vmem:[#allocation5 + $0x19c] sm:$0xf0] }
  0x2b   :  { %v5274_v24 = vld [vmem:[#allocation5 + $0x380] sm:$0xf]  ;;  %v5019_v29 = vor.u32 %v7244_v20, %v5018_v19  ;;  %1784 = vmatpush.bf16.msra.mxu3 %v5819_v23 }
  0x2c   :  { %v7308_v25 = vld [vmem:[#allocation5 + $0x39c] sm:$0xf0] }
  0x2d   :  { %v5530_v26 = vld [vmem:[#allocation5 + $0x580] sm:$0xf]  ;;  %v5275_v30 = vor.u32 %v7308_v25, %v5274_v24  ;;  %1746 = vmatpush.bf16.msra.mxu0 %v5019_v29 }
  0x2e   :  { %v7372_v31 = vld [vmem:[#allocation5 + $0x59c] sm:$0xf0] }
  0x2f   :  { %v5786_v32 = vld [vmem:[#allocation5 + $0x780] sm:$0xf]  ;;  %v5531_v34 = vor.u32 %v7372_v31, %v5530_v26  ;;  %1759 = vmatpush.bf16.msra.mxu1 %v5275_v30 }
  0x30   :  { %v7436_v33 = vld [vmem:[#allocation5 + $0x79c] sm:$0xf0] }
  0x31   :  { %v5787_v35 = vor.u32 %v7436_v33, %v5786_v32  ;;  %v4986_v36 = vld [vmem:[#allocation5 + $0x140] sm:$0xf]  ;;  %1772 = vmatpush.bf16.msra.mxu2 %v5531_v34  ;;  %162 = vadd.xlane.f32.xlu0 %v161_v62 }
  0x32   :  { %v7236_v37 = vld [vmem:[#allocation5 + $0x15c] sm:$0xf0] }
  0x33   :  { %v5242_v38 = vld [vmem:[#allocation5 + $0x340] sm:$0xf]  ;;  %v4987_v43 = vor.u32 %v7236_v37, %v4986_v36  ;;  %1785 = vmatpush.bf16.msra.mxu3 %v5787_v35 }
  0x34   :  { %v7300_v40 = vld [vmem:[#allocation5 + $0x35c] sm:$0xf0] }
  0x35   :  { %v5498_v41 = vld [vmem:[#allocation5 + $0x540] sm:$0xf]  ;;  %v5243_v44 = vor.u32 %v7300_v40, %v5242_v38  ;;  %1747 = vmatpush.bf16.msra.mxu0 %v4987_v43 }
  0x36   :  { %v7364_v42 = vld [vmem:[#allocation5 + $0x55c] sm:$0xf0] }
  0x37   :  { %v5754_v45 = vld [vmem:[#allocation5 + $0x740] sm:$0xf]  ;;  %v5499_v53 = vor.u32 %v7364_v42, %v5498_v41  ;;  %1760 = vmatpush.bf16.msra.mxu1 %v5243_v44 }
  0x38   :  { %v7428_v46 = vld [vmem:[#allocation5 + $0x75c] sm:$0xf0] }
  0x39   :  { %v4954_v47 = vld [vmem:[#allocation5 + $0x100] sm:$0xf]  ;;  %v5755_v54 = vor.u32 %v7428_v46, %v5754_v45  ;;  %1773 = vmatpush.bf16.msra.mxu2 %v5499_v53 }
  0x3a   :  { %v7228_v50 = vld [vmem:[#allocation5 + $0x11c] sm:$0xf0] }
  0x3b   :  { %v5210_v51 = vld [vmem:[#allocation5 + $0x300] sm:$0xf]  ;;  %v4955_v59 = vor.u32 %v7228_v50, %v4954_v47  ;;  %1786 = vmatpush.bf16.msra.mxu3 %v5755_v54  ;;  %v8025_v47 = vmov 512.0   ;;  %v5052_v54 = vld [vmem:[#allocation5 + $0x1e0] sm:$0xf0] }
  0x3c   :  { %v7292_v52 = vld [vmem:[#allocation5 + $0x31c] sm:$0xf0]  ;;  %7802 = vrcp.f32 %v8025_v47 }
  0x3d   :  { %v5466_v55 = vld [vmem:[#allocation5 + $0x500] sm:$0xf]  ;;  %v5211_v60 = vor.u32 %v7292_v52, %v5210_v51  ;;  %1748 = vmatpush.bf16.msra.mxu0 %v4955_v59  ;;  %v7248_v52 = vld [vmem:[#allocation5 + $0x1c4] sm:$0xf] }
  0x3e   :  { %v7356_v56 = vld [vmem:[#allocation5 + $0x51c] sm:$0xf0]  ;;  %v7376_v59 = vld [vmem:[#allocation5 + $0x5c4] sm:$0xf] }
  0x3f   :  { %v5722_v57 = vld [vmem:[#allocation5 + $0x700] sm:$0xf]  ;;  %v5467_v2 = vor.u32 %v7356_v56, %v5466_v55  ;;  %1761 = vmatpush.bf16.msra.mxu1 %v5211_v60  ;;  %v7312_v55 = vld [vmem:[#allocation5 + $0x3c4] sm:$0xf] }
  0x40   :  { %v7420_v58 = vld [vmem:[#allocation5 + $0x71c] sm:$0xf0]  ;;  %v5308_v56 = vld [vmem:[#allocation5 + $0x3e0] sm:$0xf0] }
  0x41   :  { %v4922_v61 = vld [vmem:[#allocation5 + $0xc0] sm:$0xf]  ;;  %v5723_v6 = vor.u32 %v7420_v58, %v5722_v57  ;;  %1774 = vmatpush.bf16.msra.mxu2 %v5467_v2  ;;  %v5055_v57 = vor.u32 %v7248_v52, %v5052_v54  ;;  %v5311_v58 = vor.u32 %v7312_v55, %v5308_v56  ;;  %v5564_v60 = vld [vmem:[#allocation5 + $0x5e0] sm:$0xf0] }
  0x42   :  { %v7220_v63 = vld [vmem:[#allocation5 + $0xdc] sm:$0xf0]  ;;  %v5567_v62 = vor.u32 %v7376_v59, %v5564_v60  ;;  %v7408_v54 = vld [vmem:[#allocation5 + $0x6c4] sm:$0xf] }
  0x43   :  { %v5178_v0 = vld [vmem:[#allocation5 + $0x2c0] sm:$0xf]  ;;  %v4923_v11 = vor.u32 %v7220_v63, %v4922_v61  ;;  %1787 = vmatpush.bf16.msra.mxu3 %v5723_v6  ;;  %v7440_v61 = vld [vmem:[#allocation5 + $0x7c4] sm:$0xf] }
  0x44   :  { %v7284_v1 = vld [vmem:[#allocation5 + $0x2dc] sm:$0xf0]  ;;  %v5820_v63 = vld [vmem:[#allocation5 + $0x7e0] sm:$0xf0] }
  0x45   :  { %v5434_v7 = vld [vmem:[#allocation5 + $0x4c0] sm:$0xf]  ;;  %v5179_v12 = vor.u32 %v7284_v1, %v5178_v0  ;;  %1749 = vmatpush.bf16.msra.mxu0 %v4923_v11  ;;  %v7240_v0 = vld [vmem:[#allocation5 + $0x184] sm:$0xf]  ;;  %v5823_v2 = vor.u32 %v7440_v61, %v5820_v63 }
  0x46   :  { %v7348_v8 = vld [vmem:[#allocation5 + $0x4dc] sm:$0xf0]  ;;  %v5020_v1 = vld [vmem:[#allocation5 + $0x1a0] sm:$0xf0] }
  0x47   :  { %v5690_v9 = vld [vmem:[#allocation5 + $0x6c0] sm:$0xf]  ;;  %v5435_v13 = vor.u32 %v7348_v8, %v5434_v7  ;;  %1762 = vmatpush.bf16.msra.mxu1 %v5179_v12  ;;  %v5023_v6 = vor.u32 %v7240_v0, %v5020_v1  ;;  %v7304_v7 = vld [vmem:[#allocation5 + $0x384] sm:$0xf] }
  0x48   :  { %v7412_v10 = vld [vmem:[#allocation5 + $0x6dc] sm:$0xf0]  ;;  %v5276_v8 = vld [vmem:[#allocation5 + $0x3a0] sm:$0xf0] }
  0x49   :  { %v5691_v15 = vor.u32 %v7412_v10, %v5690_v9  ;;  %1775 = vmatpush.bf16.msra.mxu2 %v5435_v13  ;;  %v4890_v16 = vld [vmem:[#allocation5 + $0x80] sm:$0xf]  ;;  %v7368_v9 = vld [vmem:[#allocation5 + $0x584] sm:$0xf]  ;;  %v5279_v10 = vor.u32 %v7304_v7, %v5276_v8 }
  0x4a   :  { %v7212_v17 = vld [vmem:[#allocation5 + $0x9c] sm:$0xf0]  ;;  %v5532_v11 = vld [vmem:[#allocation5 + $0x5a0] sm:$0xf0] }
  0x4b   :  { %1788 = vmatpush.bf16.msra.mxu3 %v5691_v15  ;;  %v5146_v18 = vld [vmem:[#allocation5 + $0x280] sm:$0xf]  ;;  %v4891_v19 = vor.u32 %v7212_v17, %v4890_v16  ;;  %v7432_v12 = vld [vmem:[#allocation5 + $0x784] sm:$0xf]  ;;  %v8118_v15 = vpop.eup %7802  ;;  %v5535_v16 = vor.u32 %v7368_v9, %v5532_v11 }
  0x4c   :  { %v7276_v20 = vld [vmem:[#allocation5 + $0x29c] sm:$0xf0]  ;;  %v5788_v13 = vld [vmem:[#allocation5 + $0x7a0] sm:$0xf0]  ;;  %vm152_vm0 = vweird.f32 %v8118_v15 }
  0x4d   :  { %v5402_v21 = vld [vmem:[#allocation5 + $0x480] sm:$0xf]  ;;  %v5147_v23 = vor.u32 %v7276_v20, %v5146_v18  ;;  %1750 = vmatpush.bf16.msra.mxu0 %v4891_v19  ;;  %v5791_v17 = vor.u32 %v7432_v12, %v5788_v13  ;;  %v7232_v18 = vld [vmem:[#allocation5 + $0x144] sm:$0xf] }
  0x4e   :  { %v7340_v22 = vld [vmem:[#allocation5 + $0x49c] sm:$0xf0]  ;;  %v4988_v19 = vld [vmem:[#allocation5 + $0x160] sm:$0xf0] }
  0x4f   :  { %v5403_v24 = vor.u32 %v7340_v22, %v5402_v21  ;;  %v5658_v25 = vld [vmem:[#allocation5 + $0x680] sm:$0xf]  ;;  %1763 = vmatpush.bf16.msra.mxu1 %v5147_v23  ;;  %v7296_v20 = vld [vmem:[#allocation5 + $0x344] sm:$0xf]  ;;  %v4991_v21 = vor.u32 %v7232_v18, %v4988_v19 }
  0x50   :  { %v7404_v26 = vld [vmem:[#allocation5 + $0x69c] sm:$0xf0]  ;;  %v5244_v22 = vld [vmem:[#allocation5 + $0x360] sm:$0xf0] }
  0x51   :  { %v5659_v27 = vor.u32 %v7404_v26, %v5658_v25  ;;  %1776 = vmatpush.bf16.msra.mxu2 %v5403_v24  ;;  %v4858_v28 = vld [vmem:[#allocation5 + $0x40] sm:$0xf]  ;;  %v7360_v23 = vld [vmem:[#allocation5 + $0x544] sm:$0xf]  ;;  %v148_v25 = vmul.f32 512.0, %v8118_v15  ;;  %v5247_v26 = vor.u32 %v7296_v20, %v5244_v22 }
  0x52   :  { %v7204_v29 = vld [vmem:[#allocation5 + $0x5c] sm:$0xf0]  ;;  %v5500_v24 = vld [vmem:[#allocation5 + $0x560] sm:$0xf0] }
  0x53   :  { %v5114_v30 = vld [vmem:[#allocation5 + $0x240] sm:$0xf]  ;;  %1789 = vmatpush.bf16.msra.mxu3 %v5659_v27  ;;  %v4859_v31 = vor.u32 %v7204_v29, %v4858_v28  ;;  %v5503_v27 = vor.u32 %v7360_v23, %v5500_v24  ;;  %v7424_v28 = vld [vmem:[#allocation5 + $0x744] sm:$0xf] }
  0x54   :  { %v7268_v32 = vld [vmem:[#allocation5 + $0x25c] sm:$0xf0]  ;;  %v5756_v29 = vld [vmem:[#allocation5 + $0x760] sm:$0xf0] }
  0x55   :  { %v5370_v33 = vld [vmem:[#allocation5 + $0x440] sm:$0xf]  ;;  %v5115_v35 = vor.u32 %v7268_v32, %v5114_v30  ;;  %1751 = vmatpush.bf16.msra.mxu0 %v4859_v31  ;;  %v5759_v30 = vor.u32 %v7424_v28, %v5756_v29  ;;  %v7224_v31 = vld [vmem:[#allocation5 + $0x104] sm:$0xf] }
  0x56   :  { %v7332_v34 = vld [vmem:[#allocation5 + $0x45c] sm:$0xf0]  ;;  %v4956_v32 = vld [vmem:[#allocation5 + $0x120] sm:$0xf0] }
  0x57   :  { %v5371_v36 = vor.u32 %v7332_v34, %v5370_v33  ;;  %v5626_v37 = vld [vmem:[#allocation5 + $0x640] sm:$0xf]  ;;  %1764 = vmatpush.bf16.msra.mxu1 %v5115_v35  ;;  %v7288_v33 = vld [vmem:[#allocation5 + $0x304] sm:$0xf]  ;;  %v4959_v34 = vor.u32 %v7224_v31, %v4956_v32 }
  0x58   :  { %v7396_v38 = vld [vmem:[#allocation5 + $0x65c] sm:$0xf0]  ;;  %v5212_v35 = vld [vmem:[#allocation5 + $0x320] sm:$0xf0] }
  0x59   :  { %v5627_v39 = vor.u32 %v7396_v38, %v5626_v37  ;;  %1777 = vmatpush.bf16.msra.mxu2 %v5371_v36  ;;  %v4826_v40 = vld [vmem:[#allocation5] sm:$0xf]  ;;  %v7352_v36 = vld [vmem:[#allocation5 + $0x504] sm:$0xf]  ;;  %v149_v38 = vsub.f32 1.0, %v148_v25 }
  0x5a   :  { %v7196_v41 = vld [vmem:[#allocation5 + $0x1c] sm:$0xf0]  ;;  %v5468_v37 = vld [vmem:[#allocation5 + $0x520] sm:$0xf0] }
  0x5b   :  { %1790 = vmatpush.bf16.msra.mxu3 %v5627_v39  ;;  %v5082_v42 = vld [vmem:[#allocation5 + $0x200] sm:$0xf]  ;;  %v4827_v43 = vor.u32 %v7196_v41, %v4826_v40  ;;  %v5215_v39 = vor.u32 %v7288_v33, %v5212_v35  ;;  %v5471_v40 = vor.u32 %v7352_v36, %v5468_v37  ;;  %v7416_v41 = vld [vmem:[#allocation5 + $0x704] sm:$0xf] }
  0x5c   :  { %v7260_v44 = vld [vmem:[#allocation5 + $0x21c] sm:$0xf0]  ;;  %v5692_v55 = vld [vmem:[#allocation5 + $0x6e0] sm:$0xf0] }
  0x5d   :  { %v5338_v45 = vld [vmem:[#allocation5 + $0x400] sm:$0xf]  ;;  %v5083_v48 = vor.u32 %v7260_v44, %v5082_v42  ;;  %1752 = vmatpush.bf16.msra.mxu0 %v4827_v43  ;;  %v5724_v42 = vld [vmem:[#allocation5 + $0x720] sm:$0xf0]  ;;  %v5695_v56 = vor.u32 %v7408_v54, %v5692_v55  ;;  %v5314_v55 = vld [vmem:[#allocation5 + $0x3c8] sm:$0xf] }
  0x5e   :  { %v7324_v46 = vld [vmem:[#allocation5 + $0x41c] sm:$0xf0]  ;;  %v5727_v43 = vor.u32 %v7416_v41, %v5724_v42  ;;  %v7216_v44 = vld [vmem:[#allocation5 + $0xc4] sm:$0xf] }
  0x5f   :  { %v5339_v49 = vor.u32 %v7324_v46, %v5338_v45  ;;  %v5594_v50 = vld [vmem:[#allocation5 + $0x600] sm:$0xf]  ;;  %1765 = vmatpush.bf16.msra.mxu1 %v5083_v48  ;;  %v4924_v45 = vld [vmem:[#allocation5 + $0xe0] sm:$0xf0] }
  0x60   :  { %v7388_v51 = vld [vmem:[#allocation5 + $0x61c] sm:$0xf0]  ;;  %v7280_v46 = vld [vmem:[#allocation5 + $0x2c4] sm:$0xf]  ;;  %v4927_v47 = vor.u32 %v7216_v44, %v4924_v45 }
  0x61   :  { %v5595_v53 = vor.u32 %v7388_v51, %v5594_v50  ;;  %1778 = vmatpush.bf16.msra.mxu2 %v5339_v49  ;;  %1797 = vmatpush.bf16.msrb.mxu0 %v5055_v57  ;;  %v5180_v48 = vld [vmem:[#allocation5 + $0x2e0] sm:$0xf0]  ;;  %v150_v51 = vmul.f32 %v8118_v15, %v149_v38 }
  0x62   :  { %v7344_v49 = vld [vmem:[#allocation5 + $0x4c4] sm:$0xf]  ;;  %v5183_v52 = vor.u32 %v7280_v46, %v5180_v48 }
  0x63   :  { %1791 = vmatpush.bf16.msra.mxu3 %v5595_v53  ;;  %1810 = vmatpush.bf16.msrb.mxu1 %v5311_v58  ;;  %v5436_v50 = vld [vmem:[#allocation5 + $0x4e0] sm:$0xf0]  ;;  %v151_v0 = vadd.f32 %v8118_v15, %v150_v51 }
  0x64   :  { %v5439_v53 = vor.u32 %v7344_v49, %v5436_v50  ;;  %v7208_v57 = vld [vmem:[#allocation5 + $0x84] sm:$0xf]  ;;  %v5058_v49 = vld [vmem:[#allocation5 + $0x1c8] sm:$0xf] }
  0x65   :  { %1823 = vmatpush.bf16.msrb.mxu2 %v5567_v62  ;;  %1798 = vmatpush.bf16.msrb.mxu0 %v5023_v6  ;;  %v4892_v58 = vld [vmem:[#allocation5 + $0xa0] sm:$0xf0]  ;;  %v153_v19 = vsel %vm152_vm0, %v8118_v15, %v151_v0  ;;  %v7253_v50 = vld [vmem:[#allocation5 + $0x1e4] sm:$0xf0] }
  0x66   :  { %v7272_v59 = vld [vmem:[#allocation5 + $0x284] sm:$0xf]  ;;  %v4895_v60 = vor.u32 %v7208_v57, %v4892_v58  ;;  %v5570_v58 = vld [vmem:[#allocation5 + $0x5c8] sm:$0xf] }
  0x67   :  { %1836 = vmatpush.bf16.msrb.mxu3 %v5823_v2  ;;  %1811 = vmatpush.bf16.msrb.mxu1 %v5279_v10  ;;  %v5148_v61 = vld [vmem:[#allocation5 + $0x2a0] sm:$0xf0]  ;;  %v5826_v0 = vld [vmem:[#allocation5 + $0x7c8] sm:$0xf] }
  0x68   :  { %v7336_v62 = vld [vmem:[#allocation5 + $0x484] sm:$0xf]  ;;  %v5151_v1 = vor.u32 %v7272_v59, %v5148_v61 }
  0x69   :  { %1824 = vmatpush.bf16.msrb.mxu2 %v5535_v16  ;;  %1799 = vmatpush.bf16.msrb.mxu0 %v4991_v21  ;;  %v5404_v63 = vld [vmem:[#allocation5 + $0x4a0] sm:$0xf0] }
  0x6a   :  { %v5407_v2 = vor.u32 %v7336_v62, %v5404_v63  ;;  %v7400_v6 = vld [vmem:[#allocation5 + $0x684] sm:$0xf]  ;;  %v7381_v63 = vld [vmem:[#allocation5 + $0x5e4] sm:$0xf0] }
  0x6b   :  { %1837 = vmatpush.bf16.msrb.mxu3 %v5791_v17  ;;  %1812 = vmatpush.bf16.msrb.mxu1 %v5247_v26  ;;  %v5660_v7 = vld [vmem:[#allocation5 + $0x6a0] sm:$0xf0] }
  0x6c   :  { %v5663_v8 = vor.u32 %v7400_v6, %v5660_v7  ;;  %v7200_v10 = vld [vmem:[#allocation5 + $0x44] sm:$0xf]  ;;  %v5026_v7 = vld [vmem:[#allocation5 + $0x188] sm:$0xf] }
  0x6d   :  { %1825 = vmatpush.bf16.msrb.mxu2 %v5503_v27  ;;  %1800 = vmatpush.bf16.msrb.mxu0 %v4959_v34  ;;  %v4860_v11 = vld [vmem:[#allocation5 + $0x60] sm:$0xf0] }
  0x6e   :  { %v7264_v12 = vld [vmem:[#allocation5 + $0x244] sm:$0xf]  ;;  %v4863_v13 = vor.u32 %v7200_v10, %v4860_v11  ;;  %v5282_v11 = vld [vmem:[#allocation5 + $0x388] sm:$0xf] }
  0x6f   :  { %1838 = vmatpush.bf16.msrb.mxu3 %v5759_v30  ;;  %1813 = vmatpush.bf16.msrb.mxu1 %v5215_v39  ;;  %v5116_v16 = vld [vmem:[#allocation5 + $0x260] sm:$0xf0] }
  0x70   :  { %v7328_v17 = vld [vmem:[#allocation5 + $0x444] sm:$0xf]  ;;  %v5119_v20 = vor.u32 %v7264_v12, %v5116_v16  ;;  %v7309_v12 = vld [vmem:[#allocation5 + $0x3a4] sm:$0xf0] }
  0x71   :  { %1826 = vmatpush.bf16.msrb.mxu2 %v5471_v40  ;;  %1801 = vmatpush.bf16.msrb.mxu0 %v4927_v47  ;;  %v5372_v18 = vld [vmem:[#allocation5 + $0x460] sm:$0xf0]  ;;  %v7373_v16 = vld [vmem:[#allocation5 + $0x5a4] sm:$0xf0] }
  0x72   :  { %v5375_v21 = vor.u32 %v7328_v17, %v5372_v18  ;;  %v7392_v22 = vld [vmem:[#allocation5 + $0x644] sm:$0xf]  ;;  %v5794_v17 = vld [vmem:[#allocation5 + $0x788] sm:$0xf] }
  0x73   :  { %1839 = vmatpush.bf16.msrb.mxu3 %v5727_v43  ;;  %1814 = vmatpush.bf16.msrb.mxu1 %v5183_v52  ;;  %v5628_v23 = vld [vmem:[#allocation5 + $0x660] sm:$0xf0]  ;;  %v7437_v18 = vld [vmem:[#allocation5 + $0x7a4] sm:$0xf0] }
  0x74   :  { %v5631_v24 = vor.u32 %v7392_v22, %v5628_v23  ;;  %v7192_v25 = vld [vmem:[#allocation5 + $0x4] sm:$0xf]  ;;  %v7237_v22 = vld [vmem:[#allocation5 + $0x164] sm:$0xf0] }
  0x75   :  { %1827 = vmatpush.bf16.msrb.mxu2 %v5439_v53  ;;  %1802 = vmatpush.bf16.msrb.mxu0 %v4895_v60  ;;  %v4828_v26 = vld [vmem:[#allocation5 + $0x20] sm:$0xf0] }
  0x76   :  { %v7256_v27 = vld [vmem:[#allocation5 + $0x204] sm:$0xf]  ;;  %v4831_v29 = vor.u32 %v7192_v25, %v4828_v26  ;;  %v5250_v25 = vld [vmem:[#allocation5 + $0x348] sm:$0xf] }
  0x77   :  { %1840 = vmatpush.bf16.msrb.mxu3 %v5695_v56  ;;  %1815 = vmatpush.bf16.msrb.mxu1 %v5151_v1  ;;  %v5084_v30 = vld [vmem:[#allocation5 + $0x220] sm:$0xf0]  ;;  %v7317_v56 = vld [vmem:[#allocation5 + $0x3e4] sm:$0xf0] }
  0x78   :  { %v7320_v31 = vld [vmem:[#allocation5 + $0x404] sm:$0xf]  ;;  %v5087_v33 = vor.u32 %v7256_v27, %v5084_v30  ;;  %v7445_v1 = vld [vmem:[#allocation5 + $0x7e4] sm:$0xf0] }
  0x79   :  { %1828 = vmatpush.bf16.msrb.mxu2 %v5407_v2  ;;  %1803 = vmatpush.bf16.msrb.mxu0 %v4863_v13  ;;  %v5340_v32 = vld [vmem:[#allocation5 + $0x420] sm:$0xf0]  ;;  %v5059_v2 = vor.u32 %v7253_v50, %v5058_v49  ;;  %v5827_v10 = vor.u32 %v7445_v1, %v5826_v0  ;;  %v5538_v13 = vld [vmem:[#allocation5 + $0x588] sm:$0xf] }
  0x7a   :  { %v5343_v15 = vor.u32 %v7320_v31, %v5340_v32  ;;  %v7384_v34 = vld [vmem:[#allocation5 + $0x604] sm:$0xf]  ;;  %v5539_v23 = vor.u32 %v7373_v16, %v5538_v13  ;;  %v7301_v26 = vld [vmem:[#allocation5 + $0x364] sm:$0xf0] }
  0x7b   :  { %1841 = vmatpush.bf16.msrb.mxu3 %v5663_v8  ;;  %1816 = vmatpush.bf16.msrb.mxu1 %v5119_v20  ;;  %v5596_v35 = vld [vmem:[#allocation5 + $0x620] sm:$0xf0]  ;;  %v7245_v8 = vld [vmem:[#allocation5 + $0x1a4] sm:$0xf0]  ;;  %v5283_v20 = vor.u32 %v7309_v12, %v5282_v11  ;;  %v5251_v32 = vor.u32 %v7301_v26, %v5250_v25 }
  0x7c   :  { %v5599_v36 = vor.u32 %v7384_v34, %v5596_v35  ;;  %v5506_v27 = vld [vmem:[#allocation5 + $0x548] sm:$0xf] }
  0x7d   :  { %1829 = vmatpush.bf16.msrb.mxu2 %v5375_v21  ;;  %1804 = vmatpush.bf16.msrb.mxu0 %v4831_v29  ;;  %v4994_v21 = vld [vmem:[#allocation5 + $0x148] sm:$0xf] }
  0x7e   :  { %v5762_v29 = vld [vmem:[#allocation5 + $0x748] sm:$0xf]  ;;  %v4995_v31 = vor.u32 %v7237_v22, %v4994_v21 }
  0x7f   :  { %1842 = vmatpush.bf16.msrb.mxu3 %v5631_v24  ;;  %1817 = vmatpush.bf16.msrb.mxu1 %v5087_v33  ;;  %v5795_v24 = vor.u32 %v7437_v18, %v5794_v17  ;;  %v7429_v30 = vld [vmem:[#allocation5 + $0x764] sm:$0xf0] }
  0x80   :  { %v4962_v33 = vld [vmem:[#allocation5 + $0x108] sm:$0xf]  ;;  %v5763_v35 = vor.u32 %v7429_v30, %v5762_v29 }
  0x81   :  { %1830 = vmatpush.bf16.msrb.mxu2 %v5343_v15  ;;  %v7229_v15 = vld [vmem:[#allocation5 + $0x124] sm:$0xf0] }
  0x82   :  { %v7285_v49 = vld [vmem:[#allocation5 + $0x2e4] sm:$0xf0] }
  0x83   :  { %1843 = vmatpush.bf16.msrb.mxu3 %v5599_v36  ;;  %v5218_v36 = vld [vmem:[#allocation5 + $0x308] sm:$0xf] }
  0x84   :  { %v5442_v50 = vld [vmem:[#allocation5 + $0x4c8] sm:$0xf] }
  0x85   :  { %v5666_v0 = vld [vmem:[#allocation5 + $0x688] sm:$0xf] }
  0x86   :  { %v7405_v1 = vld [vmem:[#allocation5 + $0x6a4] sm:$0xf0] }
  0x87   :  { %v5122_v11 = vld [vmem:[#allocation5 + $0x248] sm:$0xf] }
  0x88   :  { %v7269_v12 = vld [vmem:[#allocation5 + $0x264] sm:$0xf0] }
  0x89   :  { %v5378_v13 = vld [vmem:[#allocation5 + $0x448] sm:$0xf]  ;;  %v5123_v21 = vor.u32 %v7269_v12, %v5122_v11  ;;  %v7289_v11 = vld [vmem:[#allocation5 + $0x30c] sm:$0xf] }
  0x8a   :  { %v7333_v16 = vld [vmem:[#allocation5 + $0x464] sm:$0xf0]  ;;  %v5220_v12 = vld [vmem:[#allocation5 + $0x328] sm:$0xf0] }
  0x8b   :  { %v5634_v17 = vld [vmem:[#allocation5 + $0x648] sm:$0xf]  ;;  %v5379_v25 = vor.u32 %v7333_v16, %v5378_v13  ;;  %v7353_v13 = vld [vmem:[#allocation5 + $0x50c] sm:$0xf] }
  0x8c   :  { %v7397_v18 = vld [vmem:[#allocation5 + $0x664] sm:$0xf0]  ;;  %v5476_v16 = vld [vmem:[#allocation5 + $0x528] sm:$0xf0] }
  0x8d   :  { %v7197_v22 = vld [vmem:[#allocation5 + $0x24] sm:$0xf0]  ;;  %v5635_v26 = vor.u32 %v7397_v18, %v5634_v17  ;;  %v7417_v17 = vld [vmem:[#allocation5 + $0x70c] sm:$0xf] }
  0x8e   :  { %v5602_v29 = vld [vmem:[#allocation5 + $0x608] sm:$0xf]  ;;  %v5732_v18 = vld [vmem:[#allocation5 + $0x728] sm:$0xf0] }
  0x8f   :  { %v7389_v30 = vld [vmem:[#allocation5 + $0x624] sm:$0xf0] }
  0x9c   :  { %v146_v9 = vpop.xlane.xlu0 %145 }
  0x9d   :  { %v154_v28 = vmul.f32 %v153_v19, %v146_v9  ;;  %v5571_v9 = vor.u32 %v7381_v63, %v5570_v58  ;;  %v7341_v63 = vld [vmem:[#allocation5 + $0x4a4] sm:$0xf0] }
  0x9f   :  { %v165_v38 = vmul.f32 %v154_v28, %v154_v28  ;;  %v168_v51 = vsub.f32 %v8098_v3, %v154_v28  ;;  %v169_v52 = vsub.f32 %v8100_v4, %v154_v28  ;;  %v170_v53 = vsub.f32 %v8102_v5, %v154_v28 }
  0xa0   :  { %v171_v54 = vsub.f32 %v8104_v14, %v154_v28  ;;  %v5315_v3 = vor.u32 %v7317_v56, %v5314_v55  ;;  %v7365_v28 = vld [vmem:[#allocation5 + $0x564] sm:$0xf0] }
  0xa1   :  { %v5507_v34 = vor.u32 %v7365_v28, %v5506_v27  ;;  %v4898_v56 = vld [vmem:[#allocation5 + $0x88] sm:$0xf] }
  0xa2   :  { %v5346_v27 = vld [vmem:[#allocation5 + $0x408] sm:$0xf] }
  0xa3   :  { %v7325_v28 = vld [vmem:[#allocation5 + $0x424] sm:$0xf0] }
  0xa4   :  { %v163_v37 = vpop.xlane.xlu0 %162 }
  0xa5   :  { %v164_v39 = vmul.f32 %v163_v37, %v153_v19  ;;  %v5027_v19 = vor.u32 %v7245_v8, %v5026_v7  ;;  %v7293_v37 = vld [vmem:[#allocation5 + $0x324] sm:$0xf0] }
  0xa6   :  { %v4866_v7 = vld [vmem:[#allocation5 + $0x48] sm:$0xf] }
  0xa7   :  { %v166_v40 = vsub.f32 %v164_v39, %v165_v38  ;;  %v5474_v38 = vld [vmem:[#allocation5 + $0x508] sm:$0xf] }
  0xa8   :  { %v7357_v39 = vld [vmem:[#allocation5 + $0x524] sm:$0xf0] }
  0xa9   :  { %v167_v41 = vmax.f32 %v166_v40, 0.0  ;;  %v5730_v40 = vld [vmem:[#allocation5 + $0x708] sm:$0xf] }
  0xaa   :  { %v7205_v8 = vld [vmem:[#allocation5 + $0x64] sm:$0xf0] }
  0xab   :  { %v172_v42 = vadd.f32 1e-05, %v167_v41  ;;  %v7421_v41 = vld [vmem:[#allocation5 + $0x724] sm:$0xf0] }
  0xad   :  { %7804 = vrsqrt.f32 %v172_v42  ;;  %vm179_vm2 = vweird.f32 %v172_v42 }
  0xb3   :  { %v7805_v43 = vpop.eup %7804 }
  0xb4   :  { %v174_v44 = vmul.f32 %v7805_v43, %v172_v42  ;;  %vm180_vm1 = vweird.f32 %v7805_v43  ;;  %v4963_v42 = vor.u32 %v7229_v15, %v4962_v33  ;;  %v7313_v33 = vld [vmem:[#allocation5 + $0x3cc] sm:$0xf] }
  0xb5   :  { %vm181_vm3 = vmor %vm179_vm2, %vm180_vm1  ;;  %v5316_v15 = vld [vmem:[#allocation5 + $0x3e8] sm:$0xf0] }
  0xb6   :  { %v175_v45 = vmul.f32 %v7805_v43, %v174_v44  ;;  %v4930_v44 = vld [vmem:[#allocation5 + $0xc8] sm:$0xf] }
  0xb8   :  { %v176_v46 = vmul.f32 0.5, %v175_v45  ;;  %v7221_v45 = vld [vmem:[#allocation5 + $0xe4] sm:$0xf0] }
  0xba   :  { %v177_v47 = vsub.f32 1.5, %v176_v46  ;;  %v5475_v46 = vor.u32 %v7357_v39, %v5474_v38  ;;  %v7441_v38 = vld [vmem:[#allocation5 + $0x7cc] sm:$0xf] }
  0xbb   :  { %v5828_v39 = vld [vmem:[#allocation5 + $0x7e8] sm:$0xf0] }
  0xbc   :  { %v178_v48 = vmul.f32 %v7805_v43, %v177_v47  ;;  %v5731_v47 = vor.u32 %v7421_v41, %v5730_v40  ;;  %v5347_v40 = vor.u32 %v7325_v28, %v5346_v27  ;;  %v5603_v41 = vor.u32 %v7389_v30, %v5602_v29  ;;  %v7345_v27 = vld [vmem:[#allocation5 + $0x4cc] sm:$0xf] }
  0xbd   :  { %v5444_v28 = vld [vmem:[#allocation5 + $0x4e8] sm:$0xf0] }
  0xbe   :  { %v182_v57 = vsel %vm181_vm3, %v7805_v43, %v178_v48  ;;  %v5219_v43 = vor.u32 %v7293_v37, %v5218_v36  ;;  %v5186_v48 = vld [vmem:[#allocation5 + $0x2c8] sm:$0xf]  ;;  %v5572_v37 = vld [vmem:[#allocation5 + $0x5e8] sm:$0xf0] }
  0xbf   :  { %v183_v59 = vmul.f32 %v182_v57, %v168_v51  ;;  %v184_v60 = vmul.f32 %v182_v57, %v169_v52  ;;  %v185_v61 = vmul.f32 %v182_v57, %v170_v53  ;;  %v186_v62 = vmul.f32 %v182_v57, %v171_v54  ;;  %v7349_v51 = vld [vmem:[#allocation5 + $0x4e4] sm:$0xf0]  ;;  %v7409_v29 = vld [vmem:[#allocation5 + $0x6cc] sm:$0xf] }
  0xc0   :  { %v5698_v52 = vld [vmem:[#allocation5 + $0x6c8] sm:$0xf]  ;;  %v4931_v54 = vor.u32 %v7221_v45, %v4930_v44  ;;  %v5187_v55 = vor.u32 %v7285_v49, %v5186_v48  ;;  %v5443_v58 = vor.u32 %v7349_v51, %v5442_v50  ;;  %v7241_v44 = vld [vmem:[#allocation5 + $0x18c] sm:$0xf] }
  0xc1   :  { %v8129_v6 = vpack.c.bf16 %v183_v59, %v183_v59  ;;  %v8131_v4 = vpack.c.bf16 %v184_v60, %v184_v60  ;;  %v8133_v5 = vpack.c.bf16 %v185_v61, %v185_v61  ;;  %v8135_v14 = vpack.c.bf16 %v186_v62, %v186_v62  ;;  %v7413_v53 = vld [vmem:[#allocation5 + $0x6e4] sm:$0xf0]  ;;  %v5028_v45 = vld [vmem:[#allocation5 + $0x1a8] sm:$0xf0] }
  0xc2   :  { %v7213_v57 = vld [vmem:[#allocation5 + $0xa4] sm:$0xf0]  ;;  %v5699_v59 = vor.u32 %v7413_v53, %v5698_v52  ;;  %v7305_v48 = vld [vmem:[#allocation5 + $0x38c] sm:$0xf] }
  0xc3   :  { %1753 = vmatmul.bf16.vlgmr.msra.gmra.mxu0 %v8129_v6  ;;  %1766 = vmatmul.bf16.vlgmr.msra.gmra.mxu1 %v8131_v4  ;;  %v5154_v60 = vld [vmem:[#allocation5 + $0x288] sm:$0xf]  ;;  %v5284_v49 = vld [vmem:[#allocation5 + $0x3a8] sm:$0xf0] }
  0xc4   :  { %1779 = vmatmul.bf16.vlgmr.msra.gmra.mxu2 %v8133_v5  ;;  %1792 = vmatmul.bf16.vlgmr.msra.gmra.mxu3 %v8135_v14  ;;  %v7277_v61 = vld [vmem:[#allocation5 + $0x2a4] sm:$0xf0]  ;;  %v7369_v50 = vld [vmem:[#allocation5 + $0x58c] sm:$0xf] }
  0xc5   :  { %1849 = vmatpush.bf16.msra.mxu0 %v5059_v2  ;;  %1862 = vmatpush.bf16.msra.mxu1 %v5315_v3  ;;  %v5410_v62 = vld [vmem:[#allocation5 + $0x488] sm:$0xf]  ;;  %v4899_v2 = vor.u32 %v7213_v57, %v4898_v56  ;;  %v5155_v3 = vor.u32 %v7277_v61, %v5154_v60  ;;  %v5540_v51 = vld [vmem:[#allocation5 + $0x5a8] sm:$0xf0] }
  0xc6   :  { %1875 = vmatpush.bf16.msra.mxu2 %v5571_v9  ;;  %1888 = vmatpush.bf16.msra.mxu3 %v5827_v10  ;;  %v5411_v9 = vor.u32 %v7341_v63, %v5410_v62  ;;  %v5667_v10 = vor.u32 %v7405_v1, %v5666_v0  ;;  %v7433_v52 = vld [vmem:[#allocation5 + $0x78c] sm:$0xf] }
  0xc7   :  { %v5796_v53 = vld [vmem:[#allocation5 + $0x7a8] sm:$0xf0] }
  0xc8   :  { %v7233_v56 = vld [vmem:[#allocation5 + $0x14c] sm:$0xf] }
  0xc9   :  { %1850 = vmatpush.bf16.msra.mxu0 %v5027_v19  ;;  %1863 = vmatpush.bf16.msra.mxu1 %v5283_v20  ;;  %v4834_v19 = vld [vmem:[#allocation5 + $0x8] sm:$0xf]  ;;  %v4867_v20 = vor.u32 %v7205_v8, %v4866_v7  ;;  %v4996_v57 = vld [vmem:[#allocation5 + $0x168] sm:$0xf0] }
  0xca   :  { %1876 = vmatpush.bf16.msra.mxu2 %v5539_v23  ;;  %1889 = vmatpush.bf16.msra.mxu3 %v5795_v24  ;;  %v5090_v23 = vld [vmem:[#allocation5 + $0x208] sm:$0xf]  ;;  %v7297_v60 = vld [vmem:[#allocation5 + $0x34c] sm:$0xf] }
  0xcb   :  { %v7261_v24 = vld [vmem:[#allocation5 + $0x224] sm:$0xf0]  ;;  %v5252_v61 = vld [vmem:[#allocation5 + $0x368] sm:$0xf0] }
  0xcc   :  { %v5091_v36 = vor.u32 %v7261_v24, %v5090_v23  ;;  %v7361_v62 = vld [vmem:[#allocation5 + $0x54c] sm:$0xf]  ;;  %v5479_v23 = vor.u32 %v7353_v13, %v5476_v16  ;;  %v5735_v24 = vor.u32 %v7417_v17, %v5732_v18  ;;  %v5834_v13 = vld [vmem:[#allocation5 + $0x7d0] sm:$0xf] }
  0xcd   :  { %1851 = vmatpush.bf16.msra.mxu0 %v4995_v31  ;;  %1864 = vmatpush.bf16.msra.mxu1 %v5251_v32  ;;  %v7249_v31 = vld [vmem:[#allocation5 + $0x1cc] sm:$0xf]  ;;  %v7446_v16 = vld [vmem:[#allocation5 + $0x7ec] sm:$0xf0] }
  0xce   :  { %1877 = vmatpush.bf16.msra.mxu2 %v5507_v34  ;;  %1890 = vmatpush.bf16.msra.mxu3 %v5763_v35  ;;  %v5060_v32 = vld [vmem:[#allocation5 + $0x1e8] sm:$0xf0]  ;;  %v4835_v35 = vor.u32 %v7197_v22, %v4834_v19 }
  0xcf   :  { %v7377_v34 = vld [vmem:[#allocation5 + $0x5cc] sm:$0xf] }
  0xd0   :  { %v5508_v63 = vld [vmem:[#allocation5 + $0x568] sm:$0xf0] }
  0xd1   :  { %1852 = vmatpush.bf16.msra.mxu0 %v4963_v42  ;;  %1865 = vmatpush.bf16.msra.mxu1 %v5219_v43  ;;  %v5063_v42 = vor.u32 %v7249_v31, %v5060_v32  ;;  %v5319_v43 = vor.u32 %v7313_v33, %v5316_v15  ;;  %v7425_v0 = vld [vmem:[#allocation5 + $0x74c] sm:$0xf] }
  0xd2   :  { %1878 = vmatpush.bf16.msra.mxu2 %v5475_v46  ;;  %1891 = vmatpush.bf16.msra.mxu3 %v5731_v47  ;;  %v5575_v46 = vor.u32 %v7377_v34, %v5572_v37  ;;  %v5831_v47 = vor.u32 %v7441_v38, %v5828_v39  ;;  %v5764_v1 = vld [vmem:[#allocation5 + $0x768] sm:$0xf0]  ;;  %v5447_v34 = vor.u32 %v7345_v27, %v5444_v28  ;;  %v5546_v27 = vld [vmem:[#allocation5 + $0x590] sm:$0xf] }
  0xd3   :  { %1805 = vmatmul.bf16.vlgmr.msrb.gmra.mxu0 %v8129_v6  ;;  %1818 = vmatmul.bf16.vlgmr.msrb.gmra.mxu1 %v8131_v4  ;;  %v7225_v7 = vld [vmem:[#allocation5 + $0x10c] sm:$0xf]  ;;  %v7374_v28 = vld [vmem:[#allocation5 + $0x5ac] sm:$0xf0] }
  0xd4   :  { %1831 = vmatmul.bf16.vlgmr.msrb.gmra.mxu2 %v8133_v5  ;;  %1844 = vmatmul.bf16.vlgmr.msrb.gmra.mxu3 %v8135_v14  ;;  %v4964_v8 = vld [vmem:[#allocation5 + $0x128] sm:$0xf0] }
  0xd5   :  { %1853 = vmatpush.bf16.msra.mxu0 %v4931_v54  ;;  %1866 = vmatpush.bf16.msra.mxu1 %v5187_v55  ;;  %v5031_v54 = vor.u32 %v7241_v44, %v5028_v45  ;;  %v5287_v55 = vor.u32 %v7305_v48, %v5284_v49  ;;  %v4967_v19 = vor.u32 %v7225_v7, %v4964_v8  ;;  %v4932_v22 = vld [vmem:[#allocation5 + $0xe8] sm:$0xf0]  ;;  %v5322_v7 = vld [vmem:[#allocation5 + $0x3d0] sm:$0xf] }
  0xd6   :  { %1879 = vmatpush.bf16.msra.mxu2 %v5443_v58  ;;  %1892 = vmatpush.bf16.msra.mxu3 %v5699_v59  ;;  %v5543_v58 = vor.u32 %v7369_v50, %v5540_v51  ;;  %v5799_v59 = vor.u32 %v7433_v52, %v5796_v53  ;;  %v5700_v30 = vld [vmem:[#allocation5 + $0x6e8] sm:$0xf0]  ;;  %v7318_v8 = vld [vmem:[#allocation5 + $0x3ec] sm:$0xf0] }
  0xd7   :  { %v7209_v33 = vld [vmem:[#allocation5 + $0x8c] sm:$0xf] }
  0xd8   :  { %v4900_v15 = vld [vmem:[#allocation5 + $0xa8] sm:$0xf0] }
  0xd9   :  { %1854 = vmatpush.bf16.msra.mxu0 %v4899_v2  ;;  %1867 = vmatpush.bf16.msra.mxu1 %v5155_v3  ;;  %v4999_v2 = vor.u32 %v7233_v56, %v4996_v57  ;;  %v5255_v3 = vor.u32 %v7297_v60, %v5252_v61  ;;  %v5156_v37 = vld [vmem:[#allocation5 + $0x2a8] sm:$0xf0] }
  0xda   :  { %1880 = vmatpush.bf16.msra.mxu2 %v5411_v9  ;;  %1893 = vmatpush.bf16.msra.mxu3 %v5667_v10  ;;  %v5511_v9 = vor.u32 %v7361_v62, %v5508_v63  ;;  %v5767_v10 = vor.u32 %v7425_v0, %v5764_v1  ;;  %v7337_v38 = vld [vmem:[#allocation5 + $0x48c] sm:$0xf] }
  0xdb   :  { %v5412_v39 = vld [vmem:[#allocation5 + $0x4a8] sm:$0xf0] }
  0xdc   :  { %v7201_v44 = vld [vmem:[#allocation5 + $0x4c] sm:$0xf] }
  0xdd   :  { %1855 = vmatpush.bf16.msra.mxu0 %v4867_v20  ;;  %1868 = vmatpush.bf16.msra.mxu1 %v5123_v21  ;;  %v5223_v20 = vor.u32 %v7289_v11, %v5220_v12  ;;  %v7217_v21 = vld [vmem:[#allocation5 + $0xcc] sm:$0xf]  ;;  %v7382_v12 = vld [vmem:[#allocation5 + $0x5ec] sm:$0xf0] }
  0xde   :  { %1881 = vmatpush.bf16.msra.mxu2 %v5379_v25  ;;  %1894 = vmatpush.bf16.msra.mxu3 %v5635_v26  ;;  %v7281_v25 = vld [vmem:[#allocation5 + $0x2cc] sm:$0xf]  ;;  %v4935_v31 = vor.u32 %v7217_v21, %v4932_v22  ;;  %v5034_v21 = vld [vmem:[#allocation5 + $0x190] sm:$0xf] }
  0xdf   :  { %v5188_v26 = vld [vmem:[#allocation5 + $0x2e8] sm:$0xf0]  ;;  %v7246_v22 = vld [vmem:[#allocation5 + $0x1ac] sm:$0xf0] }
  0xe0   :  { %v5191_v32 = vor.u32 %v7281_v25, %v5188_v26  ;;  %v4868_v45 = vld [vmem:[#allocation5 + $0x68] sm:$0xf0]  ;;  %v5290_v25 = vld [vmem:[#allocation5 + $0x390] sm:$0xf] }
  0xe1   :  { %1856 = vmatpush.bf16.msra.mxu0 %v4835_v35  ;;  %1869 = vmatpush.bf16.msra.mxu1 %v5091_v36  ;;  %v5703_v35 = vor.u32 %v7409_v29, %v5700_v30  ;;  %v7273_v36 = vld [vmem:[#allocation5 + $0x28c] sm:$0xf]  ;;  %v7310_v26 = vld [vmem:[#allocation5 + $0x3ac] sm:$0xf0] }
  0xe2   :  { %1882 = vmatpush.bf16.msra.mxu2 %v5347_v40  ;;  %1895 = vmatpush.bf16.msra.mxu3 %v5603_v41  ;;  %v7401_v40 = vld [vmem:[#allocation5 + $0x68c] sm:$0xf]  ;;  %v5802_v29 = vld [vmem:[#allocation5 + $0x790] sm:$0xf] }
  0xe3   :  { %v5668_v41 = vld [vmem:[#allocation5 + $0x6a8] sm:$0xf0]  ;;  %v7438_v30 = vld [vmem:[#allocation5 + $0x7ac] sm:$0xf0] }
  0xe4   :  { %1857 = vmatmul.bf16.vlgmr.msra.gmra.mxu0 %v8129_v6  ;;  %1870 = vmatmul.bf16.vlgmr.msra.gmra.mxu1 %v8131_v4  ;;  %v7265_v48 = vld [vmem:[#allocation5 + $0x24c] sm:$0xf] }
  0xe5   :  { %1901 = vmatpush.bf16.msrb.mxu0 %v5063_v42  ;;  %1914 = vmatpush.bf16.msrb.mxu1 %v5319_v43  ;;  %v4903_v42 = vor.u32 %v7209_v33, %v4900_v15  ;;  %v5159_v43 = vor.u32 %v7273_v36, %v5156_v37  ;;  %v5124_v49 = vld [vmem:[#allocation5 + $0x268] sm:$0xf0]  ;;  %v5002_v33 = vld [vmem:[#allocation5 + $0x150] sm:$0xf] }
  0xe6   :  { %1927 = vmatpush.bf16.msrb.mxu2 %v5575_v46  ;;  %1940 = vmatpush.bf16.msrb.mxu3 %v5831_v47  ;;  %v5415_v46 = vor.u32 %v7337_v38, %v5412_v39  ;;  %v5671_v47 = vor.u32 %v7401_v40, %v5668_v41  ;;  %v7329_v50 = vld [vmem:[#allocation5 + $0x44c] sm:$0xf]  ;;  %v5127_v56 = vor.u32 %v7265_v48, %v5124_v49  ;;  %v7238_v15 = vld [vmem:[#allocation5 + $0x16c] sm:$0xf0] }
  0xe7   :  { %1883 = vmatmul.bf16.vlgmr.msra.gmra.mxu2 %v8133_v5  ;;  %1896 = vmatmul.bf16.vlgmr.msra.gmra.mxu3 %v8135_v14  ;;  %v5380_v51 = vld [vmem:[#allocation5 + $0x468] sm:$0xf0]  ;;  %v5258_v36 = vld [vmem:[#allocation5 + $0x350] sm:$0xf] }
  0xe8   :  { %v7393_v52 = vld [vmem:[#allocation5 + $0x64c] sm:$0xf]  ;;  %v5383_v60 = vor.u32 %v7329_v50, %v5380_v51  ;;  %v7302_v37 = vld [vmem:[#allocation5 + $0x36c] sm:$0xf0] }
  0xe9   :  { %1902 = vmatpush.bf16.msrb.mxu0 %v5031_v54  ;;  %1915 = vmatpush.bf16.msrb.mxu1 %v5287_v55  ;;  %v5636_v53 = vld [vmem:[#allocation5 + $0x668] sm:$0xf0]  ;;  %v4871_v55 = vor.u32 %v7201_v44, %v4868_v45  ;;  %v5514_v38 = vld [vmem:[#allocation5 + $0x550] sm:$0xf] }
  0xea   :  { %1928 = vmatpush.bf16.msrb.mxu2 %v5543_v58  ;;  %1941 = vmatpush.bf16.msrb.mxu3 %v5799_v59  ;;  %v7193_v54 = vld [vmem:[#allocation5 + $0xc] sm:$0xf]  ;;  %v5639_v61 = vor.u32 %v7393_v52, %v5636_v53  ;;  %v7366_v39 = vld [vmem:[#allocation5 + $0x56c] sm:$0xf0] }
  0xeb   :  { %v4836_v57 = vld [vmem:[#allocation5 + $0x28] sm:$0xf0]  ;;  %v5770_v40 = vld [vmem:[#allocation5 + $0x750] sm:$0xf] }
  0xec   :  { %v7257_v58 = vld [vmem:[#allocation5 + $0x20c] sm:$0xf]  ;;  %v7430_v41 = vld [vmem:[#allocation5 + $0x76c] sm:$0xf0] }
  0xed   :  { %1903 = vmatpush.bf16.msrb.mxu0 %v4999_v2  ;;  %1916 = vmatpush.bf16.msrb.mxu1 %v5255_v3  ;;  %v5092_v59 = vld [vmem:[#allocation5 + $0x228] sm:$0xf0]  ;;  %v5066_v2 = vld [vmem:[#allocation5 + $0x1d0] sm:$0xf] }
  0xee   :  { %1929 = vmatpush.bf16.msrb.mxu2 %v5511_v9  ;;  %1942 = vmatpush.bf16.msrb.mxu3 %v5767_v10  ;;  %v7321_v62 = vld [vmem:[#allocation5 + $0x40c] sm:$0xf]  ;;  %v7254_v3 = vld [vmem:[#allocation5 + $0x1ec] sm:$0xf0]  ;;  %v4839_v10 = vor.u32 %v7193_v54, %v4836_v57  ;;  %v5095_v11 = vor.u32 %v7257_v58, %v5092_v59 }
  0xef   :  { %v5348_v63 = vld [vmem:[#allocation5 + $0x428] sm:$0xf0]  ;;  %v5578_v9 = vld [vmem:[#allocation5 + $0x5d0] sm:$0xf] }
  0xf0   :  { %v7385_v0 = vld [vmem:[#allocation5 + $0x60c] sm:$0xf]  ;;  %v5351_v17 = vor.u32 %v7321_v62, %v5348_v63  ;;  %v4970_v44 = vld [vmem:[#allocation5 + $0x110] sm:$0xf] }
  0xf1   :  { %1904 = vmatpush.bf16.msrb.mxu0 %v4967_v19  ;;  %1917 = vmatpush.bf16.msrb.mxu1 %v5223_v20  ;;  %v5604_v1 = vld [vmem:[#allocation5 + $0x628] sm:$0xf0]  ;;  %v5067_v19 = vor.u32 %v7254_v3, %v5066_v2  ;;  %v5323_v20 = vor.u32 %v7318_v8, %v5322_v7  ;;  %v7230_v45 = vld [vmem:[#allocation5 + $0x12c] sm:$0xf0] }
  0xf2   :  { %1930 = vmatpush.bf16.msrb.mxu2 %v5479_v23  ;;  %1943 = vmatpush.bf16.msrb.mxu3 %v5735_v24  ;;  %v5607_v18 = vor.u32 %v7385_v0, %v5604_v1  ;;  %v5579_v23 = vor.u32 %v7382_v12, %v5578_v9  ;;  %v5835_v24 = vor.u32 %v7446_v16, %v5834_v13  ;;  %v5226_v48 = vld [vmem:[#allocation5 + $0x310] sm:$0xf] }
  0xf3   :  { %v7294_v49 = vld [vmem:[#allocation5 + $0x32c] sm:$0xf0]  ;;  %v4971_v54 = vor.u32 %v7230_v45, %v4970_v44  ;;  %v7314_v44 = vld [vmem:[#allocation5 + $0x3d4] sm:$0xf] }
  0xf4   :  { %v5482_v50 = vld [vmem:[#allocation5 + $0x510] sm:$0xf]  ;;  %v5324_v45 = vld [vmem:[#allocation5 + $0x3f0] sm:$0xf0] }
  0xf5   :  { %1905 = vmatpush.bf16.msrb.mxu0 %v4935_v31  ;;  %1918 = vmatpush.bf16.msrb.mxu1 %v5191_v32  ;;  %v5035_v31 = vor.u32 %v7246_v22, %v5034_v21  ;;  %v5291_v32 = vor.u32 %v7310_v26, %v5290_v25  ;;  %v7358_v51 = vld [vmem:[#allocation5 + $0x52c] sm:$0xf0] }
  0xf6   :  { %1931 = vmatpush.bf16.msrb.mxu2 %v5447_v34  ;;  %1944 = vmatpush.bf16.msrb.mxu3 %v5703_v35  ;;  %v5547_v34 = vor.u32 %v7374_v28, %v5546_v27  ;;  %v5803_v35 = vor.u32 %v7438_v30, %v5802_v29  ;;  %v5738_v52 = vld [vmem:[#allocation5 + $0x710] sm:$0xf]  ;;  %v5483_v58 = vor.u32 %v7358_v51, %v5482_v50  ;;  %v7442_v50 = vld [vmem:[#allocation5 + $0x7d4] sm:$0xf] }
  0xf7   :  { %v7422_v53 = vld [vmem:[#allocation5 + $0x72c] sm:$0xf0]  ;;  %v5836_v51 = vld [vmem:[#allocation5 + $0x7f0] sm:$0xf0] }
  0xf8   :  { %v7222_v57 = vld [vmem:[#allocation5 + $0xec] sm:$0xf0]  ;;  %v5739_v59 = vor.u32 %v7422_v53, %v5738_v52 }
  0xf9   :  { %1906 = vmatpush.bf16.msrb.mxu0 %v4903_v42  ;;  %1919 = vmatpush.bf16.msrb.mxu1 %v5159_v43  ;;  %v5003_v42 = vor.u32 %v7238_v15, %v5002_v33  ;;  %v5259_v43 = vor.u32 %v7302_v37, %v5258_v36  ;;  %v5450_v62 = vld [vmem:[#allocation5 + $0x4d0] sm:$0xf] }
  0xfa   :  { %1932 = vmatpush.bf16.msrb.mxu2 %v5415_v46  ;;  %1945 = vmatpush.bf16.msrb.mxu3 %v5671_v47  ;;  %v5515_v46 = vor.u32 %v7366_v39, %v5514_v38  ;;  %v5771_v47 = vor.u32 %v7430_v41, %v5770_v40  ;;  %v7350_v63 = vld [vmem:[#allocation5 + $0x4ec] sm:$0xf0] }
  0xfb   :  { %v5706_v0 = vld [vmem:[#allocation5 + $0x6d0] sm:$0xf]  ;;  %v5451_v9 = vor.u32 %v7350_v63, %v5450_v62  ;;  %v7370_v62 = vld [vmem:[#allocation5 + $0x594] sm:$0xf] }
  0xfc   :  { %v7414_v1 = vld [vmem:[#allocation5 + $0x6ec] sm:$0xf0]  ;;  %v5548_v63 = vld [vmem:[#allocation5 + $0x5b0] sm:$0xf0] }
  0xfd   :  { %1907 = vmatpush.bf16.msrb.mxu0 %v4871_v55  ;;  %1920 = vmatpush.bf16.msrb.mxu1 %v5127_v56  ;;  %v5227_v55 = vor.u32 %v7294_v49, %v5226_v48  ;;  %v4938_v56 = vld [vmem:[#allocation5 + $0xd0] sm:$0xf]  ;;  %v5580_v49 = vld [vmem:[#allocation5 + $0x5f0] sm:$0xf0] }
  0xfe   :  { %1933 = vmatpush.bf16.msrb.mxu2 %v5383_v60  ;;  %1946 = vmatpush.bf16.msrb.mxu3 %v5639_v61  ;;  %v5194_v60 = vld [vmem:[#allocation5 + $0x2d0] sm:$0xf]  ;;  %v4939_v2 = vor.u32 %v7222_v57, %v4938_v56  ;;  %v7242_v56 = vld [vmem:[#allocation5 + $0x194] sm:$0xf] }
  0xff   :  { %v7286_v61 = vld [vmem:[#allocation5 + $0x2ec] sm:$0xf0]  ;;  %v5036_v57 = vld [vmem:[#allocation5 + $0x1b0] sm:$0xf0] }
 0x100   :  { %v5195_v3 = vor.u32 %v7286_v61, %v5194_v60  ;;  %v4906_v7 = vld [vmem:[#allocation5 + $0x90] sm:$0xf]  ;;  %v7306_v60 = vld [vmem:[#allocation5 + $0x394] sm:$0xf] }
 0x101   :  { %1908 = vmatpush.bf16.msrb.mxu0 %v4839_v10  ;;  %1921 = vmatpush.bf16.msrb.mxu1 %v5095_v11  ;;  %v7214_v8 = vld [vmem:[#allocation5 + $0xac] sm:$0xf0]  ;;  %v5707_v10 = vor.u32 %v7414_v1, %v5706_v0  ;;  %v5292_v61 = vld [vmem:[#allocation5 + $0x3b0] sm:$0xf0] }
 0x102   :  { %1934 = vmatpush.bf16.msrb.mxu2 %v5351_v17  ;;  %1947 = vmatpush.bf16.msrb.mxu3 %v5607_v18  ;;  %v5162_v11 = vld [vmem:[#allocation5 + $0x290] sm:$0xf]  ;;  %v7434_v0 = vld [vmem:[#allocation5 + $0x794] sm:$0xf] }
 0x103   :  { %v7278_v12 = vld [vmem:[#allocation5 + $0x2ac] sm:$0xf0]  ;;  %v5804_v1 = vld [vmem:[#allocation5 + $0x7b0] sm:$0xf0] }
 0x104   :  { %1909 = vmatmul.bf16.vlgmr.msrb.gmra.mxu0 %v8129_v6  ;;  %1922 = vmatmul.bf16.vlgmr.msrb.gmra.mxu1 %v8131_v4  ;;  %v5418_v13 = vld [vmem:[#allocation5 + $0x490] sm:$0xf] }
 0x105   :  { %1953 = vmatpush.bf16.msra.mxu0 %v5067_v19  ;;  %1966 = vmatpush.bf16.msra.mxu1 %v5323_v20  ;;  %v7342_v16 = vld [vmem:[#allocation5 + $0x4ac] sm:$0xf0]  ;;  %v4907_v19 = vor.u32 %v7214_v8, %v4906_v7  ;;  %v5163_v20 = vor.u32 %v7278_v12, %v5162_v11  ;;  %v7234_v7 = vld [vmem:[#allocation5 + $0x154] sm:$0xf] }
 0x106   :  { %1979 = vmatpush.bf16.msra.mxu2 %v5579_v23  ;;  %1992 = vmatpush.bf16.msra.mxu3 %v5835_v24  ;;  %v5674_v17 = vld [vmem:[#allocation5 + $0x690] sm:$0xf]  ;;  %v5419_v23 = vor.u32 %v7342_v16, %v5418_v13  ;;  %v5004_v8 = vld [vmem:[#allocation5 + $0x170] sm:$0xf0] }
 0x107   :  { %1935 = vmatmul.bf16.vlgmr.msrb.gmra.mxu2 %v8133_v5  ;;  %1948 = vmatmul.bf16.vlgmr.msrb.gmra.mxu3 %v8135_v14  ;;  %v7406_v18 = vld [vmem:[#allocation5 + $0x6ac] sm:$0xf0]  ;;  %v7298_v11 = vld [vmem:[#allocation5 + $0x354] sm:$0xf] }
 0x108   :  { %v4874_v21 = vld [vmem:[#allocation5 + $0x50] sm:$0xf]  ;;  %v5675_v24 = vor.u32 %v7406_v18, %v5674_v17  ;;  %v5260_v12 = vld [vmem:[#allocation5 + $0x370] sm:$0xf0] }
 0x109   :  { %1954 = vmatpush.bf16.msra.mxu0 %v5035_v31  ;;  %1967 = vmatpush.bf16.msra.mxu1 %v5291_v32  ;;  %v7206_v22 = vld [vmem:[#allocation5 + $0x6c] sm:$0xf0]  ;;  %v7362_v13 = vld [vmem:[#allocation5 + $0x554] sm:$0xf] }
 0x10a   :  { %1980 = vmatpush.bf16.msra.mxu2 %v5547_v34  ;;  %1993 = vmatpush.bf16.msra.mxu3 %v5803_v35  ;;  %v5130_v25 = vld [vmem:[#allocation5 + $0x250] sm:$0xf]  ;;  %v4875_v32 = vor.u32 %v7206_v22, %v4874_v21  ;;  %v5516_v16 = vld [vmem:[#allocation5 + $0x570] sm:$0xf0] }
 0x10b   :  { %v7270_v26 = vld [vmem:[#allocation5 + $0x26c] sm:$0xf0]  ;;  %v7426_v17 = vld [vmem:[#allocation5 + $0x754] sm:$0xf] }
 0x10c   :  { %v5386_v27 = vld [vmem:[#allocation5 + $0x450] sm:$0xf]  ;;  %v5131_v33 = vor.u32 %v7270_v26, %v5130_v25  ;;  %v5772_v18 = vld [vmem:[#allocation5 + $0x770] sm:$0xf0] }
 0x10d   :  { %1955 = vmatpush.bf16.msra.mxu0 %v5003_v42  ;;  %1968 = vmatpush.bf16.msra.mxu1 %v5259_v43  ;;  %v7334_v28 = vld [vmem:[#allocation5 + $0x46c] sm:$0xf0]  ;;  %v7250_v42 = vld [vmem:[#allocation5 + $0x1d4] sm:$0xf] }
 0x10e   :  { %1981 = vmatpush.bf16.msra.mxu2 %v5515_v46  ;;  %1994 = vmatpush.bf16.msra.mxu3 %v5771_v47  ;;  %v5642_v29 = vld [vmem:[#allocation5 + $0x650] sm:$0xf]  ;;  %v5387_v36 = vor.u32 %v7334_v28, %v5386_v27  ;;  %v5068_v43 = vld [vmem:[#allocation5 + $0x1f0] sm:$0xf0] }
 0x10f   :  { %v7398_v30 = vld [vmem:[#allocation5 + $0x66c] sm:$0xf0]  ;;  %v7378_v46 = vld [vmem:[#allocation5 + $0x5d4] sm:$0xf] }
 0x110   :  { %v4842_v31 = vld [vmem:[#allocation5 + $0x10] sm:$0xf]  ;;  %v5643_v37 = vor.u32 %v7398_v30, %v5642_v29  ;;  %v7226_v21 = vld [vmem:[#allocation5 + $0x114] sm:$0xf] }
 0x111   :  { %1956 = vmatpush.bf16.msra.mxu0 %v4971_v54  ;;  %1969 = vmatpush.bf16.msra.mxu1 %v5227_v55  ;;  %v7198_v15 = vld [vmem:[#allocation5 + $0x2c] sm:$0xf0]  ;;  %v5071_v54 = vor.u32 %v7250_v42, %v5068_v43  ;;  %v5327_v55 = vor.u32 %v7314_v44, %v5324_v45  ;;  %v4972_v22 = vld [vmem:[#allocation5 + $0x130] sm:$0xf0] }
 0x112   :  { %1982 = vmatpush.bf16.msra.mxu2 %v5483_v58  ;;  %1995 = vmatpush.bf16.msra.mxu3 %v5739_v59  ;;  %v5098_v34 = vld [vmem:[#allocation5 + $0x210] sm:$0xf]  ;;  %v4843_v47 = vor.u32 %v7198_v15, %v4842_v31  ;;  %v5583_v58 = vor.u32 %v7378_v46, %v5580_v49  ;;  %v5839_v59 = vor.u32 %v7442_v50, %v5836_v51  ;;  %v7290_v25 = vld [vmem:[#allocation5 + $0x314] sm:$0xf] }
 0x113   :  { %v7262_v35 = vld [vmem:[#allocation5 + $0x22c] sm:$0xf0]  ;;  %v5228_v26 = vld [vmem:[#allocation5 + $0x330] sm:$0xf0]  ;;  %v4975_v31 = vor.u32 %v7226_v21, %v4972_v22  ;;  %v5330_v21 = vld [vmem:[#allocation5 + $0x3d8] sm:$0xf] }
 0x114   :  { %v5354_v38 = vld [vmem:[#allocation5 + $0x410] sm:$0xf]  ;;  %v5099_v48 = vor.u32 %v7262_v35, %v5098_v34  ;;  %v7354_v27 = vld [vmem:[#allocation5 + $0x514] sm:$0xf]  ;;  %v7319_v22 = vld [vmem:[#allocation5 + $0x3f4] sm:$0xf0] }
 0x115   :  { %1957 = vmatpush.bf16.msra.mxu0 %v4939_v2  ;;  %1970 = vmatpush.bf16.msra.mxu1 %v5195_v3  ;;  %v7326_v39 = vld [vmem:[#allocation5 + $0x42c] sm:$0xf0]  ;;  %v5039_v2 = vor.u32 %v7242_v56, %v5036_v57  ;;  %v5295_v3 = vor.u32 %v7306_v60, %v5292_v61  ;;  %v5484_v28 = vld [vmem:[#allocation5 + $0x530] sm:$0xf0] }
 0x116   :  { %1983 = vmatpush.bf16.msra.mxu2 %v5451_v9  ;;  %1996 = vmatpush.bf16.msra.mxu3 %v5707_v10  ;;  %v5610_v40 = vld [vmem:[#allocation5 + $0x610] sm:$0xf]  ;;  %v5355_v52 = vor.u32 %v7326_v39, %v5354_v38  ;;  %v5551_v9 = vor.u32 %v7370_v62, %v5548_v63  ;;  %v5807_v10 = vor.u32 %v7434_v0, %v5804_v1  ;;  %v7418_v29 = vld [vmem:[#allocation5 + $0x714] sm:$0xf] }
 0x117   :  { %v7390_v41 = vld [vmem:[#allocation5 + $0x62c] sm:$0xf0]  ;;  %v5740_v30 = vld [vmem:[#allocation5 + $0x730] sm:$0xf0]  ;;  %v5487_v34 = vor.u32 %v7354_v27, %v5484_v28  ;;  %v5842_v27 = vld [vmem:[#allocation5 + $0x7d8] sm:$0xf] }
 0x118   :  { %v5611_v53 = vor.u32 %v7390_v41, %v5610_v40  ;;  %v4940_v15 = vld [vmem:[#allocation5 + $0xf0] sm:$0xf0]  ;;  %v5743_v35 = vor.u32 %v7418_v29, %v5740_v30  ;;  %v7447_v28 = vld [vmem:[#allocation5 + $0x7f4] sm:$0xf0] }
 0x119   :  { %1958 = vmatpush.bf16.msra.mxu0 %v4907_v19  ;;  %1971 = vmatpush.bf16.msra.mxu1 %v5163_v20  ;;  %v5007_v19 = vor.u32 %v7234_v7, %v5004_v8  ;;  %v5263_v20 = vor.u32 %v7298_v11, %v5260_v12  ;;  %v7346_v38 = vld [vmem:[#allocation5 + $0x4d4] sm:$0xf] }
 0x11a   :  { %1984 = vmatpush.bf16.msra.mxu2 %v5419_v23  ;;  %1997 = vmatpush.bf16.msra.mxu3 %v5675_v24  ;;  %v5519_v23 = vor.u32 %v7362_v13, %v5516_v16  ;;  %v5775_v24 = vor.u32 %v7426_v17, %v5772_v18  ;;  %v5452_v39 = vld [vmem:[#allocation5 + $0x4f0] sm:$0xf0] }
 0x11b   :  { %v7410_v40 = vld [vmem:[#allocation5 + $0x6d4] sm:$0xf]  ;;  %v5455_v46 = vor.u32 %v7346_v38, %v5452_v39  ;;  %v5554_v38 = vld [vmem:[#allocation5 + $0x598] sm:$0xf]  ;;  %v8157_v39 = vld [vmem:[#allocation7] sm:$0xff] }
 0x11c   :  { %v5708_v41 = vld [vmem:[#allocation5 + $0x6f0] sm:$0xf0] }
 0x11d   :  { %1959 = vmatpush.bf16.msra.mxu0 %v4875_v32  ;;  %1972 = vmatpush.bf16.msra.mxu1 %v5131_v33  ;;  %v5231_v32 = vor.u32 %v7290_v25, %v5228_v26  ;;  %v7218_v33 = vld [vmem:[#allocation5 + $0xd4] sm:$0xf]  ;;  %v7383_v26 = vld [vmem:[#allocation5 + $0x5f4] sm:$0xf0] }
 0x11e   :  { %1985 = vmatpush.bf16.msra.mxu2 %v5387_v36  ;;  %1998 = vmatpush.bf16.msra.mxu3 %v5643_v37  ;;  %v7282_v36 = vld [vmem:[#allocation5 + $0x2d4] sm:$0xf]  ;;  %v4943_v42 = vor.u32 %v7218_v33, %v4940_v15  ;;  %v5042_v33 = vld [vmem:[#allocation5 + $0x198] sm:$0xf] }
 0x11f   :  { %v5196_v37 = vld [vmem:[#allocation5 + $0x2f0] sm:$0xf0]  ;;  %v7247_v15 = vld [vmem:[#allocation5 + $0x1b4] sm:$0xf0] }
 0x120   :  { %v5199_v43 = vor.u32 %v7282_v36, %v5196_v37  ;;  %v7210_v44 = vld [vmem:[#allocation5 + $0x94] sm:$0xf]  ;;  %v5843_v36 = vor.u32 %v7447_v28, %v5842_v27  ;;  %v7311_v37 = vld [vmem:[#allocation5 + $0x3b4] sm:$0xf0] }
 0x121   :  { %1960 = vmatpush.bf16.msra.mxu0 %v4843_v47  ;;  %1973 = vmatpush.bf16.msra.mxu1 %v5099_v48  ;;  %v4908_v45 = vld [vmem:[#allocation5 + $0xb0] sm:$0xf0]  ;;  %v5711_v47 = vor.u32 %v7410_v40, %v5708_v41  ;;  %v7375_v40 = vld [vmem:[#allocation5 + $0x5b4] sm:$0xf0] }
 0x122   :  { %1986 = vmatpush.bf16.msra.mxu2 %v5355_v52  ;;  %1999 = vmatpush.bf16.msra.mxu3 %v5611_v53  ;;  %v7274_v48 = vld [vmem:[#allocation5 + $0x294] sm:$0xf]  ;;  %v5810_v41 = vld [vmem:[#allocation5 + $0x798] sm:$0xf] }
 0x123   :  { %v5164_v49 = vld [vmem:[#allocation5 + $0x2b0] sm:$0xf0] }
 0x124   :  { %1961 = vmatmul.bf16.vlgmr.msra.gmra.mxu0 %v8129_v6  ;;  %1974 = vmatmul.bf16.vlgmr.msra.gmra.mxu1 %v8131_v4  ;;  %v7338_v50 = vld [vmem:[#allocation5 + $0x494] sm:$0xf] }
 0x125   :  { %2005 = vmatpush.bf16.msrb.mxu0 %v5071_v54  ;;  %2018 = vmatpush.bf16.msrb.mxu1 %v5327_v55  ;;  %v5420_v51 = vld [vmem:[#allocation5 + $0x4b0] sm:$0xf0]  ;;  %v4911_v54 = vor.u32 %v7210_v44, %v4908_v45  ;;  %v5167_v55 = vor.u32 %v7274_v48, %v5164_v49  ;;  %v5010_v45 = vld [vmem:[#allocation5 + $0x158] sm:$0xf]  ;;  %v5555_v48 = vor.u32 %v7375_v40, %v5554_v38 }
 0x126   :  { %2031 = vmatpush.bf16.msrb.mxu2 %v5583_v58  ;;  %2044 = vmatpush.bf16.msrb.mxu3 %v5839_v59  ;;  %v7402_v52 = vld [vmem:[#allocation5 + $0x694] sm:$0xf]  ;;  %v5423_v58 = vor.u32 %v7338_v50, %v5420_v51  ;;  %v5266_v50 = vld [vmem:[#allocation5 + $0x358] sm:$0xf] }
 0x127   :  { %1987 = vmatmul.bf16.vlgmr.msra.gmra.mxu2 %v8133_v5  ;;  %2000 = vmatmul.bf16.vlgmr.msra.gmra.mxu3 %v8135_v14  ;;  %v5676_v53 = vld [vmem:[#allocation5 + $0x6b0] sm:$0xf0]  ;;  %v7303_v51 = vld [vmem:[#allocation5 + $0x374] sm:$0xf0] }
 0x128   :  { %v7202_v56 = vld [vmem:[#allocation5 + $0x54] sm:$0xf]  ;;  %v5679_v59 = vor.u32 %v7402_v52, %v5676_v53  ;;  %v5522_v52 = vld [vmem:[#allocation5 + $0x558] sm:$0xf] }
 0x129   :  { %2006 = vmatpush.bf16.msrb.mxu0 %v5039_v2  ;;  %2019 = vmatpush.bf16.msrb.mxu1 %v5295_v3  ;;  %v4876_v57 = vld [vmem:[#allocation5 + $0x70] sm:$0xf0]  ;;  %v7367_v53 = vld [vmem:[#allocation5 + $0x574] sm:$0xf0] }
 0x12a   :  { %2032 = vmatpush.bf16.msrb.mxu2 %v5551_v9  ;;  %2045 = vmatpush.bf16.msrb.mxu3 %v5807_v10  ;;  %v7266_v60 = vld [vmem:[#allocation5 + $0x254] sm:$0xf]  ;;  %v4879_v3 = vor.u32 %v7202_v56, %v4876_v57  ;;  %v5426_v38 = vld [vmem:[#allocation5 + $0x498] sm:$0xf] }
 0x12b   :  { %v5132_v61 = vld [vmem:[#allocation5 + $0x270] sm:$0xf0]  ;;  %v7343_v40 = vld [vmem:[#allocation5 + $0x4b4] sm:$0xf0] }
 0x12c   :  { %v7330_v62 = vld [vmem:[#allocation5 + $0x454] sm:$0xf]  ;;  %v5135_v7 = vor.u32 %v7266_v60, %v5132_v61  ;;  %v4978_v61 = vld [vmem:[#allocation5 + $0x118] sm:$0xf] }
 0x12d   :  { %2007 = vmatpush.bf16.msrb.mxu0 %v5007_v19  ;;  %2020 = vmatpush.bf16.msrb.mxu1 %v5263_v20  ;;  %v5388_v63 = vld [vmem:[#allocation5 + $0x470] sm:$0xf0]  ;;  %v5074_v19 = vld [vmem:[#allocation5 + $0x1d8] sm:$0xf] }
 0x12e   :  { %2033 = vmatpush.bf16.msrb.mxu2 %v5519_v23  ;;  %2046 = vmatpush.bf16.msrb.mxu3 %v5775_v24  ;;  %v7394_v0 = vld [vmem:[#allocation5 + $0x654] sm:$0xf]  ;;  %v5391_v11 = vor.u32 %v7330_v62, %v5388_v63  ;;  %v7255_v20 = vld [vmem:[#allocation5 + $0x1f4] sm:$0xf0]  ;;  %v5523_v63 = vor.u32 %v7367_v53, %v5522_v52 }
 0x12f   :  { %v5644_v1 = vld [vmem:[#allocation5 + $0x670] sm:$0xf0]  ;;  %v5586_v23 = vld [vmem:[#allocation5 + $0x5d8] sm:$0xf] }
 0x130   :  { %v7194_v2 = vld [vmem:[#allocation5 + $0x14] sm:$0xf]  ;;  %v5647_v12 = vor.u32 %v7394_v0, %v5644_v1  ;;  %v7231_v62 = vld [vmem:[#allocation5 + $0x134] sm:$0xf0] }
 0x131   :  { %2008 = vmatpush.bf16.msrb.mxu0 %v4975_v31  ;;  %2021 = vmatpush.bf16.msrb.mxu1 %v5231_v32  ;;  %v4844_v8 = vld [vmem:[#allocation5 + $0x30] sm:$0xf0]  ;;  %v5075_v31 = vor.u32 %v7255_v20, %v5074_v19  ;;  %v5331_v32 = vor.u32 %v7319_v22, %v5330_v21  ;;  %v5234_v1 = vld [vmem:[#allocation5 + $0x318] sm:$0xf] }
 0x132   :  { %2034 = vmatpush.bf16.msrb.mxu2 %v5487_v34  ;;  %2047 = vmatpush.bf16.msrb.mxu3 %v5743_v35  ;;  %v7258_v9 = vld [vmem:[#allocation5 + $0x214] sm:$0xf]  ;;  %v4847_v24 = vor.u32 %v7194_v2, %v4844_v8  ;;  %v5298_v34 = vld [vmem:[#allocation5 + $0x398] sm:$0xf]  ;;  %v5587_v35 = vor.u32 %v7383_v26, %v5586_v23 }
 0x133   :  { %v5100_v10 = vld [vmem:[#allocation5 + $0x230] sm:$0xf0]  ;;  %v5299_v44 = vor.u32 %v7311_v37, %v5298_v34  ;;  %v7295_v2 = vld [vmem:[#allocation5 + $0x334] sm:$0xf0] }
 0x134   :  { %v7322_v13 = vld [vmem:[#allocation5 + $0x414] sm:$0xf]  ;;  %v5103_v25 = vor.u32 %v7258_v9, %v5100_v10  ;;  %v7359_v8 = vld [vmem:[#allocation5 + $0x534] sm:$0xf0] }
 0x135   :  { %2009 = vmatpush.bf16.msrb.mxu0 %v4943_v42  ;;  %2022 = vmatpush.bf16.msrb.mxu1 %v5199_v43  ;;  %v5356_v16 = vld [vmem:[#allocation5 + $0x430] sm:$0xf0]  ;;  %v7439_v42 = vld [vmem:[#allocation5 + $0x7b4] sm:$0xf0]  ;;  %v5043_v43 = vor.u32 %v7247_v15, %v5042_v33 }
 0x136   :  { %2035 = vmatpush.bf16.msrb.mxu2 %v5455_v46  ;;  %2048 = vmatpush.bf16.msrb.mxu3 %v5711_v47  ;;  %v7386_v17 = vld [vmem:[#allocation5 + $0x614] sm:$0xf]  ;;  %v5359_v29 = vor.u32 %v7322_v13, %v5356_v16  ;;  %v7239_v46 = vld [vmem:[#allocation5 + $0x174] sm:$0xf0]  ;;  %v449_v47 = vperm.slane %v8157_v39, 0  ;;  %v5811_v49 = vor.u32 %v7439_v42, %v5810_v41 }
 0x137   :  { %v5612_v18 = vld [vmem:[#allocation5 + $0x630] sm:$0xf0]  ;;  %v5746_v9 = vld [vmem:[#allocation5 + $0x718] sm:$0xf] }
 0x138   :  { %v5615_v30 = vor.u32 %v7386_v17, %v5612_v18  ;;  %v7423_v10 = vld [vmem:[#allocation5 + $0x734] sm:$0xf0] }
 0x139   :  { %2010 = vmatpush.bf16.msrb.mxu0 %v4911_v54  ;;  %2023 = vmatpush.bf16.msrb.mxu1 %v5167_v55  ;;  %v5778_v54 = vld [vmem:[#allocation5 + $0x758] sm:$0xf]  ;;  %v5747_v18 = vor.u32 %v7423_v10, %v5746_v9  ;;  %v7251_v10 = vld [vmem:[#allocation5 + $0x1dc] sm:$0xf] }
 0x13a   :  { %2036 = vmatpush.bf16.msrb.mxu2 %v5423_v58  ;;  %2049 = vmatpush.bf16.msrb.mxu3 %v5679_v59  ;;  %v7431_v55 = vld [vmem:[#allocation5 + $0x774] sm:$0xf0]  ;;  %v5011_v58 = vor.u32 %v7239_v46, %v5010_v45  ;;  %v5267_v59 = vor.u32 %v7303_v51, %v5266_v50 }
 0x13b   :  { %v5779_v0 = vor.u32 %v7431_v55, %v5778_v54  ;;  %v4946_v13 = vld [vmem:[#allocation5 + $0xd8] sm:$0xf] }
 0x13c   :  { %v7223_v16 = vld [vmem:[#allocation5 + $0xf4] sm:$0xf0] }
 0x13d   :  { %2011 = vmatpush.bf16.msrb.mxu0 %v4879_v3  ;;  %2024 = vmatpush.bf16.msrb.mxu1 %v5135_v7  ;;  %v5490_v3 = vld [vmem:[#allocation5 + $0x518] sm:$0xf] }
 0x13e   :  { %2037 = vmatpush.bf16.msrb.mxu2 %v5391_v11  ;;  %2050 = vmatpush.bf16.msrb.mxu3 %v5647_v12  ;;  %v4979_v11 = vor.u32 %v7231_v62, %v4978_v61  ;;  %v5235_v12 = vor.u32 %v7295_v2, %v5234_v1  ;;  %v5491_v17 = vor.u32 %v7359_v8, %v5490_v3  ;;  %v5202_v19 = vld [vmem:[#allocation5 + $0x2d8] sm:$0xf] }
 0x13f   :  { %v7287_v20 = vld [vmem:[#allocation5 + $0x2f4] sm:$0xf0] }
 0x140   :  { %v1754_v56 = vpop.f32.mrf.mxu0  ;;  %v1767_v57 = vpop.f32.mrf.mxu1  ;;  %v5458_v21 = vld [vmem:[#allocation5 + $0x4d8] sm:$0xf] }
 0x141   :  { %2012 = vmatpush.bf16.msrb.mxu0 %v4847_v24  ;;  %2025 = vmatpush.bf16.msrb.mxu1 %v5103_v25  ;;  %v1755_v60 = vadd.f32 %v1754_v56, %v449_v47  ;;  %v7351_v24 = vld [vmem:[#allocation5 + $0x4f4] sm:$0xf0]  ;;  %v5427_v47 = vor.u32 %v7343_v40, %v5426_v38  ;;  %v7435_v38 = vld [vmem:[#allocation5 + $0x79c] sm:$0xf] }
 0x142   :  { %2038 = vmatpush.bf16.msrb.mxu2 %v5359_v29  ;;  %2051 = vmatpush.bf16.msrb.mxu3 %v5615_v30  ;;  %v5714_v25 = vld [vmem:[#allocation5 + $0x6d8] sm:$0xf]  ;;  %v4947_v30 = vor.u32 %v7223_v16, %v4946_v13  ;;  %v5459_v34 = vor.u32 %v7351_v24, %v5458_v21  ;;  %v5332_v13 = vld [vmem:[#allocation5 + $0x3f8] sm:$0xf0] }
 0x143   :  { %v1768_v7 = vadd.f32 %v1767_v57, %v1755_v60  ;;  %v7415_v26 = vld [vmem:[#allocation5 + $0x6f4] sm:$0xf0]  ;;  %v7379_v16 = vld [vmem:[#allocation5 + $0x5dc] sm:$0xf] }
 0x144   :  { %2013 = vmatmul.bf16.vlgmr.msrb.gmra.mxu0 %v8129_v6  ;;  %2026 = vmatmul.bf16.vlgmr.msrb.gmra.mxu1 %v8131_v4  ;;  %v7215_v33 = vld [vmem:[#allocation5 + $0xb4] sm:$0xf0]  ;;  %v5844_v21 = vld [vmem:[#allocation5 + $0x7f8] sm:$0xf0] }
 0x145   :  { %2057 = vmatpush.bf16.msra.mxu0 %v5075_v31  ;;  %2070 = vmatpush.bf16.msra.mxu1 %v5331_v32  ;;  %v5203_v31 = vor.u32 %v7287_v20, %v5202_v19  ;;  %v4914_v32 = vld [vmem:[#allocation5 + $0x98] sm:$0xf]  ;;  %v5588_v19 = vld [vmem:[#allocation5 + $0x5f8] sm:$0xf0] }
 0x146   :  { %2083 = vmatpush.bf16.msra.mxu2 %v5587_v35  ;;  %2096 = vmatpush.bf16.msra.mxu3 %v5843_v36  ;;  %v5715_v35 = vor.u32 %v7415_v26, %v5714_v25  ;;  %v5170_v36 = vld [vmem:[#allocation5 + $0x298] sm:$0xf]  ;;  %v7443_v20 = vld [vmem:[#allocation5 + $0x7dc] sm:$0xf] }
 0x147   :  { %2039 = vmatmul.bf16.vlgmr.msrb.gmra.mxu2 %v8133_v5  ;;  %2052 = vmatmul.bf16.vlgmr.msrb.gmra.mxu3 %v8135_v14  ;;  %v1780_v22 = vpop.f32.mrf.mxu2  ;;  %v1793_v23 = vpop.f32.mrf.mxu3  ;;  %v7279_v37 = vld [vmem:[#allocation5 + $0x2b4] sm:$0xf0]  ;;  %v5812_v40 = vld [vmem:[#allocation5 + $0x7b8] sm:$0xf0] }
 0x148   :  { %v1781_v27 = vadd.f32 %v1780_v22, %v1768_v7  ;;  %v1756_v28 = vpop.f32.mrf.mxu0  ;;  %v1769_v29 = vpop.f32.mrf.mxu1  ;;  %v5682_v41 = vld [vmem:[#allocation5 + $0x698] sm:$0xf] }
 0x149   :  { %2058 = vmatpush.bf16.msra.mxu0 %v5043_v43  ;;  %2071 = vmatpush.bf16.msra.mxu1 %v5299_v44  ;;  %v7407_v42 = vld [vmem:[#allocation5 + $0x6b4] sm:$0xf0]  ;;  %v4915_v43 = vor.u32 %v7215_v33, %v4914_v32  ;;  %v5171_v44 = vor.u32 %v7279_v37, %v5170_v36  ;;  %v7243_v28 = vld [vmem:[#allocation5 + $0x19c] sm:$0xf] }
 0x14a   :  { %2084 = vmatpush.bf16.msra.mxu2 %v5555_v48  ;;  %2097 = vmatpush.bf16.msra.mxu3 %v5811_v49  ;;  %v8164_v15 = vadd.f32 %v1793_v23, %v1781_v27  ;;  %v4882_v45 = vld [vmem:[#allocation5 + $0x58] sm:$0xf]  ;;  %v5683_v48 = vor.u32 %v7407_v42, %v5682_v41  ;;  %v5044_v29 = vld [vmem:[#allocation5 + $0x1b8] sm:$0xf0] }
 0x14b   :  { %v7207_v46 = vld [vmem:[#allocation5 + $0x74] sm:$0xf0]  ;;  %v7371_v36 = vld [vmem:[#allocation5 + $0x59c] sm:$0xf]  ;;  %v5047_v41 = vor.u32 %v7243_v28, %v5044_v29 }
 0x14c   :  { %v5138_v49 = vld [vmem:[#allocation5 + $0x258] sm:$0xf]  ;;  %v4883_v60 = vor.u32 %v7207_v46, %v4882_v45  ;;  %v5556_v37 = vld [vmem:[#allocation5 + $0x5b8] sm:$0xf0]  ;;  %v5815_v46 = vor.u32 %v7435_v38, %v5812_v40 }
 0x14d   :  { %2059 = vmatpush.bf16.msra.mxu0 %v5011_v58  ;;  %2072 = vmatpush.bf16.msra.mxu1 %v5267_v59  ;;  %v7271_v50 = vld [vmem:[#allocation5 + $0x274] sm:$0xf0]  ;;  %v5559_v45 = vor.u32 %v7371_v36, %v5556_v37  ;;  %v7211_v28 = vld [vmem:[#allocation5 + $0x9c] sm:$0xf] }
 0x14e   :  { %2085 = vmatpush.bf16.msra.mxu2 %v5523_v63  ;;  %2098 = vmatpush.bf16.msra.mxu3 %v5779_v0  ;;  %v5394_v51 = vld [vmem:[#allocation5 + $0x458] sm:$0xf]  ;;  %v5139_v61 = vor.u32 %v7271_v50, %v5138_v49  ;;  %v7363_v49 = vld [vmem:[#allocation5 + $0x55c] sm:$0xf] }
 0x14f   :  { %v1782_v52 = vpop.f32.mrf.mxu2  ;;  %v1795_v53 = vpop.f32.mrf.mxu3  ;;  %v7335_v54 = vld [vmem:[#allocation5 + $0x474] sm:$0xf0]  ;;  %v5524_v50 = vld [vmem:[#allocation5 + $0x578] sm:$0xf0] }
 0x150   :  { %v5650_v55 = vld [vmem:[#allocation5 + $0x658] sm:$0xf]  ;;  %v8166_v57 = vpop.f32.mrf.mxu0  ;;  %v8168_v58 = vpop.f32.mrf.mxu1  ;;  %v5395_v1 = vor.u32 %v7335_v54, %v5394_v51  ;;  %v7427_v51 = vld [vmem:[#allocation5 + $0x75c] sm:$0xf] }
 0x151   :  { %2060 = vmatpush.bf16.msra.mxu0 %v4979_v11  ;;  %2073 = vmatpush.bf16.msra.mxu1 %v5235_v12  ;;  %v7399_v56 = vld [vmem:[#allocation5 + $0x674] sm:$0xf0]  ;;  %v5076_v11 = vld [vmem:[#allocation5 + $0x1f8] sm:$0xf0] }
 0x152   :  { %2086 = vmatpush.bf16.msra.mxu2 %v5491_v17  ;;  %2099 = vmatpush.bf16.msra.mxu3 %v5747_v18  ;;  %v4850_v59 = vld [vmem:[#allocation5 + $0x18] sm:$0xf]  ;;  %v5651_v2 = vor.u32 %v7399_v56, %v5650_v55  ;;  %v7315_v12 = vld [vmem:[#allocation5 + $0x3dc] sm:$0xf]  ;;  %v5079_v24 = vor.u32 %v7251_v10, %v5076_v11 }
 0x153   :  { %v7199_v62 = vld [vmem:[#allocation5 + $0x34] sm:$0xf0]  ;;  %v5335_v25 = vor.u32 %v7315_v12, %v5332_v13  ;;  %v5780_v52 = vld [vmem:[#allocation5 + $0x778] sm:$0xf0] }
 0x154   :  { %v5106_v63 = vld [vmem:[#allocation5 + $0x218] sm:$0xf]  ;;  %v4851_v17 = vor.u32 %v7199_v62, %v4850_v59  ;;  %v7227_v59 = vld [vmem:[#allocation5 + $0x11c] sm:$0xf]  ;;  %v5783_v62 = vor.u32 %v7427_v51, %v5780_v52 }
 0x155   :  { %2061 = vmatpush.bf16.msra.mxu0 %v4947_v30  ;;  %2074 = vmatpush.bf16.msra.mxu1 %v5203_v31  ;;  %v7263_v0 = vld [vmem:[#allocation5 + $0x234] sm:$0xf0]  ;;  %v5591_v30 = vor.u32 %v7379_v16, %v5588_v19  ;;  %v5847_v31 = vor.u32 %v7443_v20, %v5844_v21  ;;  %v7219_v12 = vld [vmem:[#allocation5 + $0xdc] sm:$0xf] }
 0x156   :  { %2087 = vmatpush.bf16.msra.mxu2 %v5459_v34  ;;  %2100 = vmatpush.bf16.msra.mxu3 %v5715_v35  ;;  %v5362_v3 = vld [vmem:[#allocation5 + $0x418] sm:$0xf]  ;;  %v5107_v18 = vor.u32 %v7263_v0, %v5106_v63  ;;  %v7307_v34 = vld [vmem:[#allocation5 + $0x39c] sm:$0xf] }
 0x157   :  { %v7327_v7 = vld [vmem:[#allocation5 + $0x434] sm:$0xf0]  ;;  %v8170_v26 = vpop.f32.mrf.mxu2  ;;  %v8172_v27 = vpop.f32.mrf.mxu3  ;;  %v5300_v35 = vld [vmem:[#allocation5 + $0x3b8] sm:$0xf0] }
 0x158   :  { %v5618_v8 = vld [vmem:[#allocation5 + $0x618] sm:$0xf]  ;;  %v5363_v22 = vor.u32 %v7327_v7, %v5362_v3  ;;  %v1808_v32 = vpop.f32.mrf.mxu0  ;;  %v1821_v33 = vpop.f32.mrf.mxu1  ;;  %v5303_v42 = vor.u32 %v7307_v34, %v5300_v35  ;;  %v7291_v63 = vld [vmem:[#allocation5 + $0x31c] sm:$0xf] }
 0x159   :  { %2062 = vmatpush.bf16.msra.mxu0 %v4915_v43  ;;  %2075 = vmatpush.bf16.msra.mxu1 %v5171_v44  ;;  %v7391_v9 = vld [vmem:[#allocation5 + $0x634] sm:$0xf0]  ;;  %v7235_v43 = vld [vmem:[#allocation5 + $0x15c] sm:$0xf] }
 0x15a   :  { %2088 = vmatpush.bf16.msra.mxu2 %v5427_v47  ;;  %2101 = vmatpush.bf16.msra.mxu3 %v5683_v48  ;;  %v5619_v23 = vor.u32 %v7391_v9, %v5618_v8  ;;  %v5012_v44 = vld [vmem:[#allocation5 + $0x178] sm:$0xf0] }
 0x15b   :  { %v7299_v47 = vld [vmem:[#allocation5 + $0x35c] sm:$0xf]  ;;  %v5015_v53 = vor.u32 %v7235_v43, %v5012_v44 }
 0x15c   :  { %v5268_v48 = vld [vmem:[#allocation5 + $0x378] sm:$0xf0] }
 0x15d   :  { %2063 = vmatpush.bf16.msra.mxu0 %v4883_v60  ;;  %2076 = vmatpush.bf16.msra.mxu1 %v5139_v61  ;;  %v5271_v54 = vor.u32 %v7299_v47, %v5268_v48  ;;  %v4980_v60 = vld [vmem:[#allocation5 + $0x138] sm:$0xf0]  ;;  %v5527_v61 = vor.u32 %v7363_v49, %v5524_v50 }
 0x15e   :  { %2089 = vmatpush.bf16.msra.mxu2 %v5395_v1  ;;  %2102 = vmatpush.bf16.msra.mxu3 %v5651_v2  ;;  %v5236_v0 = vld [vmem:[#allocation5 + $0x338] sm:$0xf0]  ;;  %v4983_v10 = vor.u32 %v7227_v59, %v4980_v60 }
 0x15f   :  { %v1834_v55 = vpop.f32.mrf.mxu2  ;;  %v1847_v56 = vpop.f32.mrf.mxu3  ;;  %v7355_v1 = vld [vmem:[#allocation5 + $0x51c] sm:$0xf]  ;;  %v5239_v11 = vor.u32 %v7291_v63, %v5236_v0 }
 0x160   :  { %v5492_v2 = vld [vmem:[#allocation5 + $0x538] sm:$0xf0] }
 0x161   :  { %2064 = vmatpush.bf16.msra.mxu0 %v4851_v17  ;;  %2077 = vmatpush.bf16.msra.mxu1 %v5107_v18  ;;  %v7419_v3 = vld [vmem:[#allocation5 + $0x71c] sm:$0xf]  ;;  %v8178_v8 = vpop.f32.mrf.mxu0  ;;  %v8180_v9 = vpop.f32.mrf.mxu1  ;;  %v5495_v16 = vor.u32 %v7355_v1, %v5492_v2 }
 0x162   :  { %2090 = vmatpush.bf16.msra.mxu2 %v5363_v22  ;;  %2103 = vmatpush.bf16.msra.mxu3 %v5619_v23  ;;  %v5748_v7 = vld [vmem:[#allocation5 + $0x738] sm:$0xf0] }
 0x163   :  { %v4948_v13 = vld [vmem:[#allocation5 + $0xf8] sm:$0xf0]  ;;  %v5751_v17 = vor.u32 %v7419_v3, %v5748_v7 }
 0x164   :  { %2065 = vmatmul.bf16.vlgmr.msra.gmra.mxu0 %v8129_v6  ;;  %2078 = vmatmul.bf16.vlgmr.msra.gmra.mxu1 %v8131_v4  ;;  %v7283_v18 = vld [vmem:[#allocation5 + $0x2dc] sm:$0xf] }
 0x165   :  { %2109 = vmatpush.bf16.msrb.mxu0 %v5079_v24  ;;  %2122 = vmatpush.bf16.msrb.mxu1 %v5335_v25  ;;  %v5204_v19 = vld [vmem:[#allocation5 + $0x2f8] sm:$0xf0]  ;;  %v4951_v24 = vor.u32 %v7219_v12, %v4948_v13  ;;  %v5962_v12 = vld [vmem:[#allocation8 + $0xe0] sm:$0xf]  ;;  %v7478_v13 = vld [vmem:[#allocation8 + $0xec] sm:$0xf0] }
 0x166   :  { %2135 = vmatpush.bf16.msrb.mxu2 %v5591_v30  ;;  %2148 = vmatpush.bf16.msrb.mxu3 %v5847_v31  ;;  %v7347_v20 = vld [vmem:[#allocation5 + $0x4dc] sm:$0xf]  ;;  %v5207_v25 = vor.u32 %v7283_v18, %v5204_v19  ;;  %v6218_v18 = vld [vmem:[#allocation8 + $0x2e0] sm:$0xf] }
 0x167   :  { %2091 = vmatmul.bf16.vlgmr.msra.gmra.mxu2 %v8133_v5  ;;  %2104 = vmatmul.bf16.vlgmr.msra.gmra.mxu3 %v8135_v14  ;;  %v5460_v21 = vld [vmem:[#allocation5 + $0x4f8] sm:$0xf0] }
 0x168   :  { %v7411_v22 = vld [vmem:[#allocation5 + $0x6dc] sm:$0xf]  ;;  %v5463_v30 = vor.u32 %v7347_v20, %v5460_v21  ;;  %v7542_v21 = vld [vmem:[#allocation8 + $0x2ec] sm:$0xf0] }
 0x169   :  { %2110 = vmatpush.bf16.msrb.mxu0 %v5047_v41  ;;  %2123 = vmatpush.bf16.msrb.mxu1 %v5303_v42  ;;  %v5716_v23 = vld [vmem:[#allocation5 + $0x6f8] sm:$0xf0]  ;;  %v1860_v41 = vpop.f32.mrf.mxu0  ;;  %v1873_v42 = vpop.f32.mrf.mxu1 }
 0x16a   :  { %2136 = vmatpush.bf16.msrb.mxu2 %v5559_v45  ;;  %2149 = vmatpush.bf16.msrb.mxu3 %v5815_v46  ;;  %v4916_v29 = vld [vmem:[#allocation5 + $0xb8] sm:$0xf0]  ;;  %v5719_v31 = vor.u32 %v7411_v22, %v5716_v23  ;;  %v8182_v35 = vpop.f32.mrf.mxu2  ;;  %v8184_v36 = vpop.f32.mrf.mxu3  ;;  %v6346_v22 = vld [vmem:[#allocation8 + $0x3e0] sm:$0xf]  ;;  %v7574_v23 = vld [vmem:[#allocation8 + $0x3ec] sm:$0xf0] }
 0x16b   :  { %v7275_v32 = vld [vmem:[#allocation5 + $0x29c] sm:$0xf]  ;;  %v4919_v43 = vor.u32 %v7211_v28, %v4916_v29  ;;  %v5963_v28 = vor.u32 %v7478_v13, %v5962_v12  ;;  %v6330_v41 = vld [vmem:[#allocation8 + $0x3c0] sm:$0xf]  ;;  %v7570_v42 = vld [vmem:[#allocation8 + $0x3cc] sm:$0xf0] }
 0x16c   :  { %v5172_v33 = vld [vmem:[#allocation5 + $0x2b8] sm:$0xf0]  ;;  %v5898_v13 = vld [vmem:[#allocation8 + $0x60] sm:$0xf] }
 0x16d   :  { %2111 = vmatpush.bf16.msrb.mxu0 %v5015_v53  ;;  %2124 = vmatpush.bf16.msrb.mxu1 %v5271_v54  ;;  %v7339_v34 = vld [vmem:[#allocation5 + $0x49c] sm:$0xf]  ;;  %v5175_v44 = vor.u32 %v7275_v32, %v5172_v33  ;;  %v6219_v32 = vor.u32 %v7542_v21, %v6218_v18  ;;  %v6347_v33 = vor.u32 %v7574_v23, %v6346_v22  ;;  %v7494_v21 = vld [vmem:[#allocation8 + $0x16c] sm:$0xf0]  ;;  %v6154_v22 = vld [vmem:[#allocation8 + $0x260] sm:$0xf] }
 0x16e   :  { %2137 = vmatpush.bf16.msrb.mxu2 %v5527_v61  ;;  %2150 = vmatpush.bf16.msrb.mxu3 %v5783_v62  ;;  %v5428_v37 = vld [vmem:[#allocation5 + $0x4b8] sm:$0xf0]  ;;  %v7526_v23 = vld [vmem:[#allocation8 + $0x26c] sm:$0xf0] }
 0x16f   :  { %v7403_v38 = vld [vmem:[#allocation5 + $0x69c] sm:$0xf]  ;;  %v5431_v47 = vor.u32 %v7339_v34, %v5428_v37  ;;  %v6074_v34 = vld [vmem:[#allocation8 + $0x1c0] sm:$0xf]  ;;  %v7506_v37 = vld [vmem:[#allocation8 + $0x1cc] sm:$0xf0] }
 0x170   :  { %v5684_v40 = vld [vmem:[#allocation5 + $0x6b8] sm:$0xf0] }
 0x171   :  { %2112 = vmatpush.bf16.msrb.mxu0 %v4983_v10  ;;  %2125 = vmatpush.bf16.msrb.mxu1 %v5239_v11  ;;  %v7203_v45 = vld [vmem:[#allocation5 + $0x5c] sm:$0xf]  ;;  %v5687_v48 = vor.u32 %v7403_v38, %v5684_v40  ;;  %v6202_v38 = vld [vmem:[#allocation8 + $0x2c0] sm:$0xf]  ;;  %v7538_v40 = vld [vmem:[#allocation8 + $0x2cc] sm:$0xf0] }
 0x172   :  { %2138 = vmatpush.bf16.msrb.mxu2 %v5495_v16  ;;  %2151 = vmatpush.bf16.msrb.mxu3 %v5751_v17  ;;  %v4884_v46 = vld [vmem:[#allocation5 + $0x78] sm:$0xf0]  ;;  %v1886_v7 = vpop.f32.mrf.mxu2  ;;  %v1899_v10 = vpop.f32.mrf.mxu3  ;;  %v6090_v16 = vld [vmem:[#allocation8 + $0x1e0] sm:$0xf]  ;;  %v7510_v17 = vld [vmem:[#allocation8 + $0x1ec] sm:$0xf0] }
 0x173   :  { %v7267_v49 = vld [vmem:[#allocation5 + $0x25c] sm:$0xf]  ;;  %v4887_v56 = vor.u32 %v7203_v45, %v4884_v46  ;;  %v6091_v29 = vor.u32 %v7510_v17, %v6090_v16  ;;  %v5930_v45 = vld [vmem:[#allocation8 + $0xa0] sm:$0xf]  ;;  %v7470_v46 = vld [vmem:[#allocation8 + $0xac] sm:$0xf0] }
 0x174   :  { %v5140_v50 = vld [vmem:[#allocation5 + $0x278] sm:$0xf0]  ;;  %v452_v10 = vperm.slane %v8157_v39, 3  ;;  %v7462_v16 = vld [vmem:[#allocation8 + $0x6c] sm:$0xf0] }
 0x175   :  { %2113 = vmatpush.bf16.msrb.mxu0 %v4951_v24  ;;  %2126 = vmatpush.bf16.msrb.mxu1 %v5207_v25  ;;  %v7331_v51 = vld [vmem:[#allocation5 + $0x45c] sm:$0xf]  ;;  %v5143_v59 = vor.u32 %v7267_v49, %v5140_v50  ;;  %v6058_v49 = vld [vmem:[#allocation8 + $0x1a0] sm:$0xf]  ;;  %v7502_v50 = vld [vmem:[#allocation8 + $0x1ac] sm:$0xf0] }
 0x176   :  { %2139 = vmatpush.bf16.msrb.mxu2 %v5463_v30  ;;  %2152 = vmatpush.bf16.msrb.mxu3 %v5719_v31  ;;  %v5396_v52 = vld [vmem:[#allocation5 + $0x478] sm:$0xf0]  ;;  %v5946_v30 = vld [vmem:[#allocation8 + $0xc0] sm:$0xf]  ;;  %v7474_v31 = vld [vmem:[#allocation8 + $0xcc] sm:$0xf0] }
 0x177   :  { %v7395_v53 = vld [vmem:[#allocation5 + $0x65c] sm:$0xf]  ;;  %v5399_v63 = vor.u32 %v7331_v51, %v5396_v52  ;;  %v6186_v51 = vld [vmem:[#allocation8 + $0x2a0] sm:$0xf]  ;;  %v7534_v52 = vld [vmem:[#allocation8 + $0x2ac] sm:$0xf0] }
 0x178   :  { %v5652_v54 = vld [vmem:[#allocation5 + $0x678] sm:$0xf0] }
 0x179   :  { %v7195_v55 = vld [vmem:[#allocation5 + $0x1c] sm:$0xf]  ;;  %2114 = vmatpush.bf16.msrb.mxu0 %v4919_v43  ;;  %2127 = vmatpush.bf16.msrb.mxu1 %v5175_v44  ;;  %v5655_v0 = vor.u32 %v7395_v53, %v5652_v54  ;;  %v5947_v43 = vor.u32 %v7474_v31, %v5946_v30  ;;  %v6075_v44 = vor.u32 %v7506_v37, %v6074_v34  ;;  %v6314_v53 = vld [vmem:[#allocation8 + $0x3a0] sm:$0xf]  ;;  %v7566_v54 = vld [vmem:[#allocation8 + $0x3ac] sm:$0xf0] }
 0x17a   :  { %v4852_v60 = vld [vmem:[#allocation5 + $0x38] sm:$0xf0]  ;;  %2140 = vmatpush.bf16.msrb.mxu2 %v5431_v47  ;;  %2153 = vmatpush.bf16.msrb.mxu3 %v5687_v48  ;;  %v6203_v47 = vor.u32 %v7538_v40, %v6202_v38  ;;  %v6331_v48 = vor.u32 %v7570_v42, %v6330_v41  ;;  %v5899_v30 = vor.u32 %v7462_v16, %v5898_v13  ;;  %v6010_v38 = vld [vmem:[#allocation8 + $0x140] sm:$0xf]  ;;  %v7490_v40 = vld [vmem:[#allocation8 + $0x14c] sm:$0xf0] }
 0x17b   :  { %v7259_v61 = vld [vmem:[#allocation5 + $0x21c] sm:$0xf]  ;;  %v4855_v19 = vor.u32 %v7195_v55, %v4852_v60  ;;  %v450_v55 = vperm.slane %v8157_v39, 1  ;;  %v5914_v60 = vld [vmem:[#allocation8 + $0x80] sm:$0xf]  ;;  %v6155_v34 = vor.u32 %v7526_v23, %v6154_v22  ;;  %v2161_v22 = vmax.f32 %v8164_v15, 0.0 }
 0x17c   :  { %v5108_v62 = vld [vmem:[#allocation5 + $0x238] sm:$0xf0]  ;;  %v6138_v41 = vld [vmem:[#allocation8 + $0x240] sm:$0xf] }
 0x17d   :  { %v7323_v1 = vld [vmem:[#allocation5 + $0x41c] sm:$0xf]  ;;  %2115 = vmatpush.bf16.msrb.mxu0 %v4887_v56  ;;  %2128 = vmatpush.bf16.msrb.mxu1 %v5143_v59  ;;  %v5111_v20 = vor.u32 %v7259_v61, %v5108_v62  ;;  %v5931_v56 = vor.u32 %v7470_v46, %v5930_v45  ;;  %v6059_v59 = vor.u32 %v7502_v50, %v6058_v49  ;;  %v7466_v61 = vld [vmem:[#allocation8 + $0x8c] sm:$0xf0] }
 0x17e   :  { %v5364_v2 = vld [vmem:[#allocation5 + $0x438] sm:$0xf0]  ;;  %2141 = vmatpush.bf16.msrb.mxu2 %v5399_v63  ;;  %2154 = vmatpush.bf16.msrb.mxu3 %v5655_v0  ;;  %v6315_v62 = vor.u32 %v7566_v54, %v6314_v53  ;;  %v7498_v63 = vld [vmem:[#allocation8 + $0x18c] sm:$0xf0]  ;;  %v6170_v0 = vld [vmem:[#allocation8 + $0x280] sm:$0xf]  ;;  %v1807_v17 = vadd.f32 %v8166_v57, %v450_v55  ;;  %v8202_v15 = vpack.c.bf16 %v2161_v22, %v2161_v22 }
 0x17f   :  { %v7387_v3 = vld [vmem:[#allocation5 + $0x61c] sm:$0xf]  ;;  %v5367_v24 = vor.u32 %v7323_v1, %v5364_v2  ;;  %v7530_v1 = vld [vmem:[#allocation8 + $0x28c] sm:$0xf0]  ;;  %v6298_v2 = vld [vmem:[#allocation8 + $0x380] sm:$0xf] }
 0x180   :  { %v5620_v11 = vld [vmem:[#allocation5 + $0x638] sm:$0xf0]  ;;  %v6171_v18 = vor.u32 %v7530_v1, %v6170_v0  ;;  %v1820_v57 = vadd.f32 %v8168_v58, %v1807_v17  ;;  %v7554_v45 = vld [vmem:[#allocation8 + $0x34c] sm:$0xf0]  ;;  %v5850_v1 = vld [vmem:[#allocation8] sm:$0xf] }
 0x181   :  { %v5623_v25 = vor.u32 %v7387_v3, %v5620_v11  ;;  %2116 = vmatpush.bf16.msrb.mxu0 %v4855_v19  ;;  %2129 = vmatpush.bf16.msrb.mxu1 %v5111_v20  ;;  %v1910_v3 = vpop.f32.mrf.mxu0  ;;  %v1923_v7 = vpop.f32.mrf.mxu1  ;;  %v5915_v11 = vor.u32 %v7466_v61, %v5914_v60  ;;  %v6026_v20 = vld [vmem:[#allocation8 + $0x160] sm:$0xf]  ;;  %v7454_v53 = vld [vmem:[#allocation8 + $0x2c] sm:$0xf0] }
 0x182   :  { %2142 = vmatpush.bf16.msrb.mxu2 %v5367_v24  ;;  %v6282_v24 = vld [vmem:[#allocation8 + $0x360] sm:$0xf]  ;;  %v6027_v31 = vor.u32 %v7494_v21, %v6026_v20  ;;  %v1833_v46 = vadd.f32 %v8170_v26, %v1820_v57  ;;  %v7486_v60 = vld [vmem:[#allocation8 + $0x12c] sm:$0xf0] }
 0x183   :  { %2155 = vmatpush.bf16.msrb.mxu3 %v5623_v25  ;;  %v7558_v25 = vld [vmem:[#allocation8 + $0x36c] sm:$0xf0]  ;;  %v6122_v26 = vld [vmem:[#allocation8 + $0x220] sm:$0xf] }
 0x184   :  { %2117 = vmatmul.bf16.vlgmr.msrb.gmra.mxu0 %v8129_v6  ;;  %2130 = vmatmul.bf16.vlgmr.msrb.gmra.mxu1 %v8131_v4  ;;  %v6187_v6 = vor.u32 %v7534_v52, %v6186_v51  ;;  %v6042_v4 = vld [vmem:[#allocation8 + $0x180] sm:$0xf]  ;;  %v6283_v37 = vor.u32 %v7558_v25, %v6282_v24  ;;  %v6011_v51 = vor.u32 %v7490_v40, %v6010_v38  ;;  %v7546_v17 = vld [vmem:[#allocation8 + $0x30c] sm:$0xf0] }
 0x185   :  { %3723 = vmatpush.bf16.msra.mxu0 %v5963_v28  ;;  %3736 = vmatpush.bf16.msra.mxu1 %v6091_v29  ;;  %v6043_v12 = vor.u32 %v7498_v63, %v6042_v4  ;;  %v1911_v29 = vadd.f32 %v1910_v3, %v452_v10  ;;  %v5866_v52 = vld [vmem:[#allocation8 + $0x20] sm:$0xf]  ;;  %v1846_v4 = vadd.f32 %v8172_v27, %v1833_v46  ;;  %v7638_v21 = vld [vmem:[#allocation8 + $0x5ec] sm:$0xf0] }
 0x186   :  { %3749 = vmatpush.bf16.msra.mxu2 %v6219_v32  ;;  %2156 = vmatmul.bf16.vlgmr.msrb.gmra.mxu3 %v8135_v14  ;;  %v451_v14 = vperm.slane %v8157_v39, 2  ;;  %v5882_v32 = vld [vmem:[#allocation8 + $0x40] sm:$0xf]  ;;  %v5867_v63 = vor.u32 %v7454_v53, %v5866_v52  ;;  %v7634_v40 = vld [vmem:[#allocation8 + $0x5cc] sm:$0xf0] }
 0x187   :  { %3762 = vmatpush.bf16.msra.mxu3 %v6347_v33  ;;  %2143 = vmatmul.bf16.vlgmr.msrb.gmra.mxu2 %v8133_v5  ;;  %v7562_v5 = vld [vmem:[#allocation8 + $0x38c] sm:$0xf0]  ;;  %v1924_v50 = vadd.f32 %v1923_v7, %v1911_v29  ;;  %v6106_v10 = vld [vmem:[#allocation8 + $0x200] sm:$0xf]  ;;  %v2162_v24 = vmax.f32 %v1846_v4, 0.0 }
 0x188   :  { %v6299_v19 = vor.u32 %v7562_v5, %v6298_v2  ;;  %v1859_v28 = vadd.f32 %v8178_v8, %v451_v14  ;;  %v7458_v33 = vld [vmem:[#allocation8 + $0x4c] sm:$0xf0]  ;;  %v6266_v8 = vld [vmem:[#allocation8 + $0x340] sm:$0xf] }
 0x189   :  { %3724 = vmatpush.bf16.msra.mxu0 %v5947_v43  ;;  %3737 = vmatpush.bf16.msra.mxu1 %v6075_v44  ;;  %v7522_v44 = vld [vmem:[#allocation8 + $0x24c] sm:$0xf0]  ;;  %v1925_v49 = vpop.f32.mrf.mxu1  ;;  %v5883_v58 = vor.u32 %v7458_v33, %v5882_v32  ;;  %v6234_v27 = vld [vmem:[#allocation8 + $0x300] sm:$0xf] }
 0x18a   :  { %3750 = vmatpush.bf16.msra.mxu2 %v6203_v47  ;;  %v1936_v42 = vpop.f32.mrf.mxu2  ;;  %v1949_v43 = vpop.f32.mrf.mxu3  ;;  %v1872_v47 = vadd.f32 %v8180_v9, %v1859_v28  ;;  %v6139_v55 = vor.u32 %v7522_v44, %v6138_v41  ;;  %v7518_v9 = vld [vmem:[#allocation8 + $0x22c] sm:$0xf0]  ;;  %v6602_v20 = vld [vmem:[#allocation8 + $0x5e0] sm:$0xf]  ;;  %v6235_v29 = vor.u32 %v7546_v17, %v6234_v27  ;;  %v8204_v41 = vpack.c.bf16 %v2162_v24, %v2162_v24 }
 0x18b   :  { %3763 = vmatpush.bf16.msra.mxu3 %v6331_v48  ;;  %v1912_v48 = vpop.f32.mrf.mxu0  ;;  %v1937_v61 = vadd.f32 %v1936_v42, %v1924_v50  ;;  %v7450_v2 = vld [vmem:[#allocation8 + $0xc] sm:$0xf0]  ;;  %v6123_v14 = vor.u32 %v7518_v9, %v6122_v26  ;;  %v6603_v33 = vor.u32 %v7638_v21, %v6602_v20  ;;  %v6730_v57 = vld [vmem:[#allocation8 + $0x6e0] sm:$0xf] }
 0x18c   :  { %v1885_v54 = vadd.f32 %v8182_v35, %v1872_v47  ;;  %v5978_v35 = vld [vmem:[#allocation8 + $0x100] sm:$0xf]  ;;  %v7482_v7 = vld [vmem:[#allocation8 + $0x10c] sm:$0xf0] }
 0x18d   :  { %3725 = vmatpush.bf16.msra.mxu0 %v5931_v56  ;;  %3738 = vmatpush.bf16.msra.mxu1 %v6059_v59  ;;  %v6267_v56 = vor.u32 %v7554_v45, %v6266_v8  ;;  %v5994_v59 = vld [vmem:[#allocation8 + $0x120] sm:$0xf]  ;;  %v5979_v23 = vor.u32 %v7482_v7, %v5978_v35  ;;  %v7666_v48 = vld [vmem:[#allocation8 + $0x6cc] sm:$0xf0] }
 0x18e   :  { %3751 = vmatpush.bf16.msra.mxu2 %v6187_v6  ;;  %v6250_v6 = vld [vmem:[#allocation8 + $0x320] sm:$0xf]  ;;  %v5995_v0 = vor.u32 %v7486_v60, %v5994_v59  ;;  %v1898_v5 = vadd.f32 %v8184_v36, %v1885_v54  ;;  %v5851_v36 = vor.u32 %v7450_v2, %v5850_v1  ;;  %v7598_v49 = vld [vmem:[#allocation8 + $0x4ac] sm:$0xf0] }
 0x18f   :  { %3764 = vmatpush.bf16.msra.mxu3 %v6315_v62  ;;  %v7550_v62 = vld [vmem:[#allocation8 + $0x32c] sm:$0xf0]  ;;  %v6586_v38 = vld [vmem:[#allocation8 + $0x5c0] sm:$0xf] }
 0x190   :  { %v6251_v3 = vor.u32 %v7550_v62, %v6250_v6  ;;  %v2163_v25 = vmax.f32 %v1898_v5, 0.0  ;;  %v6587_v45 = vor.u32 %v7634_v40, %v6586_v38  ;;  %v6442_v46 = vld [vmem:[#allocation8 + $0x4a0] sm:$0xf]  ;;  %v7662_v59 = vld [vmem:[#allocation8 + $0x6ac] sm:$0xf0] }
 0x191   :  { %3726 = vmatpush.bf16.msra.mxu0 %v5915_v11  ;;  %3739 = vmatpush.bf16.msra.mxu1 %v6043_v12  ;;  %v7514_v11 = vld [vmem:[#allocation8 + $0x20c] sm:$0xf0]  ;;  %v1950_v12 = vadd.f32 %v1949_v43, %v1937_v61  ;;  %v6714_v47 = vld [vmem:[#allocation8 + $0x6c0] sm:$0xf]  ;;  %v6443_v53 = vor.u32 %v7598_v49, %v6442_v46 }
 0x192   :  { %3752 = vmatpush.bf16.msra.mxu2 %v6171_v18  ;;  %v1938_v13 = vpop.f32.mrf.mxu2  ;;  %v1951_v16 = vpop.f32.mrf.mxu3  ;;  %v6474_v18 = vld [vmem:[#allocation8 + $0x4e0] sm:$0xf]  ;;  %v6107_v28 = vor.u32 %v7514_v11, %v6106_v10  ;;  %v8206_v42 = vpack.c.bf16 %v2163_v25, %v2163_v25  ;;  %v6715_v52 = vor.u32 %v7666_v48, %v6714_v47  ;;  %v7594_v60 = vld [vmem:[#allocation8 + $0x48c] sm:$0xf0] }
 0x193   :  { %3765 = vmatpush.bf16.msra.mxu3 %v6299_v19  ;;  %v7606_v19 = vld [vmem:[#allocation8 + $0x4ec] sm:$0xf0]  ;;  %v6570_v50 = vld [vmem:[#allocation8 + $0x5a0] sm:$0xf] }
 0x194   :  { %v6475_v32 = vor.u32 %v7606_v19, %v6474_v18  ;;  %v6554_v26 = vld [vmem:[#allocation8 + $0x580] sm:$0xf]  ;;  %v7626_v61 = vld [vmem:[#allocation8 + $0x58c] sm:$0xf0] }
 0x195   :  { %3727 = vmatpush.bf16.msra.mxu0 %v5899_v30  ;;  %3740 = vmatpush.bf16.msra.mxu1 %v6027_v31  ;;  %v6458_v30 = vld [vmem:[#allocation8 + $0x4c0] sm:$0xf]  ;;  %v2164_v31 = vmax.f32 %v1950_v12, 0.0  ;;  %v7658_v1 = vld [vmem:[#allocation8 + $0x68c] sm:$0xf0] }
 0x196   :  { %3753 = vmatpush.bf16.msra.mxu2 %v6155_v34  ;;  %v7670_v34 = vld [vmem:[#allocation8 + $0x6ec] sm:$0xf0]  ;;  %v6538_v5 = vld [vmem:[#allocation8 + $0x560] sm:$0xf] }
 0x197   :  { %3766 = vmatpush.bf16.msra.mxu3 %v6283_v37  ;;  %v7602_v37 = vld [vmem:[#allocation8 + $0x4cc] sm:$0xf0]  ;;  %v6731_v43 = vor.u32 %v7670_v34, %v6730_v57  ;;  %v8208_v44 = vpack.c.bf16 %v2164_v31, %v2164_v31  ;;  %v6394_v11 = vld [vmem:[#allocation8 + $0x440] sm:$0xf] }
 0x198   :  { %v6459_v8 = vor.u32 %v7602_v37, %v6458_v30  ;;  %v7590_v35 = vld [vmem:[#allocation8 + $0x46c] sm:$0xf0]  ;;  %v6666_v12 = vld [vmem:[#allocation8 + $0x660] sm:$0xf] }
 0x199   :  { %3728 = vmatpush.bf16.msra.mxu0 %v5883_v58  ;;  %3741 = vmatpush.bf16.msra.mxu1 %v6011_v51  ;;  %v7630_v58 = vld [vmem:[#allocation8 + $0x5ac] sm:$0xf0]  ;;  %v453_v51 = vperm.slane %v8157_v39, 4  ;;  %v6555_v39 = vor.u32 %v7626_v61, %v6554_v26  ;;  %v6522_v17 = vld [vmem:[#allocation8 + $0x540] sm:$0xf] }
 0x19a   :  { %3754 = vmatpush.bf16.msra.mxu2 %v6139_v55  ;;  %v6571_v54 = vor.u32 %v7630_v58, %v6570_v50  ;;  %v6426_v55 = vld [vmem:[#allocation8 + $0x480] sm:$0xf]  ;;  %v7654_v13 = vld [vmem:[#allocation8 + $0x66c] sm:$0xf0]  ;;  %v7476_v50 = vld [vmem:[#allocation8 + $0xe4] sm:$0xf] }
 0x19b   :  { %3767 = vmatpush.bf16.msra.mxu3 %v6267_v56  ;;  %v6698_v56 = vld [vmem:[#allocation8 + $0x6a0] sm:$0xf]  ;;  %v6427_v4 = vor.u32 %v7594_v60, %v6426_v55  ;;  %v7586_v27 = vld [vmem:[#allocation8 + $0x44c] sm:$0xf0]  ;;  %v6092_v55 = vld [vmem:[#allocation8 + $0x1f0] sm:$0xf0] }
 0x19c   :  { %v6699_v62 = vor.u32 %v7662_v59, %v6698_v56  ;;  %v7618_v18 = vld [vmem:[#allocation8 + $0x54c] sm:$0xf0]  ;;  %v6395_v24 = vor.u32 %v7586_v27, %v6394_v11  ;;  %v6362_v34 = vld [vmem:[#allocation8 + $0x400] sm:$0xf]  ;;  %v7472_v61 = vld [vmem:[#allocation8 + $0xc4] sm:$0xf] }
 0x19d   :  { %3729 = vmatpush.bf16.msra.mxu0 %v5867_v63  ;;  %3742 = vmatpush.bf16.msra.mxu1 %v5995_v0  ;;  %v6410_v63 = vld [vmem:[#allocation8 + $0x460] sm:$0xf]  ;;  %v6523_v25 = vor.u32 %v7618_v18, %v6522_v17  ;;  %v7650_v30 = vld [vmem:[#allocation8 + $0x64c] sm:$0xf0]  ;;  %v7468_v27 = vld [vmem:[#allocation8 + $0xa4] sm:$0xf] }
 0x19e   :  { %3755 = vmatpush.bf16.msra.mxu2 %v6123_v14  ;;  %v6682_v0 = vld [vmem:[#allocation8 + $0x680] sm:$0xf]  ;;  %v7622_v14 = vld [vmem:[#allocation8 + $0x56c] sm:$0xf0]  ;;  %v6411_v7 = vor.u32 %v7590_v35, %v6410_v63  ;;  %v7540_v63 = vld [vmem:[#allocation8 + $0x2e4] sm:$0xf] }
 0x19f   :  { %3768 = vmatpush.bf16.msra.mxu3 %v6251_v3  ;;  %v6683_v3 = vor.u32 %v7658_v1, %v6682_v0  ;;  %v6539_v10 = vor.u32 %v7622_v14, %v6538_v5  ;;  %v7582_v31 = vld [vmem:[#allocation8 + $0x42c] sm:$0xf0]  ;;  %v6634_v40 = vld [vmem:[#allocation8 + $0x620] sm:$0xf]  ;;  %v6220_v0 = vld [vmem:[#allocation8 + $0x2f0] sm:$0xf0] }
 0x1a0   :  { %v7578_v37 = vld [vmem:[#allocation8 + $0x40c] sm:$0xf0]  ;;  %v6858_v46 = vld [vmem:[#allocation8 + $0x7e0] sm:$0xf]  ;;  %v7504_v35 = vld [vmem:[#allocation8 + $0x1c4] sm:$0xf] }
 0x1a1   :  { %3730 = vmatpush.bf16.msra.mxu0 %v5851_v36  ;;  %3743 = vmatpush.bf16.msra.mxu1 %v5979_v23  ;;  %v1962_v9 = vpop.f32.mrf.mxu0  ;;  %v1975_v6 = vpop.f32.mrf.mxu1  ;;  %v6667_v23 = vor.u32 %v7654_v13, %v6666_v12  ;;  %v7702_v47 = vld [vmem:[#allocation8 + $0x7ec] sm:$0xf0]  ;;  %v6490_v48 = vld [vmem:[#allocation8 + $0x500] sm:$0xf]  ;;  %v6363_v60 = vor.u32 %v7578_v37, %v6362_v34  ;;  %v6076_v5 = vld [vmem:[#allocation8 + $0x1d0] sm:$0xf0] }
 0x1a2   :  { %3756 = vmatpush.bf16.msra.mxu2 %v6107_v28  ;;  %v1963_v2 = vadd.f32 %v1962_v9, %v453_v51  ;;  %v6378_v28 = vld [vmem:[#allocation8 + $0x420] sm:$0xf]  ;;  %v7610_v49 = vld [vmem:[#allocation8 + $0x50c] sm:$0xf0]  ;;  %v6859_v58 = vor.u32 %v7702_v47, %v6858_v46  ;;  %v7536_v17 = vld [vmem:[#allocation8 + $0x2c4] sm:$0xf] }
 0x1a3   :  { %3769 = vmatpush.bf16.msra.mxu3 %v6235_v29  ;;  %v6650_v29 = vld [vmem:[#allocation8 + $0x640] sm:$0xf]  ;;  %v6491_v26 = vor.u32 %v7610_v49, %v6490_v48  ;;  %v7698_v1 = vld [vmem:[#allocation8 + $0x7cc] sm:$0xf0]  ;;  %v6204_v18 = vld [vmem:[#allocation8 + $0x2d0] sm:$0xf0] }
 0x1a4   :  { %3731 = vmatmul.bf16.vlgmr.msra.gmra.mxu0 %v8202_v15  ;;  %3744 = vmatmul.bf16.vlgmr.msra.gmra.mxu1 %v8204_v41  ;;  %v1976_v16 = vadd.f32 %v1975_v6, %v1963_v2  ;;  %v6651_v38 = vor.u32 %v7650_v30, %v6650_v29  ;;  %v6618_v9 = vld [vmem:[#allocation8 + $0x600] sm:$0xf]  ;;  %v7642_v6 = vld [vmem:[#allocation8 + $0x60c] sm:$0xf0]  ;;  %v5948_v2 = vld [vmem:[#allocation8 + $0xd0] sm:$0xf0] }
 0x1a5   :  { %3775 = vmatpush.bf16.msrb.mxu0 %v6475_v32  ;;  %3788 = vmatpush.bf16.msrb.mxu1 %v6603_v33  ;;  %v6506_v32 = vld [vmem:[#allocation8 + $0x520] sm:$0xf]  ;;  %v7614_v33 = vld [vmem:[#allocation8 + $0x52c] sm:$0xf0]  ;;  %v5951_v13 = vor.u32 %v7472_v61, %v5948_v2  ;;  %v7464_v29 = vld [vmem:[#allocation8 + $0x84] sm:$0xf] }
 0x1a6   :  { %3757 = vmatmul.bf16.vlgmr.msra.gmra.mxu2 %v8206_v42  ;;  %3770 = vmatmul.bf16.vlgmr.msra.gmra.mxu3 %v8208_v44  ;;  %v7694_v11 = vld [vmem:[#allocation8 + $0x7ac] sm:$0xf0]  ;;  %v7532_v30 = vld [vmem:[#allocation8 + $0x2a4] sm:$0xf]  ;;  %v8218_v37 = vld [vmem:[#allocation7] sm:$0xff] }
 0x1a7   :  { %3801 = vmatpush.bf16.msrb.mxu2 %v6731_v43  ;;  %v6379_v43 = vor.u32 %v7582_v31, %v6378_v28  ;;  %3814 = vmatpush.bf16.msrb.mxu3 %v6859_v58  ;;  %v6188_v31 = vld [vmem:[#allocation8 + $0x2b0] sm:$0xf0]  ;;  %v7460_v49 = vld [vmem:[#allocation8 + $0x64] sm:$0xf] }
 0x1a8   :  { %v6172_v58 = vld [vmem:[#allocation8 + $0x290] sm:$0xf0] }
 0x1a9   :  { %3776 = vmatpush.bf16.msrb.mxu0 %v6459_v8  ;;  %3789 = vmatpush.bf16.msrb.mxu1 %v6587_v45  ;;  %v1964_v22 = vpop.f32.mrf.mxu0  ;;  %v1977_v36 = vpop.f32.mrf.mxu1  ;;  %v6507_v8 = vor.u32 %v7614_v33, %v6506_v32  ;;  %v7646_v45 = vld [vmem:[#allocation8 + $0x62c] sm:$0xf0]  ;;  %v5916_v32 = vld [vmem:[#allocation8 + $0x90] sm:$0xf0]  ;;  %v7496_v33 = vld [vmem:[#allocation8 + $0x184] sm:$0xf] }
 0x1aa   :  { %v1988_v19 = vpop.f32.mrf.mxu2  ;;  %v2001_v20 = vpop.f32.mrf.mxu3  ;;  %v6635_v59 = vor.u32 %v7646_v45, %v6634_v40  ;;  %v6207_v36 = vor.u32 %v7536_v17, %v6204_v18  ;;  %v6191_v40 = vor.u32 %v7532_v30, %v6188_v31  ;;  %v5919_v47 = vor.u32 %v7464_v29, %v5916_v32  ;;  %v7520_v17 = vld [vmem:[#allocation8 + $0x244] sm:$0xf]  ;;  %v6140_v18 = vld [vmem:[#allocation8 + $0x250] sm:$0xf0]  ;;  %v6746_v30 = vld [vmem:[#allocation8 + $0x700] sm:$0xf] }
 0x1ab   :  { %3802 = vmatpush.bf16.msrb.mxu2 %v6715_v52  ;;  %v1989_v21 = vadd.f32 %v1988_v19, %v1976_v16  ;;  %v6079_v16 = vor.u32 %v7504_v35, %v6076_v5  ;;  %v5932_v19 = vld [vmem:[#allocation8 + $0xb0] sm:$0xf0]  ;;  %v6143_v29 = vor.u32 %v7520_v17, %v6140_v18  ;;  %v7674_v31 = vld [vmem:[#allocation8 + $0x70c] sm:$0xf0]  ;;  %v7592_v17 = vld [vmem:[#allocation8 + $0x484] sm:$0xf] }
 0x1ac   :  { %v6428_v18 = vld [vmem:[#allocation8 + $0x490] sm:$0xf0] }
 0x1ad   :  { %3777 = vmatpush.bf16.msrb.mxu0 %v6443_v53  ;;  %3790 = vmatpush.bf16.msrb.mxu1 %v6571_v54  ;;  %v2002_v57 = vadd.f32 %v2001_v20, %v1989_v21  ;;  %v5964_v53 = vld [vmem:[#allocation8 + $0xf0] sm:$0xf0]  ;;  %v7508_v54 = vld [vmem:[#allocation8 + $0x1e4] sm:$0xf] }
 0x1ae   :  { %v7500_v20 = vld [vmem:[#allocation8 + $0x1a4] sm:$0xf]  ;;  %v6060_v21 = vld [vmem:[#allocation8 + $0x1b0] sm:$0xf0] }
 0x1af   :  { %3803 = vmatpush.bf16.msrb.mxu2 %v6699_v62  ;;  %v2165_v56 = vmax.f32 %v2002_v57, 0.0  ;;  %v6842_v62 = vld [vmem:[#allocation8 + $0x7c0] sm:$0xf]  ;;  %v6063_v28 = vor.u32 %v7500_v20, %v6060_v21  ;;  %v6044_v57 = vld [vmem:[#allocation8 + $0x190] sm:$0xf0] }
 0x1b0   :  { %v6843_v14 = vor.u32 %v7698_v1, %v6842_v62  ;;  %v6047_v48 = vor.u32 %v7496_v33, %v6044_v57  ;;  %v6156_v62 = vld [vmem:[#allocation8 + $0x270] sm:$0xf0]  ;;  %v7484_v20 = vld [vmem:[#allocation8 + $0x124] sm:$0xf] }
 0x1b1   :  { %3778 = vmatpush.bf16.msrb.mxu0 %v6427_v4  ;;  %3791 = vmatpush.bf16.msrb.mxu1 %v6555_v39  ;;  %v5967_v4 = vor.u32 %v7476_v50, %v5964_v53  ;;  %v6095_v39 = vor.u32 %v7508_v54, %v6092_v55  ;;  %v8215_v12 = vpack.c.bf16 %v2165_v56, %v2165_v56  ;;  %v7528_v50 = vld [vmem:[#allocation8 + $0x284] sm:$0xf]  ;;  %v6028_v53 = vld [vmem:[#allocation8 + $0x170] sm:$0xf0] }
 0x1b2   :  { %v1990_v51 = vpop.f32.mrf.mxu2  ;;  %v2003_v52 = vpop.f32.mrf.mxu3  ;;  %3815 = vmatpush.bf16.msrb.mxu3 %v6843_v14  ;;  %v6175_v56 = vor.u32 %v7528_v50, %v6172_v58  ;;  %v6762_v14 = vld [vmem:[#allocation8 + $0x720] sm:$0xf]  ;;  %v5996_v21 = vld [vmem:[#allocation8 + $0x130] sm:$0xf0] }
 0x1b3   :  { %3804 = vmatpush.bf16.msrb.mxu2 %v6683_v3  ;;  %v6619_v3 = vor.u32 %v7642_v6, %v6618_v9  ;;  %v5900_v51 = vld [vmem:[#allocation8 + $0x70] sm:$0xf0]  ;;  %v7492_v52 = vld [vmem:[#allocation8 + $0x164] sm:$0xf]  ;;  %v5999_v57 = vor.u32 %v7484_v20, %v5996_v21 }
 0x1b4   :  { %v6031_v61 = vor.u32 %v7492_v52, %v6028_v53  ;;  %v7456_v9 = vld [vmem:[#allocation8 + $0x44] sm:$0xf]  ;;  %v6556_v20 = vld [vmem:[#allocation8 + $0x590] sm:$0xf0] }
 0x1b5   :  { %3779 = vmatpush.bf16.msrb.mxu0 %v6411_v7  ;;  %3792 = vmatpush.bf16.msrb.mxu1 %v6539_v10  ;;  %v6223_v7 = vor.u32 %v7540_v63, %v6220_v0  ;;  %v6826_v10 = vld [vmem:[#allocation8 + $0x7a0] sm:$0xf]  ;;  %v7524_v6 = vld [vmem:[#allocation8 + $0x264] sm:$0xf]  ;;  %v6012_v63 = vld [vmem:[#allocation8 + $0x150] sm:$0xf0] }
 0x1b6   :  { %v6827_v22 = vor.u32 %v7694_v11, %v6826_v10  ;;  %v6159_v5 = vor.u32 %v7524_v6, %v6156_v62  ;;  %v6460_v6 = vld [vmem:[#allocation8 + $0x4d0] sm:$0xf0]  ;;  %v7632_v62 = vld [vmem:[#allocation8 + $0x5c4] sm:$0xf] }
 0x1b7   :  { %3805 = vmatpush.bf16.msrb.mxu2 %v6667_v23  ;;  %v6810_v23 = vld [vmem:[#allocation8 + $0x780] sm:$0xf] }
 0x1b8   :  { %3816 = vmatpush.bf16.msrb.mxu3 %v6827_v22 }
 0x1b9   :  { %3780 = vmatpush.bf16.msrb.mxu0 %v6395_v24  ;;  %3793 = vmatpush.bf16.msrb.mxu1 %v6523_v25  ;;  %v7690_v24 = vld [vmem:[#allocation8 + $0x78c] sm:$0xf0]  ;;  %v5935_v25 = vor.u32 %v7468_v27, %v5932_v19  ;;  %v7452_v27 = vld [vmem:[#allocation8 + $0x24] sm:$0xf]  ;;  %v5868_v19 = vld [vmem:[#allocation8 + $0x30] sm:$0xf0] }
 0x1ba   :  { %v6811_v34 = vor.u32 %v7690_v24, %v6810_v23  ;;  %v7448_v23 = vld [vmem:[#allocation8 + $0x4] sm:$0xf]  ;;  %v5852_v24 = vld [vmem:[#allocation8 + $0x10] sm:$0xf0]  ;;  %v5871_v33 = vor.u32 %v7452_v27, %v5868_v19 }
 0x1bb   :  { %3806 = vmatpush.bf16.msrb.mxu2 %v6651_v38  ;;  %v454_v38 = vperm.slane %v8218_v37, 5  ;;  %v5855_v53 = vor.u32 %v7448_v23, %v5852_v24  ;;  %v7624_v19 = vld [vmem:[#allocation8 + $0x584] sm:$0xf]  ;;  %v6431_v23 = vor.u32 %v7592_v17, %v6428_v18  ;;  %v7479_v17 = vld [vmem:[#allocation8 + $0xf4] sm:$0xf0] }
 0x1bc   :  { %3817 = vmatpush.bf16.msrb.mxu3 %v6811_v34  ;;  %v7516_v34 = vld [vmem:[#allocation8 + $0x224] sm:$0xf]  ;;  %v6559_v24 = vor.u32 %v7624_v19, %v6556_v20  ;;  %v6098_v18 = vld [vmem:[#allocation8 + $0x1e8] sm:$0xf]  ;;  %v7511_v19 = vld [vmem:[#allocation8 + $0x1f4] sm:$0xf0] }
 0x1bd   :  { %3781 = vmatpush.bf16.msrb.mxu0 %v6379_v43  ;;  %3794 = vmatpush.bf16.msrb.mxu1 %v6507_v8  ;;  %v6794_v43 = vld [vmem:[#allocation8 + $0x760] sm:$0xf]  ;;  %v7686_v8 = vld [vmem:[#allocation8 + $0x76c] sm:$0xf0] }
 0x1be   :  { %v6795_v54 = vor.u32 %v7686_v8, %v6794_v43  ;;  %v6747_v43 = vor.u32 %v7674_v31, %v6746_v30  ;;  %v7572_v8 = vld [vmem:[#allocation8 + $0x3e4] sm:$0xf]  ;;  %v6412_v31 = vld [vmem:[#allocation8 + $0x470] sm:$0xf0] }
 0x1bf   :  { %3807 = vmatpush.bf16.msrb.mxu2 %v6635_v59  ;;  %v6778_v59 = vld [vmem:[#allocation8 + $0x740] sm:$0xf] }
 0x1c0   :  { %3818 = vmatpush.bf16.msrb.mxu3 %v6795_v54 }
 0x1c1   :  { %3782 = vmatpush.bf16.msrb.mxu0 %v6363_v60  ;;  %3795 = vmatpush.bf16.msrb.mxu1 %v6491_v26  ;;  %v2014_v45 = vpop.f32.mrf.mxu0  ;;  %v2027_v46 = vpop.f32.mrf.mxu1  ;;  %v7682_v60 = vld [vmem:[#allocation8 + $0x74c] sm:$0xf0]  ;;  %v5903_v26 = vor.u32 %v7460_v49, %v5900_v51  ;;  %v6604_v49 = vld [vmem:[#allocation8 + $0x5f0] sm:$0xf0] }
 0x1c2   :  { %v2015_v55 = vadd.f32 %v2014_v45, %v454_v38  ;;  %v6779_v0 = vor.u32 %v7682_v60, %v6778_v59  ;;  %v6124_v38 = vld [vmem:[#allocation8 + $0x230] sm:$0xf0] }
 0x1c3   :  { %3808 = vmatpush.bf16.msrb.mxu2 %v6619_v3  ;;  %v7678_v3 = vld [vmem:[#allocation8 + $0x72c] sm:$0xf0]  ;;  %v6348_v45 = vld [vmem:[#allocation8 + $0x3f0] sm:$0xf0]  ;;  %v6127_v52 = vor.u32 %v7516_v34, %v6124_v38 }
 0x1c4   :  { %3783 = vmatmul.bf16.vlgmr.msrb.gmra.mxu0 %v8215_v12  ;;  %v2028_v1 = vadd.f32 %v2027_v46, %v2015_v55  ;;  %3819 = vmatpush.bf16.msrb.mxu3 %v6779_v0  ;;  %v6763_v22 = vor.u32 %v7678_v3, %v6762_v14  ;;  %v6351_v50 = vor.u32 %v7572_v8, %v6348_v45  ;;  %v7512_v55 = vld [vmem:[#allocation8 + $0x204] sm:$0xf]  ;;  %v6444_v14 = vld [vmem:[#allocation8 + $0x4b0] sm:$0xf0] }
 0x1c5   :  { %3827 = vmatpush.bf16.msra.mxu0 %v5967_v4  ;;  %3840 = vmatpush.bf16.msra.mxu1 %v6095_v39  ;;  %v5884_v4 = vld [vmem:[#allocation8 + $0x50] sm:$0xf0]  ;;  %v7488_v39 = vld [vmem:[#allocation8 + $0x144] sm:$0xf] }
 0x1c6   :  { %v7564_v0 = vld [vmem:[#allocation8 + $0x3a4] sm:$0xf]  ;;  %v6268_v45 = vld [vmem:[#allocation8 + $0x350] sm:$0xf0] }
 0x1c7   :  { %3853 = vmatpush.bf16.msra.mxu2 %v6223_v7  ;;  %v7628_v3 = vld [vmem:[#allocation8 + $0x5a4] sm:$0xf] }
 0x1c8   :  { %3820 = vmatpush.bf16.msrb.mxu3 %v6763_v22  ;;  %v455_v22 = vperm.slane %v8218_v37, 6  ;;  %v7552_v8 = vld [vmem:[#allocation8 + $0x344] sm:$0xf] }
 0x1c9   :  { %3828 = vmatpush.bf16.msra.mxu0 %v5951_v13  ;;  %3841 = vmatpush.bf16.msra.mxu1 %v6079_v16  ;;  %v2016_v10 = vpop.f32.mrf.mxu0  ;;  %v2029_v11 = vpop.f32.mrf.mxu1  ;;  %v5887_v13 = vor.u32 %v7456_v9, %v5884_v4  ;;  %v6015_v16 = vor.u32 %v7488_v39, %v6012_v63  ;;  %v6332_v9 = vld [vmem:[#allocation8 + $0x3d0] sm:$0xf0] }
 0x1ca   :  { %v2040_v2 = vpop.f32.mrf.mxu2  ;;  %v2053_v35 = vpop.f32.mrf.mxu3  ;;  %v6588_v4 = vld [vmem:[#allocation8 + $0x5d0] sm:$0xf0]  ;;  %v7560_v11 = vld [vmem:[#allocation8 + $0x384] sm:$0xf] }
 0x1cb   :  { %3854 = vmatpush.bf16.msra.mxu2 %v6207_v36  ;;  %v2041_v7 = vadd.f32 %v2040_v2, %v2028_v1  ;;  %v6316_v1 = vld [vmem:[#allocation8 + $0x3b0] sm:$0xf0] }
 0x1cc   :  { %3821 = vmatpush.bf16.msrb.mxu3 %v6747_v43  ;;  %v6319_v10 = vor.u32 %v7564_v0, %v6316_v1  ;;  %v7584_v43 = vld [vmem:[#allocation8 + $0x444] sm:$0xf]  ;;  %v6732_v0 = vld [vmem:[#allocation8 + $0x6f0] sm:$0xf0] }
 0x1cd   :  { %3829 = vmatpush.bf16.msra.mxu0 %v5935_v25  ;;  %3842 = vmatpush.bf16.msra.mxu1 %v6063_v28  ;;  %v2054_v36 = vadd.f32 %v2053_v35, %v2041_v7  ;;  %v7480_v25 = vld [vmem:[#allocation8 + $0x104] sm:$0xf]  ;;  %v5980_v28 = vld [vmem:[#allocation8 + $0x110] sm:$0xf0]  ;;  %v6591_v35 = vor.u32 %v7632_v62, %v6588_v4 }
 0x1ce   :  { %v5983_v54 = vor.u32 %v7480_v25, %v5980_v28  ;;  %v6572_v7 = vld [vmem:[#allocation8 + $0x5b0] sm:$0xf0]  ;;  %v7588_v25 = vld [vmem:[#allocation8 + $0x464] sm:$0xf] }
 0x1cf   :  { %3855 = vmatpush.bf16.msra.mxu2 %v6191_v40  ;;  %v2166_v32 = vmax.f32 %v2054_v36, 0.0  ;;  %v7604_v40 = vld [vmem:[#allocation8 + $0x4e4] sm:$0xf]  ;;  %v6575_v27 = vor.u32 %v7628_v3, %v6572_v7  ;;  %v6284_v28 = vld [vmem:[#allocation8 + $0x370] sm:$0xf0]  ;;  %v6415_v38 = vor.u32 %v7588_v25, %v6412_v31 }
 0x1d0   :  { %3866 = vmatpush.bf16.msra.mxu3 %v6351_v50  ;;  %v7556_v36 = vld [vmem:[#allocation8 + $0x364] sm:$0xf]  ;;  %v6271_v50 = vor.u32 %v7552_v8, %v6268_v45  ;;  %v6508_v62 = vld [vmem:[#allocation8 + $0x530] sm:$0xf0]  ;;  %v5938_v8 = vld [vmem:[#allocation8 + $0xa8] sm:$0xf] }
 0x1d1   :  { %3830 = vmatpush.bf16.msra.mxu0 %v5919_v47  ;;  %3843 = vmatpush.bf16.msra.mxu1 %v6047_v48  ;;  %v8221_v46 = vpack.c.bf16 %v2166_v32, %v2166_v32  ;;  %v6476_v47 = vld [vmem:[#allocation8 + $0x4f0] sm:$0xf0]  ;;  %v7636_v48 = vld [vmem:[#allocation8 + $0x5e4] sm:$0xf] }
 0x1d2   :  { %v2042_v58 = vpop.f32.mrf.mxu2  ;;  %v2055_v51 = vpop.f32.mrf.mxu3  ;;  %v6479_v59 = vor.u32 %v7604_v40, %v6476_v47  ;;  %v6607_v60 = vor.u32 %v7636_v48, %v6604_v49  ;;  %v7620_v32 = vld [vmem:[#allocation8 + $0x564] sm:$0xf]  ;;  %v6396_v47 = vld [vmem:[#allocation8 + $0x450] sm:$0xf0] }
 0x1d3   :  { %3856 = vmatpush.bf16.msra.mxu2 %v6175_v56  ;;  %v6108_v56 = vld [vmem:[#allocation8 + $0x210] sm:$0xf0]  ;;  %3796 = vmatmul.bf16.vlgmr.msrb.gmra.mxu1 %v8221_v46  ;;  %v7616_v48 = vld [vmem:[#allocation8 + $0x544] sm:$0xf] }
 0x1d4   :  { %v6111_v63 = vor.u32 %v7512_v55, %v6108_v56  ;;  %v6524_v49 = vld [vmem:[#allocation8 + $0x550] sm:$0xf0]  ;;  %v7580_v55 = vld [vmem:[#allocation8 + $0x424] sm:$0xf] }
 0x1d5   :  { %3831 = vmatpush.bf16.msra.mxu0 %v5903_v26  ;;  %3844 = vmatpush.bf16.msra.mxu1 %v6031_v61  ;;  %v7600_v26 = vld [vmem:[#allocation8 + $0x4c4] sm:$0xf]  ;;  %v6236_v7 = vld [vmem:[#allocation8 + $0x310] sm:$0xf0] }
 0x1d6   :  { %v7568_v61 = vld [vmem:[#allocation8 + $0x3c4] sm:$0xf]  ;;  %v6463_v2 = vor.u32 %v7600_v26, %v6460_v6 }
 0x1d7   :  { %3857 = vmatpush.bf16.msra.mxu2 %v6159_v5  ;;  %v6335_v39 = vor.u32 %v7568_v61, %v6332_v9  ;;  %v7596_v5 = vld [vmem:[#allocation8 + $0x4a4] sm:$0xf]  ;;  %v6380_v9 = vld [vmem:[#allocation8 + $0x430] sm:$0xf0] }
 0x1d8   :  { %v7548_v56 = vld [vmem:[#allocation8 + $0x324] sm:$0xf] }
 0x1d9   :  { %3832 = vmatpush.bf16.msra.mxu0 %v5887_v13  ;;  %3845 = vmatpush.bf16.msra.mxu1 %v6015_v16  ;;  %v6300_v13 = vld [vmem:[#allocation8 + $0x390] sm:$0xf0]  ;;  %v6447_v16 = vor.u32 %v7596_v5, %v6444_v14  ;;  %v7612_v6 = vld [vmem:[#allocation8 + $0x524] sm:$0xf] }
 0x1da   :  { %3867 = vmatpush.bf16.msra.mxu3 %v6335_v39  ;;  %v6303_v21 = vor.u32 %v7560_v11, %v6300_v13  ;;  %v7668_v39 = vld [vmem:[#allocation8 + $0x6e4] sm:$0xf]  ;;  %v6511_v5 = vor.u32 %v7612_v6, %v6508_v62  ;;  %v6492_v11 = vld [vmem:[#allocation8 + $0x510] sm:$0xf0]  ;;  %v5970_v13 = vld [vmem:[#allocation8 + $0xe8] sm:$0xf] }
 0x1db   :  { %3858 = vmatpush.bf16.msra.mxu2 %v6143_v29  ;;  %v7576_v1 = vld [vmem:[#allocation8 + $0x404] sm:$0xf]  ;;  %v5906_v62 = vld [vmem:[#allocation8 + $0x68] sm:$0xf] }
 0x1dc   :  { %v7608_v14 = vld [vmem:[#allocation8 + $0x504] sm:$0xf] }
 0x1dd   :  { %3833 = vmatpush.bf16.msra.mxu0 %v5871_v33  ;;  %3846 = vmatpush.bf16.msra.mxu1 %v5999_v57  ;;  %v6540_v33 = vld [vmem:[#allocation8 + $0x570] sm:$0xf0]  ;;  %v6287_v57 = vor.u32 %v7556_v36, %v6284_v28  ;;  %v7544_v3 = vld [vmem:[#allocation8 + $0x304] sm:$0xf]  ;;  %v6495_v25 = vor.u32 %v7608_v14, %v6492_v11  ;;  %v5971_v28 = vor.u32 %v7479_v17, %v5970_v13  ;;  %v6018_v11 = vld [vmem:[#allocation8 + $0x148] sm:$0xf] }
 0x1de   :  { %3868 = vmatpush.bf16.msra.mxu3 %v6319_v10  ;;  %v6543_v40 = vor.u32 %v7620_v32, %v6540_v33  ;;  %v7475_v32 = vld [vmem:[#allocation8 + $0xd4] sm:$0xf0]  ;;  %v6082_v33 = vld [vmem:[#allocation8 + $0x1c8] sm:$0xf]  ;;  %v6636_v17 = vld [vmem:[#allocation8 + $0x630] sm:$0xf0] }
 0x1df   :  { %3859 = vmatpush.bf16.msra.mxu2 %v6127_v52  ;;  %v7491_v13 = vld [vmem:[#allocation8 + $0x154] sm:$0xf0] }
 0x1e1   :  { %3834 = vmatpush.bf16.msra.mxu0 %v5855_v53  ;;  %3847 = vmatpush.bf16.msra.mxu1 %v5983_v54  ;;  %v2066_v29 = vpop.f32.mrf.mxu0  ;;  %v2079_v30 = vpop.f32.mrf.mxu1  ;;  %v6399_v53 = vor.u32 %v7584_v43, %v6396_v47  ;;  %v6527_v54 = vor.u32 %v7616_v48, %v6524_v49  ;;  %v7471_v47 = vld [vmem:[#allocation8 + $0xb4] sm:$0xf0]  ;;  %v6066_v48 = vld [vmem:[#allocation8 + $0x1a8] sm:$0xf] }
 0x1e2   :  { %3869 = vmatpush.bf16.msra.mxu3 %v6303_v21  ;;  %v2067_v34 = vadd.f32 %v2066_v29, %v455_v22  ;;  %v7664_v21 = vld [vmem:[#allocation8 + $0x6c4] sm:$0xf]  ;;  %v6716_v22 = vld [vmem:[#allocation8 + $0x6d0] sm:$0xf0]  ;;  %v6099_v29 = vor.u32 %v7511_v19, %v6098_v18  ;;  %v7503_v49 = vld [vmem:[#allocation8 + $0x1b4] sm:$0xf0] }
 0x1e3   :  { %3860 = vmatpush.bf16.msra.mxu2 %v6111_v63  ;;  %v6719_v31 = vor.u32 %v7664_v21, %v6716_v22  ;;  %v6019_v21 = vor.u32 %v7491_v13, %v6018_v11  ;;  %v5874_v22 = vld [vmem:[#allocation8 + $0x28] sm:$0xf]  ;;  %v6828_v11 = vld [vmem:[#allocation8 + $0x7b0] sm:$0xf0] }
 0x1e4   :  { %3835 = vmatmul.bf16.vlgmr.msra.gmra.mxu0 %v8202_v15  ;;  %3848 = vmatmul.bf16.vlgmr.msra.gmra.mxu1 %v8204_v41  ;;  %v2080_v58 = vadd.f32 %v2079_v30, %v2067_v34  ;;  %v5954_v30 = vld [vmem:[#allocation8 + $0xc8] sm:$0xf]  ;;  %v7660_v34 = vld [vmem:[#allocation8 + $0x6a4] sm:$0xf] }
 0x1e5   :  { %3879 = vmatpush.bf16.msrb.mxu0 %v6479_v59  ;;  %3892 = vmatpush.bf16.msrb.mxu1 %v6607_v60  ;;  %v6252_v59 = vld [vmem:[#allocation8 + $0x330] sm:$0xf0]  ;;  %v6194_v13 = vld [vmem:[#allocation8 + $0x2a8] sm:$0xf] }
 0x1e6   :  { %3870 = vmatpush.bf16.msra.mxu3 %v6287_v57  ;;  %v6255_v4 = vor.u32 %v7548_v56, %v6252_v59  ;;  %v7507_v57 = vld [vmem:[#allocation8 + $0x1d4] sm:$0xf0]  ;;  %v6050_v56 = vld [vmem:[#allocation8 + $0x188] sm:$0xf] }
 0x1e7   :  { %v6083_v43 = vor.u32 %v7507_v57, %v6082_v33  ;;  %v7499_v59 = vld [vmem:[#allocation8 + $0x194] sm:$0xf0]  ;;  %v7640_v33 = vld [vmem:[#allocation8 + $0x604] sm:$0xf]  ;;  %v6620_v57 = vld [vmem:[#allocation8 + $0x610] sm:$0xf0] }
 0x1e8   :  { %v6051_v6 = vor.u32 %v7499_v59, %v6050_v56  ;;  %v6610_v59 = vld [vmem:[#allocation8 + $0x5e8] sm:$0xf] }
 0x1e9   :  { %3880 = vmatpush.bf16.msrb.mxu0 %v6463_v2  ;;  %3893 = vmatpush.bf16.msrb.mxu1 %v6591_v35  ;;  %v2068_v26 = vpop.f32.mrf.mxu0  ;;  %v2081_v61 = vpop.f32.mrf.mxu1  ;;  %v6364_v2 = vld [vmem:[#allocation8 + $0x410] sm:$0xf0]  ;;  %v6383_v35 = vor.u32 %v7580_v55, %v6380_v9  ;;  %v7467_v55 = vld [vmem:[#allocation8 + $0x94] sm:$0xf0] }
 0x1ea   :  { %v2092_v51 = vpop.f32.mrf.mxu2  ;;  %v2105_v52 = vpop.f32.mrf.mxu3  ;;  %3871 = vmatpush.bf16.msra.mxu3 %v6271_v50  ;;  %v7656_v50 = vld [vmem:[#allocation8 + $0x684] sm:$0xf]  ;;  %v6668_v26 = vld [vmem:[#allocation8 + $0x670] sm:$0xf0]  ;;  %v456_v61 = vperm.slane %v8218_v37, 7 }
 0x1eb   :  { %v2093_v60 = vadd.f32 %v2092_v51, %v2080_v58  ;;  %v6684_v58 = vld [vmem:[#allocation8 + $0x690] sm:$0xf0]  ;;  %v5939_v51 = vor.u32 %v7471_v47, %v5938_v8  ;;  %v7459_v37 = vld [vmem:[#allocation8 + $0x54] sm:$0xf0] }
 0x1ec   :  { %v7543_v47 = vld [vmem:[#allocation8 + $0x2f4] sm:$0xf0] }
 0x1ed   :  { %3881 = vmatpush.bf16.msrb.mxu0 %v6447_v16  ;;  %3894 = vmatpush.bf16.msrb.mxu1 %v6575_v27  ;;  %v2106_v63 = vadd.f32 %v2105_v52, %v2093_v60  ;;  %v6239_v16 = vor.u32 %v7544_v3, %v6236_v7  ;;  %v6735_v27 = vor.u32 %v7668_v39, %v6732_v0  ;;  %v7652_v60 = vld [vmem:[#allocation8 + $0x664] sm:$0xf]  ;;  %v6034_v39 = vld [vmem:[#allocation8 + $0x168] sm:$0xf] }
 0x1ee   :  { %3872 = vmatpush.bf16.msra.mxu3 %v6255_v4  ;;  %v6067_v52 = vor.u32 %v7503_v49, %v6066_v48  ;;  %v7463_v4 = vld [vmem:[#allocation8 + $0x74] sm:$0xf0]  ;;  %v5858_v48 = vld [vmem:[#allocation8 + $0x8] sm:$0xf] }
 0x1ef   :  { %v2167_v10 = vmax.f32 %v2106_v63, 0.0  ;;  %v7495_v63 = vld [vmem:[#allocation8 + $0x174] sm:$0xf0]  ;;  %v5907_v3 = vor.u32 %v7463_v4, %v5906_v62  ;;  %v6844_v62 = vld [vmem:[#allocation8 + $0x7d0] sm:$0xf0] }
 0x1f0   :  { %v6035_v7 = vor.u32 %v7495_v63, %v6034_v39  ;;  %v7451_v49 = vld [vmem:[#allocation8 + $0x14] sm:$0xf0]  ;;  %v6210_v4 = vld [vmem:[#allocation8 + $0x2c8] sm:$0xf] }
 0x1f1   :  { %3882 = vmatpush.bf16.msrb.mxu0 %v6431_v23  ;;  %3895 = vmatpush.bf16.msrb.mxu1 %v6559_v24  ;;  %v8227_v20 = vpack.c.bf16 %v2167_v10, %v2167_v10  ;;  %v6367_v24 = vor.u32 %v7576_v1, %v6364_v2  ;;  %v6671_v2 = vor.u32 %v7652_v60, %v6668_v26  ;;  %v5890_v10 = vld [vmem:[#allocation8 + $0x48] sm:$0xf]  ;;  %v7639_v60 = vld [vmem:[#allocation8 + $0x5f4] sm:$0xf0]  ;;  %v7696_v26 = vld [vmem:[#allocation8 + $0x7c4] sm:$0xf] }
 0x1f2   :  { %v2094_v36 = vpop.f32.mrf.mxu2  ;;  %v2107_v23 = vpop.f32.mrf.mxu3  ;;  %3873 = vmatpush.bf16.msra.mxu3 %v6239_v16  ;;  %v5891_v19 = vor.u32 %v7459_v37, %v5890_v10  ;;  %v7539_v39 = vld [vmem:[#allocation8 + $0x2d4] sm:$0xf0]  ;;  %v7692_v37 = vld [vmem:[#allocation8 + $0x7a4] sm:$0xf] }
 0x1f3   :  { %3809 = vmatmul.bf16.vlgmr.msrb.gmra.mxu2 %v8227_v20  ;;  %v7635_v10 = vld [vmem:[#allocation8 + $0x5d4] sm:$0xf0] }
 0x1f4   :  { %3905 = vmatpush.bf16.msrb.mxu2 %v6735_v27  ;;  %v7644_v27 = vld [vmem:[#allocation8 + $0x624] sm:$0xf] }
 0x1f5   :  { %3883 = vmatpush.bf16.msrb.mxu0 %v6415_v38  ;;  %3896 = vmatpush.bf16.msrb.mxu1 %v6543_v40  ;;  %v6700_v38 = vld [vmem:[#allocation8 + $0x6b0] sm:$0xf0]  ;;  %v5955_v40 = vor.u32 %v7475_v32, %v5954_v30  ;;  %v6639_v32 = vor.u32 %v7644_v27, %v6636_v17 }
 0x1f6   :  { %v6703_v45 = vor.u32 %v7660_v34, %v6700_v38  ;;  %v7700_v34 = vld [vmem:[#allocation8 + $0x7e4] sm:$0xf]  ;;  %v6860_v38 = vld [vmem:[#allocation8 + $0x7f0] sm:$0xf0] }
 0x1f8   :  { %3906 = vmatpush.bf16.msrb.mxu2 %v6719_v31 }
 0x1f9   :  { %3884 = vmatpush.bf16.msrb.mxu0 %v6399_v53  ;;  %3897 = vmatpush.bf16.msrb.mxu1 %v6527_v54  ;;  %v5922_v53 = vld [vmem:[#allocation8 + $0x88] sm:$0xf]  ;;  %v6687_v54 = vor.u32 %v7656_v50, %v6684_v58  ;;  %v7483_v58 = vld [vmem:[#allocation8 + $0x114] sm:$0xf0] }
 0x1fa   :  { %v5923_v9 = vor.u32 %v7467_v55, %v5922_v53  ;;  %v5986_v50 = vld [vmem:[#allocation8 + $0x108] sm:$0xf]  ;;  %v6863_v55 = vor.u32 %v7700_v34, %v6860_v38  ;;  %v7595_v34 = vld [vmem:[#allocation8 + $0x494] sm:$0xf0] }
 0x1fb   :  { %v6482_v53 = vld [vmem:[#allocation8 + $0x4e8] sm:$0xf] }
 0x1fc   :  { %3907 = vmatpush.bf16.msrb.mxu2 %v6703_v45  ;;  %v6226_v45 = vld [vmem:[#allocation8 + $0x2e8] sm:$0xf] }
 0x1fd   :  { %3885 = vmatpush.bf16.msrb.mxu0 %v6383_v35  ;;  %3898 = vmatpush.bf16.msrb.mxu1 %v6511_v5  ;;  %v7648_v35 = vld [vmem:[#allocation8 + $0x644] sm:$0xf]  ;;  %v6652_v5 = vld [vmem:[#allocation8 + $0x650] sm:$0xf0]  ;;  %v6227_v56 = vor.u32 %v7543_v47, %v6226_v45 }
 0x1fe   :  { %v6655_v16 = vor.u32 %v7648_v35, %v6652_v5  ;;  %v6466_v35 = vld [vmem:[#allocation8 + $0x4c8] sm:$0xf]  ;;  %v7603_v5 = vld [vmem:[#allocation8 + $0x4d4] sm:$0xf0]  ;;  %v7684_v45 = vld [vmem:[#allocation8 + $0x764] sm:$0xf] }
 0x1ff   :  { %v6467_v27 = vor.u32 %v7603_v5, %v6466_v35  ;;  %v6796_v47 = vld [vmem:[#allocation8 + $0x770] sm:$0xf0] }
 0x200   :  { %3908 = vmatpush.bf16.msrb.mxu2 %v6687_v54  ;;  %v7607_v54 = vld [vmem:[#allocation8 + $0x4f4] sm:$0xf0] }
 0x201   :  { %3886 = vmatpush.bf16.msrb.mxu0 %v6367_v24  ;;  %3899 = vmatpush.bf16.msrb.mxu1 %v6495_v25  ;;  %v2118_v0 = vpop.f32.mrf.mxu0  ;;  %v2131_v1 = vpop.f32.mrf.mxu1  ;;  %v7455_v24 = vld [vmem:[#allocation8 + $0x34] sm:$0xf0]  ;;  %v6002_v25 = vld [vmem:[#allocation8 + $0x128] sm:$0xf] }
 0x202   :  { %v2119_v14 = vadd.f32 %v2118_v0, %v456_v61 }
 0x203   :  { %3861 = vmatmul.bf16.vlgmr.msra.gmra.mxu2 %v8206_v42 }
 0x204   :  { %3887 = vmatmul.bf16.vlgmr.msrb.gmra.mxu0 %v8215_v12  ;;  %3900 = vmatmul.bf16.vlgmr.msrb.gmra.mxu1 %v8221_v46  ;;  %v2132_v18 = vadd.f32 %v2131_v1, %v2119_v14  ;;  %v6483_v1 = vor.u32 %v7607_v54, %v6482_v53  ;;  %v6847_v14 = vor.u32 %v7696_v26, %v6844_v62  ;;  %v7680_v26 = vld [vmem:[#allocation8 + $0x744] sm:$0xf]  ;;  %v6146_v62 = vld [vmem:[#allocation8 + $0x248] sm:$0xf] }
 0x205   :  { %3931 = vmatpush.bf16.msra.mxu0 %v5971_v28  ;;  %3944 = vmatpush.bf16.msra.mxu1 %v6099_v29  ;;  %v7487_v28 = vld [vmem:[#allocation8 + $0x134] sm:$0xf0] }
 0x206   :  { %3909 = vmatpush.bf16.msrb.mxu2 %v6671_v2  ;;  %v6003_v8 = vor.u32 %v7487_v28, %v6002_v25  ;;  %v6611_v2 = vor.u32 %v7639_v60, %v6610_v59  ;;  %v8238_v25 = vld [vmem:[#allocation10] sm:$0xf]  ;;  %v6812_v28 = vld [vmem:[#allocation8 + $0x790] sm:$0xf0]  ;;  %v6546_v59 = vld [vmem:[#allocation8 + $0x568] sm:$0xf] }
 0x207   :  { %v7623_v60 = vld [vmem:[#allocation8 + $0x574] sm:$0xf0] }
 0x209   :  { %3932 = vmatpush.bf16.msra.mxu0 %v5955_v40  ;;  %3945 = vmatpush.bf16.msra.mxu1 %v6083_v43  ;;  %v2157_v23 = vpop.f32.mrf.mxu3  ;;  %v2120_v30 = vpop.f32.mrf.mxu0  ;;  %v5875_v43 = vor.u32 %v7455_v24, %v5874_v22  ;;  %v6831_v22 = vor.u32 %v7692_v37, %v6828_v11  ;;  %v7688_v24 = vld [vmem:[#allocation8 + $0x784] sm:$0xf]  ;;  %v6130_v37 = vld [vmem:[#allocation8 + $0x228] sm:$0xf]  ;;  %v7519_v11 = vld [vmem:[#allocation8 + $0x234] sm:$0xf0] }
 0x20a   :  { %v2144_v36 = vpop.f32.mrf.mxu2  ;;  %3910 = vmatpush.bf16.msrb.mxu2 %v6655_v16  ;;  %v2133_v31 = vpop.f32.mrf.mxu1  ;;  %v7535_v16 = vld [vmem:[#allocation8 + $0x2b4] sm:$0xf0]  ;;  %v6815_v38 = vor.u32 %v7688_v24, %v6812_v28  ;;  %v6131_v28 = vor.u32 %v7519_v11, %v6130_v37  ;;  %v6706_v11 = vld [vmem:[#allocation8 + $0x6a8] sm:$0xf] }
 0x20b   :  { %v2145_v29 = vadd.f32 %v2144_v36, %v2132_v18  ;;  %v6450_v18 = vld [vmem:[#allocation8 + $0x4a8] sm:$0xf]  ;;  %v6195_v36 = vor.u32 %v7535_v16, %v6194_v13  ;;  %v7531_v30 = vld [vmem:[#allocation8 + $0x294] sm:$0xf0] }
 0x20c   :  { %v7567_v37 = vld [vmem:[#allocation8 + $0x3b4] sm:$0xf0] }
 0x20d   :  { %3933 = vmatpush.bf16.msra.mxu0 %v5939_v51  ;;  %3946 = vmatpush.bf16.msra.mxu1 %v6067_v52  ;;  %v2158_v40 = vadd.f32 %v2157_v23, %v2145_v29  ;;  %v6623_v52 = vor.u32 %v7640_v33, %v6620_v57  ;;  %v7631_v23 = vld [vmem:[#allocation8 + $0x5b4] sm:$0xf0]  ;;  %v6178_v29 = vld [vmem:[#allocation8 + $0x288] sm:$0xf]  ;;  %v2435_v33 = vperm.slane %v8238_v25, 0 }
 0x20e   :  { %3911 = vmatpush.bf16.msrb.mxu2 %v6639_v32  ;;  %v6434_v57 = vld [vmem:[#allocation8 + $0x488] sm:$0xf] }
 0x20f   :  { %v2168_v51 = vmax.f32 %v2158_v40, 0.0  ;;  %v6179_v40 = vor.u32 %v7531_v30, %v6178_v29  ;;  %v7615_v29 = vld [vmem:[#allocation8 + $0x534] sm:$0xf0]  ;;  %v7672_v30 = vld [vmem:[#allocation8 + $0x704] sm:$0xf] }
 0x211   :  { %3934 = vmatpush.bf16.msra.mxu0 %v5923_v9  ;;  %3947 = vmatpush.bf16.msra.mxu1 %v6051_v6  ;;  %v8234_v61 = vpack.c.bf16 %v2168_v51, %v2168_v51  ;;  %v5859_v9 = vor.u32 %v7451_v49, %v5858_v48  ;;  %v5987_v6 = vor.u32 %v7483_v58, %v5986_v50  ;;  %v2159_v0 = vpop.f32.mrf.mxu3  ;;  %v6162_v48 = vld [vmem:[#allocation8 + $0x268] sm:$0xf]  ;;  %v7527_v49 = vld [vmem:[#allocation8 + $0x274] sm:$0xf0] }
 0x212   :  { %v2146_v63 = vpop.f32.mrf.mxu2  ;;  %3912 = vmatpush.bf16.msrb.mxu2 %v6623_v52  ;;  %v6435_v50 = vor.u32 %v7595_v34, %v6434_v57  ;;  %v6418_v51 = vld [vmem:[#allocation8 + $0x468] sm:$0xf]  ;;  %v7591_v52 = vld [vmem:[#allocation8 + $0x474] sm:$0xf0]  ;;  %v6547_v0 = vor.u32 %v7623_v60, %v6546_v59  ;;  %v6100_v60 = vld [vmem:[#allocation8 + $0x1f8] sm:$0xf0] }
 0x213   :  { %3822 = vmatmul.bf16.vlgmr.msrb.gmra.mxu3 %v8234_v61  ;;  %v6354_v57 = vld [vmem:[#allocation8 + $0x3e8] sm:$0xf] }
 0x214   :  { %3918 = vmatpush.bf16.msrb.mxu3 %v6863_v55  ;;  %v6799_v55 = vor.u32 %v7684_v45, %v6796_v47  ;;  %v6370_v47 = vld [vmem:[#allocation8 + $0x408] sm:$0xf] }
 0x215   :  { %3935 = vmatpush.bf16.msra.mxu0 %v5907_v3  ;;  %3948 = vmatpush.bf16.msra.mxu1 %v6035_v7  ;;  %v6211_v3 = vor.u32 %v7539_v39, %v6210_v4  ;;  %v6594_v7 = vld [vmem:[#allocation8 + $0x5c8] sm:$0xf]  ;;  %v7523_v4 = vld [vmem:[#allocation8 + $0x254] sm:$0xf0]  ;;  %v6419_v39 = vor.u32 %v7591_v52, %v6418_v51 }
 0x216   :  { %3957 = vmatpush.bf16.msra.mxu2 %v6227_v56  ;;  %v6595_v17 = vor.u32 %v7635_v10, %v6594_v7  ;;  %v6163_v56 = vor.u32 %v7527_v49, %v6162_v48  ;;  %v6147_v5 = vor.u32 %v7523_v4, %v6146_v62  ;;  %v7676_v7 = vld [vmem:[#allocation8 + $0x724] sm:$0xf]  ;;  %v6764_v10 = vld [vmem:[#allocation8 + $0x730] sm:$0xf0]  ;;  %v7579_v48 = vld [vmem:[#allocation8 + $0x414] sm:$0xf0] }
 0x217   :  { %3913 = vmatmul.bf16.vlgmr.msrb.gmra.mxu2 %v8227_v20  ;;  %v6767_v24 = vor.u32 %v7676_v7, %v6764_v10  ;;  %v7611_v51 = vld [vmem:[#allocation8 + $0x514] sm:$0xf0]  ;;  %v6371_v59 = vor.u32 %v7579_v48, %v6370_v47  ;;  %v6084_v7 = vld [vmem:[#allocation8 + $0x1d8] sm:$0xf0]  ;;  %v6322_v10 = vld [vmem:[#allocation8 + $0x3a8] sm:$0xf] }
 0x218   :  { %3919 = vmatpush.bf16.msrb.mxu3 %v6847_v14  ;;  %v6530_v14 = vld [vmem:[#allocation8 + $0x548] sm:$0xf]  ;;  %v7655_v48 = vld [vmem:[#allocation8 + $0x674] sm:$0xf0] }
 0x219   :  { %3936 = vmatpush.bf16.msra.mxu0 %v5891_v19  ;;  %3949 = vmatpush.bf16.msra.mxu1 %v6019_v21  ;;  %v7599_v19 = vld [vmem:[#allocation8 + $0x4b4] sm:$0xf0]  ;;  %v6578_v21 = vld [vmem:[#allocation8 + $0x5a8] sm:$0xf] }
 0x21a   :  { %3958 = vmatpush.bf16.msra.mxu2 %v6211_v3  ;;  %v6451_v31 = vor.u32 %v7599_v19, %v6450_v18  ;;  %v6579_v32 = vor.u32 %v7631_v23, %v6578_v21  ;;  %v7619_v3 = vld [vmem:[#allocation8 + $0x554] sm:$0xf0]  ;;  %v6386_v18 = vld [vmem:[#allocation8 + $0x428] sm:$0xf] }
 0x21b   :  { %v7583_v19 = vld [vmem:[#allocation8 + $0x434] sm:$0xf0]  ;;  %v6514_v21 = vld [vmem:[#allocation8 + $0x528] sm:$0xf] }
 0x21c   :  { %3920 = vmatpush.bf16.msrb.mxu3 %v6831_v22  ;;  %v6515_v45 = vor.u32 %v7615_v29, %v6514_v21  ;;  %v7501_v21 = vld [vmem:[#allocation8 + $0x1ac] sm:$0xf]  ;;  %v7659_v29 = vld [vmem:[#allocation8 + $0x694] sm:$0xf0]  ;;  %v6674_v47 = vld [vmem:[#allocation8 + $0x668] sm:$0xf] }
 0x21d   :  { %3937 = vmatpush.bf16.msra.mxu0 %v5875_v43  ;;  %3950 = vmatpush.bf16.msra.mxu1 %v6003_v8  ;;  %v6562_v43 = vld [vmem:[#allocation8 + $0x588] sm:$0xf]  ;;  %v7627_v8 = vld [vmem:[#allocation8 + $0x594] sm:$0xf0] }
 0x21e   :  { %3959 = vmatpush.bf16.msra.mxu2 %v6195_v36  ;;  %v6563_v58 = vor.u32 %v7627_v8, %v6562_v43  ;;  %v6738_v43 = vld [vmem:[#allocation8 + $0x6e8] sm:$0xf]  ;;  %v7671_v8 = vld [vmem:[#allocation8 + $0x6f4] sm:$0xf0] }
 0x220   :  { %3921 = vmatpush.bf16.msrb.mxu3 %v6815_v38  ;;  %v6387_v38 = vor.u32 %v7583_v19, %v6386_v18  ;;  %v7469_v18 = vld [vmem:[#allocation8 + $0xac] sm:$0xf]  ;;  %v5940_v19 = vld [vmem:[#allocation8 + $0xb8] sm:$0xf0] }
 0x221   :  { %3938 = vmatpush.bf16.msra.mxu0 %v5859_v9  ;;  %3951 = vmatpush.bf16.msra.mxu1 %v5987_v6  ;;  %v3732_v53 = vpop.f32.mrf.mxu0  ;;  %v3745_v54 = vpop.f32.mrf.mxu1  ;;  %v6780_v6 = vld [vmem:[#allocation8 + $0x750] sm:$0xf0] }
 0x222   :  { %3960 = vmatpush.bf16.msra.mxu2 %v6179_v40  ;;  %v3733_v9 = vadd.f32 %v3732_v53, %v2435_v33  ;;  %v6783_v35 = vor.u32 %v7680_v26, %v6780_v6  ;;  %v7515_v33 = vld [vmem:[#allocation8 + $0x214] sm:$0xf0]  ;;  %v6739_v53 = vor.u32 %v7671_v8, %v6738_v43  ;;  %v6338_v26 = vld [vmem:[#allocation8 + $0x3c8] sm:$0xf]  ;;  %v6052_v43 = vld [vmem:[#allocation8 + $0x198] sm:$0xf0] }
 0x223   :  { %3874 = vmatmul.bf16.vlgmr.msra.gmra.mxu3 %v8208_v44  ;;  %v7575_v40 = vld [vmem:[#allocation8 + $0x3f4] sm:$0xf0]  ;;  %v6290_v8 = vld [vmem:[#allocation8 + $0x368] sm:$0xf] }
 0x224   :  { %3939 = vmatmul.bf16.vlgmr.msra.gmra.mxu0 %v8202_v15  ;;  %3952 = vmatmul.bf16.vlgmr.msra.gmra.mxu1 %v8204_v41  ;;  %v3746_v63 = vadd.f32 %v3745_v54, %v3733_v9  ;;  %v6355_v52 = vor.u32 %v7575_v40, %v6354_v57  ;;  %v7477_v54 = vld [vmem:[#allocation8 + $0xec] sm:$0xf]  ;;  %v7571_v9 = vld [vmem:[#allocation8 + $0x3d4] sm:$0xf0]  ;;  %v5924_v57 = vld [vmem:[#allocation8 + $0x98] sm:$0xf0] }
 0x225   :  { %3983 = vmatpush.bf16.msrb.mxu0 %v6483_v1  ;;  %3996 = vmatpush.bf16.msrb.mxu1 %v6611_v2  ;;  %v6402_v1 = vld [vmem:[#allocation8 + $0x448] sm:$0xf]  ;;  %v7587_v2 = vld [vmem:[#allocation8 + $0x454] sm:$0xf0] }
 0x226   :  { %3922 = vmatpush.bf16.msrb.mxu3 %v6799_v55  ;;  %3961 = vmatpush.bf16.msra.mxu2 %v6163_v56  ;;  %v6403_v13 = vor.u32 %v7587_v2, %v6402_v1  ;;  %v5972_v55 = vld [vmem:[#allocation8 + $0xf8] sm:$0xf0]  ;;  %v7509_v56 = vld [vmem:[#allocation8 + $0x1ec] sm:$0xf]  ;;  %v6339_v2 = vor.u32 %v7571_v9, %v6338_v26  ;;  %v6658_v9 = vld [vmem:[#allocation8 + $0x648] sm:$0xf] }
 0x227   :  { %v6103_v1 = vor.u32 %v7509_v56, %v6100_v60  ;;  %v6036_v56 = vld [vmem:[#allocation8 + $0x178] sm:$0xf0]  ;;  %v7555_v60 = vld [vmem:[#allocation8 + $0x354] sm:$0xf0] }
 0x229   :  { %3984 = vmatpush.bf16.msrb.mxu0 %v6467_v27  ;;  %3997 = vmatpush.bf16.msrb.mxu1 %v6595_v17  ;;  %v3758_v16 = vpop.f32.mrf.mxu2  ;;  %v3771_v27 = vpop.f32.mrf.mxu3  ;;  %v6531_v17 = vor.u32 %v7619_v3, %v6530_v14  ;;  %v7505_v14 = vld [vmem:[#allocation8 + $0x1cc] sm:$0xf] }
 0x22a   :  { %v3759_v22 = vadd.f32 %v3758_v16, %v3746_v63  ;;  %3923 = vmatpush.bf16.msrb.mxu3 %v6783_v35  ;;  %3962 = vmatpush.bf16.msra.mxu2 %v6147_v5  ;;  %v3734_v36 = vpop.f32.mrf.mxu0  ;;  %v3747_v23 = vpop.f32.mrf.mxu1  ;;  %v7667_v63 = vld [vmem:[#allocation8 + $0x6d4] sm:$0xf0]  ;;  %v7473_v35 = vld [vmem:[#allocation8 + $0xcc] sm:$0xf]  ;;  %v5956_v5 = vld [vmem:[#allocation8 + $0xd8] sm:$0xf0] }
 0x22b   :  { %v5959_v16 = vor.u32 %v7473_v35, %v5956_v5  ;;  %v6068_v36 = vld [vmem:[#allocation8 + $0x1b8] sm:$0xf0]  ;;  %v6306_v23 = vld [vmem:[#allocation8 + $0x388] sm:$0xf] }
 0x22c   :  { %v8244_v34 = vadd.f32 %v3771_v27, %v3759_v22  ;;  %v6087_v27 = vor.u32 %v7505_v14, %v6084_v7  ;;  %v6020_v35 = vld [vmem:[#allocation8 + $0x158] sm:$0xf0]  ;;  %v6258_v5 = vld [vmem:[#allocation8 + $0x328] sm:$0xf]  ;;  %v7551_v14 = vld [vmem:[#allocation8 + $0x334] sm:$0xf0] }
 0x22d   :  { %3985 = vmatpush.bf16.msrb.mxu0 %v6451_v31  ;;  %3998 = vmatpush.bf16.msrb.mxu1 %v6579_v32  ;;  %v6748_v31 = vld [vmem:[#allocation8 + $0x710] sm:$0xf0]  ;;  %v6114_v32 = vld [vmem:[#allocation8 + $0x208] sm:$0xf]  ;;  %v7647_v7 = vld [vmem:[#allocation8 + $0x634] sm:$0xf0] }
 0x22e   :  { %3924 = vmatpush.bf16.msrb.mxu3 %v6767_v24  ;;  %3963 = vmatpush.bf16.msra.mxu2 %v6131_v28  ;;  %v6751_v49 = vor.u32 %v7672_v30, %v6748_v31  ;;  %v7563_v24 = vld [vmem:[#allocation8 + $0x394] sm:$0xf0]  ;;  %v6690_v28 = vld [vmem:[#allocation8 + $0x688] sm:$0xf]  ;;  %v5943_v30 = vor.u32 %v7469_v18, %v5940_v19  ;;  %v6071_v31 = vor.u32 %v7501_v21, %v6068_v36 }
 0x22f   :  { %v6691_v40 = vor.u32 %v7659_v29, %v6690_v28  ;;  %v6242_v19 = vld [vmem:[#allocation8 + $0x308] sm:$0xf]  ;;  %v7547_v21 = vld [vmem:[#allocation8 + $0x314] sm:$0xf0]  ;;  %v7541_v29 = vld [vmem:[#allocation8 + $0x2ec] sm:$0xf] }
 0x230   :  { %v7643_v36 = vld [vmem:[#allocation8 + $0x614] sm:$0xf0] }
 0x231   :  { %3986 = vmatpush.bf16.msrb.mxu0 %v6435_v50  ;;  %3999 = vmatpush.bf16.msrb.mxu1 %v6563_v58  ;;  %v6115_v50 = vor.u32 %v7515_v33, %v6114_v32  ;;  %v6498_v58 = vld [vmem:[#allocation8 + $0x508] sm:$0xf]  ;;  %v3760_v6 = vpop.f32.mrf.mxu2  ;;  %v3773_v62 = vpop.f32.mrf.mxu3  ;;  %v6307_v32 = vor.u32 %v7563_v24, %v6306_v23  ;;  %v7465_v33 = vld [vmem:[#allocation8 + $0x8c] sm:$0xf]  ;;  %v7703_v24 = vld [vmem:[#allocation8 + $0x7f4] sm:$0xf0] }
 0x232   :  { %v6499_v4 = vor.u32 %v7611_v51, %v6498_v58  ;;  %3925 = vmatpush.bf16.msrb.mxu3 %v6751_v49  ;;  %v5927_v49 = vor.u32 %v7465_v33, %v5924_v57  ;;  %v7461_v51 = vld [vmem:[#allocation8 + $0x6c] sm:$0xf]  ;;  %v7651_v6 = vld [vmem:[#allocation8 + $0x654] sm:$0xf0]  ;;  %v6866_v23 = vld [vmem:[#allocation8 + $0x7e8] sm:$0xf] }
 0x233   :  { %3964 = vmatpush.bf16.msra.mxu2 %v6115_v50  ;;  %v7449_v33 = vld [vmem:[#allocation8 + $0xc] sm:$0xf]  ;;  %v5860_v57 = vld [vmem:[#allocation8 + $0x18] sm:$0xf0] }
 0x235   :  { %3987 = vmatpush.bf16.msrb.mxu0 %v6419_v39  ;;  %4000 = vmatpush.bf16.msrb.mxu1 %v6547_v0  ;;  %v6722_v39 = vld [vmem:[#allocation8 + $0x6c8] sm:$0xf]  ;;  %v5975_v0 = vor.u32 %v7477_v54, %v5972_v55  ;;  %v6675_v55 = vor.u32 %v7655_v48, %v6674_v47  ;;  %v6484_v47 = vld [vmem:[#allocation8 + $0x4f8] sm:$0xf0] }
 0x236   :  { %3970 = vmatpush.bf16.msra.mxu3 %v6355_v52  ;;  %v6723_v3 = vor.u32 %v7667_v63, %v6722_v39  ;;  %3965 = vmatmul.bf16.vlgmr.msra.gmra.mxu2 %v8206_v42  ;;  %v5908_v52 = vld [vmem:[#allocation8 + $0x78] sm:$0xf0]  ;;  %v7457_v63 = vld [vmem:[#allocation8 + $0x4c] sm:$0xf] }
 0x237   :  { %4009 = vmatpush.bf16.msrb.mxu2 %v6739_v53  ;;  %3926 = vmatmul.bf16.vlgmr.msrb.gmra.mxu3 %v8234_v61  ;;  %v7493_v53 = vld [vmem:[#allocation8 + $0x16c] sm:$0xf]  ;;  %v5911_v62 = vor.u32 %v7461_v51, %v5908_v52  ;;  %v5863_v51 = vor.u32 %v7449_v33, %v5860_v57  ;;  %v7699_v52 = vld [vmem:[#allocation8 + $0x7d4] sm:$0xf0]  ;;  %v6420_v57 = vld [vmem:[#allocation8 + $0x478] sm:$0xf0] }
 0x238   :  { %v7589_v33 = vld [vmem:[#allocation8 + $0x46c] sm:$0xf] }
 0x239   :  { %3988 = vmatpush.bf16.msrb.mxu0 %v6403_v13  ;;  %4001 = vmatpush.bf16.msrb.mxu1 %v6531_v17  ;;  %v7663_v13 = vld [vmem:[#allocation8 + $0x6b4] sm:$0xf0]  ;;  %v6323_v17 = vor.u32 %v7567_v37, %v6322_v10  ;;  %v7453_v10 = vld [vmem:[#allocation8 + $0x2c] sm:$0xf] }
 0x23a   :  { %3971 = vmatpush.bf16.msra.mxu3 %v6339_v2  ;;  %v6707_v22 = vor.u32 %v7663_v13, %v6706_v11  ;;  %v6659_v2 = vor.u32 %v7651_v6, %v6658_v9  ;;  %v6259_v11 = vor.u32 %v7551_v14, %v6258_v5  ;;  %v5876_v13 = vld [vmem:[#allocation8 + $0x38] sm:$0xf0]  ;;  %v7597_v14 = vld [vmem:[#allocation8 + $0x4ac] sm:$0xf] }
 0x23b   :  { %4010 = vmatpush.bf16.msrb.mxu2 %v6723_v3  ;;  %v6642_v3 = vld [vmem:[#allocation8 + $0x628] sm:$0xf]  ;;  %v5879_v28 = vor.u32 %v7453_v10, %v5876_v13  ;;  %v6468_v9 = vld [vmem:[#allocation8 + $0x4d8] sm:$0xf0]  ;;  %v7629_v10 = vld [vmem:[#allocation8 + $0x5ac] sm:$0xf] }
 0x23c   :  { %v6643_v18 = vor.u32 %v7647_v7, %v6642_v3  ;;  %v6452_v3 = vld [vmem:[#allocation8 + $0x4b8] sm:$0xf0]  ;;  %v7691_v13 = vld [vmem:[#allocation8 + $0x794] sm:$0xf0] }
 0x23d   :  { %3989 = vmatpush.bf16.msrb.mxu0 %v6387_v38  ;;  %4002 = vmatpush.bf16.msrb.mxu1 %v6515_v45  ;;  %v7497_v38 = vld [vmem:[#allocation8 + $0x18c] sm:$0xf]  ;;  %v7559_v45 = vld [vmem:[#allocation8 + $0x374] sm:$0xf0] }
 0x23e   :  { %3972 = vmatpush.bf16.msra.mxu3 %v6323_v17  ;;  %v6055_v50 = vor.u32 %v7497_v38, %v6052_v43  ;;  %v6291_v58 = vor.u32 %v7559_v45, %v6290_v8  ;;  %v7481_v38 = vld [vmem:[#allocation8 + $0x10c] sm:$0xf]  ;;  %v6867_v43 = vor.u32 %v7703_v24, %v6866_v23  ;;  %v5988_v8 = vld [vmem:[#allocation8 + $0x118] sm:$0xf0] }
 0x23f   :  { %4011 = vmatpush.bf16.msrb.mxu2 %v6707_v22  ;;  %v6626_v22 = vld [vmem:[#allocation8 + $0x608] sm:$0xf]  ;;  %v7605_v45 = vld [vmem:[#allocation8 + $0x4ec] sm:$0xf] }
 0x240   :  { %v7625_v24 = vld [vmem:[#allocation8 + $0x58c] sm:$0xf] }
 0x241   :  { %3990 = vmatpush.bf16.msrb.mxu0 %v6371_v59  ;;  %4003 = vmatpush.bf16.msrb.mxu1 %v6499_v4  ;;  %v3784_v54 = vpop.f32.mrf.mxu0  ;;  %v6274_v59 = vld [vmem:[#allocation8 + $0x348] sm:$0xf]  ;;  %v6039_v4 = vor.u32 %v7493_v53, %v6036_v56  ;;  %v7537_v53 = vld [vmem:[#allocation8 + $0x2cc] sm:$0xf]  ;;  %v6487_v56 = vor.u32 %v7605_v45, %v6484_v47  ;;  %v6548_v45 = vld [vmem:[#allocation8 + $0x578] sm:$0xf0] }
 0x242   :  { %3973 = vmatpush.bf16.msra.mxu3 %v6307_v32  ;;  %v8251_v26 = vadd.f32 %v3784_v54, %v8244_v34  ;;  %v6275_v39 = vor.u32 %v7555_v60, %v6274_v59  ;;  %v6243_v32 = vor.u32 %v7547_v21, %v6242_v19  ;;  %v6212_v54 = vld [vmem:[#allocation8 + $0x2d8] sm:$0xf0]  ;;  %v7601_v60 = vld [vmem:[#allocation8 + $0x4cc] sm:$0xf]  ;;  %v6786_v47 = vld [vmem:[#allocation8 + $0x748] sm:$0xf] }
 0x243   :  { %4012 = vmatpush.bf16.msrb.mxu2 %v6691_v40  ;;  %v6627_v40 = vor.u32 %v7643_v36, %v6626_v22  ;;  %v7593_v21 = vld [vmem:[#allocation8 + $0x48c] sm:$0xf]  ;;  %v6436_v22 = vld [vmem:[#allocation8 + $0x498] sm:$0xf0] }
 0x244   :  { %3991 = vmatmul.bf16.vlgmr.msrb.gmra.mxu0 %v8215_v12  ;;  %4004 = vmatmul.bf16.vlgmr.msrb.gmra.mxu1 %v8221_v46 }
 0x245   :  { %4035 = vmatpush.bf16.msra.mxu0 %v5975_v0  ;;  %4048 = vmatpush.bf16.msra.mxu1 %v6103_v1  ;;  %v5892_v0 = vld [vmem:[#allocation8 + $0x58] sm:$0xf0]  ;;  %v7489_v1 = vld [vmem:[#allocation8 + $0x14c] sm:$0xf] }
 0x246   :  { %3974 = vmatpush.bf16.msra.mxu3 %v6291_v58  ;;  %v5895_v34 = vor.u32 %v7457_v63, %v5892_v0  ;;  %v6023_v37 = vor.u32 %v7489_v1, %v6020_v35  ;;  %v6850_v58 = vld [vmem:[#allocation8 + $0x7c8] sm:$0xf]  ;;  %v7695_v0 = vld [vmem:[#allocation8 + $0x7b4] sm:$0xf0]  ;;  %v7533_v1 = vld [vmem:[#allocation8 + $0x2ac] sm:$0xf]  ;;  %v6471_v35 = vor.u32 %v7601_v60, %v6468_v9 }
 0x247   :  { %4013 = vmatpush.bf16.msrb.mxu2 %v6675_v55  ;;  %v5991_v55 = vor.u32 %v7481_v38, %v5988_v8  ;;  %v6851_v6 = vor.u32 %v7699_v52, %v6850_v58  ;;  %v6834_v63 = vld [vmem:[#allocation8 + $0x7a8] sm:$0xf]  ;;  %v7621_v8 = vld [vmem:[#allocation8 + $0x56c] sm:$0xf]  ;;  %v6532_v60 = vld [vmem:[#allocation8 + $0x558] sm:$0xf0] }
 0x248   :  { %v6835_v7 = vor.u32 %v7695_v0, %v6834_v63  ;;  %v6551_v52 = vor.u32 %v7621_v8, %v6548_v45  ;;  %v6770_v9 = vld [vmem:[#allocation8 + $0x728] sm:$0xf] }
 0x249   :  { %4036 = vmatpush.bf16.msra.mxu0 %v5959_v16  ;;  %4049 = vmatpush.bf16.msra.mxu1 %v6087_v27  ;;  %v7485_v16 = vld [vmem:[#allocation8 + $0x12c] sm:$0xf]  ;;  %v6004_v27 = vld [vmem:[#allocation8 + $0x138] sm:$0xf0]  ;;  %v3786_v17 = vpop.f32.mrf.mxu0 }
 0x24a   :  { %3975 = vmatpush.bf16.msra.mxu3 %v6275_v39  ;;  %v6596_v39 = vld [vmem:[#allocation8 + $0x5d8] sm:$0xf0] }
 0x24b   :  { %4014 = vmatpush.bf16.msrb.mxu2 %v6659_v2  ;;  %v6196_v2 = vld [vmem:[#allocation8 + $0x2b8] sm:$0xf0] }
 0x24d   :  { %4037 = vmatpush.bf16.msra.mxu0 %v5943_v30  ;;  %4050 = vmatpush.bf16.msra.mxu1 %v6071_v31  ;;  %v6228_v30 = vld [vmem:[#allocation8 + $0x2f8] sm:$0xf0]  ;;  %v6007_v31 = vor.u32 %v7485_v16, %v6004_v27  ;;  %v7529_v16 = vld [vmem:[#allocation8 + $0x28c] sm:$0xf] }
 0x24e   :  { %3976 = vmatpush.bf16.msra.mxu3 %v6259_v11  ;;  %v6231_v48 = vor.u32 %v7541_v29, %v6228_v30  ;;  %v6818_v11 = vld [vmem:[#allocation8 + $0x788] sm:$0xf]  ;;  %v6180_v27 = vld [vmem:[#allocation8 + $0x298] sm:$0xf0]  ;;  %v7687_v29 = vld [vmem:[#allocation8 + $0x774] sm:$0xf0] }
 0x24f   :  { %4015 = vmatpush.bf16.msrb.mxu2 %v6643_v18  ;;  %v6455_v18 = vor.u32 %v7597_v14, %v6452_v3  ;;  %v6819_v36 = vor.u32 %v7691_v13, %v6818_v11  ;;  %v6183_v23 = vor.u32 %v7529_v16, %v6180_v27  ;;  %v6164_v30 = vld [vmem:[#allocation8 + $0x278] sm:$0xf0]  ;;  %v7573_v13 = vld [vmem:[#allocation8 + $0x3ec] sm:$0xf] }
 0x250   :  { %v8257_v17 = vpop.f32.mrf.mxu1  ;;  %v6116_v11 = vld [vmem:[#allocation8 + $0x218] sm:$0xf0]  ;;  %v7669_v27 = vld [vmem:[#allocation8 + $0x6ec] sm:$0xf] }
 0x251   :  { %4038 = vmatpush.bf16.msra.mxu0 %v5927_v49  ;;  %4051 = vmatpush.bf16.msra.mxu1 %v6055_v50  ;;  %v7637_v49 = vld [vmem:[#allocation8 + $0x5ec] sm:$0xf]  ;;  %v6612_v50 = vld [vmem:[#allocation8 + $0x5f8] sm:$0xf0] }
 0x252   :  { %3977 = vmatpush.bf16.msra.mxu3 %v6243_v32  ;;  %v6615_v59 = vor.u32 %v7637_v49, %v6612_v50  ;;  %v7521_v49 = vld [vmem:[#allocation8 + $0x24c] sm:$0xf]  ;;  %v6148_v50 = vld [vmem:[#allocation8 + $0x258] sm:$0xf0] }
 0x253   :  { %4016 = vmatpush.bf16.msrb.mxu2 %v6627_v40 }
 0x255   :  { %4039 = vmatpush.bf16.msra.mxu0 %v5911_v62  ;;  %4052 = vmatpush.bf16.msra.mxu1 %v6039_v4  ;;  %v6215_v62 = vor.u32 %v7537_v53, %v6212_v54  ;;  %v7633_v4 = vld [vmem:[#allocation8 + $0x5cc] sm:$0xf]  ;;  %v6404_v54 = vld [vmem:[#allocation8 + $0x458] sm:$0xf0] }
 0x256   :  { %4022 = vmatpush.bf16.msrb.mxu3 %v6867_v43  ;;  %4017 = vmatmul.bf16.vlgmr.msrb.gmra.mxu2 %v8227_v20  ;;  %v6599_v5 = vor.u32 %v7633_v4, %v6596_v39  ;;  %v7585_v53 = vld [vmem:[#allocation8 + $0x44c] sm:$0xf]  ;;  %v6132_v4 = vld [vmem:[#allocation8 + $0x238] sm:$0xf0]  ;;  %v2436_v39 = vperm.slane %v8238_v25, 1 }
 0x257   :  { %4061 = vmatpush.bf16.msra.mxu2 %v6231_v48  ;;  %3978 = vmatmul.bf16.vlgmr.msra.gmra.mxu3 %v8208_v44  ;;  %v7683_v48 = vld [vmem:[#allocation8 + $0x754] sm:$0xf0]  ;;  %v6407_v63 = vor.u32 %v7585_v53, %v6404_v54  ;;  %v6356_v25 = vld [vmem:[#allocation8 + $0x3f8] sm:$0xf0]  ;;  %v6922_v54 = vld [vmem:[#allocation11 + $0x60] sm:$0xf] }
 0x258   :  { %v3799_v58 = vpop.f32.mrf.mxu1 }
 0x259   :  { %4040 = vmatpush.bf16.msra.mxu0 %v5895_v34  ;;  %4053 = vmatpush.bf16.msra.mxu1 %v6023_v37  ;;  %v6199_v34 = vor.u32 %v7533_v1, %v6196_v2  ;;  %v6580_v37 = vld [vmem:[#allocation8 + $0x5b8] sm:$0xf0]  ;;  %v7581_v1 = vld [vmem:[#allocation8 + $0x42c] sm:$0xf] }
 0x25a   :  { %4023 = vmatpush.bf16.msrb.mxu3 %v6851_v6  ;;  %v6583_v19 = vor.u32 %v7629_v10, %v6580_v37  ;;  %v7679_v6 = vld [vmem:[#allocation8 + $0x734] sm:$0xf0]  ;;  %v6388_v2 = vld [vmem:[#allocation8 + $0x438] sm:$0xf0]  ;;  %v7513_v37 = vld [vmem:[#allocation8 + $0x20c] sm:$0xf] }
 0x25b   :  { %4062 = vmatpush.bf16.msra.mxu2 %v6215_v62  ;;  %v7517_v62 = vld [vmem:[#allocation8 + $0x22c] sm:$0xf]  ;;  %v6771_v14 = vor.u32 %v7679_v6, %v6770_v9  ;;  %v7675_v10 = vld [vmem:[#allocation8 + $0x714] sm:$0xf0]  ;;  %v6324_v58 = vld [vmem:[#allocation8 + $0x3b8] sm:$0xf0] }
 0x25c   :  { %v6135_v3 = vor.u32 %v7517_v62, %v6132_v4  ;;  %v6308_v9 = vld [vmem:[#allocation8 + $0x398] sm:$0xf0]  ;;  %v7657_v6 = vld [vmem:[#allocation8 + $0x68c] sm:$0xf] }
 0x25d   :  { %4041 = vmatpush.bf16.msra.mxu0 %v5879_v28  ;;  %4054 = vmatpush.bf16.msra.mxu1 %v6007_v31  ;;  %v6564_v28 = vld [vmem:[#allocation8 + $0x598] sm:$0xf0]  ;;  %v6439_v31 = vor.u32 %v7593_v21, %v6436_v22  ;;  %v6391_v21 = vor.u32 %v7581_v1, %v6388_v2 }
 0x25e   :  { %4024 = vmatpush.bf16.msrb.mxu3 %v6835_v7  ;;  %v6567_v32 = vor.u32 %v7625_v24, %v6564_v28  ;;  %v6516_v7 = vld [vmem:[#allocation8 + $0x538] sm:$0xf0]  ;;  %v6119_v24 = vor.u32 %v7513_v37, %v6116_v11  ;;  %v7577_v28 = vld [vmem:[#allocation8 + $0x40c] sm:$0xf]  ;;  %v6906_v11 = vld [vmem:[#allocation11 + $0x40] sm:$0xf] }
 0x25f   :  { %4063 = vmatpush.bf16.msra.mxu2 %v6199_v34  ;;  %v6754_v34 = vld [vmem:[#allocation8 + $0x708] sm:$0xf]  ;;  %v6692_v4 = vld [vmem:[#allocation8 + $0x698] sm:$0xf0]  ;;  %v7733_v37 = vld [vmem:[#allocation11 + $0xe4] sm:$0xf0] }
 0x261   :  { %4042 = vmatpush.bf16.msra.mxu0 %v5863_v51  ;;  %4055 = vmatpush.bf16.msra.mxu1 %v5991_v55  ;;  %v3836_v38 = vpop.f32.mrf.mxu0  ;;  %v6423_v51 = vor.u32 %v7589_v33, %v6420_v57  ;;  %v6787_v55 = vor.u32 %v7683_v48, %v6786_v47  ;;  %v6340_v33 = vld [vmem:[#allocation8 + $0x3d8] sm:$0xf0]  ;;  %v7665_v57 = vld [vmem:[#allocation8 + $0x6cc] sm:$0xf] }
 0x262   :  { %4025 = vmatpush.bf16.msrb.mxu3 %v6819_v36  ;;  %v3837_v16 = vadd.f32 %v3836_v38, %v2436_v39  ;;  %v6724_v38 = vld [vmem:[#allocation8 + $0x6d8] sm:$0xf0]  ;;  %v6994_v39 = vld [vmem:[#allocation11 + $0xf0] sm:$0xf] }
 0x263   :  { %4064 = vmatpush.bf16.msra.mxu2 %v6183_v23  ;;  %v6755_v23 = vor.u32 %v7675_v10, %v6754_v34  ;;  %v6727_v48 = vor.u32 %v7665_v57, %v6724_v38  ;;  %v6676_v34 = vld [vmem:[#allocation8 + $0x678] sm:$0xf0]  ;;  %v6986_v10 = vld [vmem:[#allocation11 + $0xe0] sm:$0xf]  ;;  %v7645_v38 = vld [vmem:[#allocation8 + $0x62c] sm:$0xf] }
 0x264   :  { %4043 = vmatmul.bf16.vlgmr.msra.gmra.mxu0 %v8202_v15  ;;  %4056 = vmatmul.bf16.vlgmr.msra.gmra.mxu1 %v8204_v41  ;;  %v6802_v15 = vld [vmem:[#allocation8 + $0x768] sm:$0xf]  ;;  %v7525_v41 = vld [vmem:[#allocation8 + $0x26c] sm:$0xf]  ;;  %v6260_v57 = vld [vmem:[#allocation8 + $0x338] sm:$0xf0] }
 0x265   :  { %4087 = vmatpush.bf16.msrb.mxu0 %v6487_v56  ;;  %4100 = vmatpush.bf16.msrb.mxu1 %v6615_v59  ;;  %v6803_v40 = vor.u32 %v7687_v29, %v6802_v15  ;;  %v6167_v43 = vor.u32 %v7525_v41, %v6164_v30  ;;  %v6151_v56 = vor.u32 %v7521_v49, %v6148_v50  ;;  %v7617_v59 = vld [vmem:[#allocation8 + $0x54c] sm:$0xf]  ;;  %v6372_v15 = vld [vmem:[#allocation8 + $0x418] sm:$0xf0] }
 0x266   :  { %v6535_v0 = vor.u32 %v7617_v59, %v6532_v60  ;;  %v6359_v29 = vor.u32 %v7573_v13, %v6356_v25  ;;  %v7609_v30 = vld [vmem:[#allocation8 + $0x50c] sm:$0xf]  ;;  %v6375_v8 = vor.u32 %v7577_v28, %v6372_v15  ;;  %v6987_v13 = vor.u32 %v7733_v37, %v6986_v10  ;;  %v6978_v28 = vld [vmem:[#allocation11 + $0xd0] sm:$0xf]  ;;  %v7731_v15 = vld [vmem:[#allocation11 + $0xd4] sm:$0xf0] }
 0x267   :  { %4026 = vmatpush.bf16.msrb.mxu3 %v6803_v40  ;;  %4065 = vmatpush.bf16.msra.mxu2 %v6167_v43  ;;  %v6930_v40 = vld [vmem:[#allocation11 + $0x70] sm:$0xf]  ;;  %v7719_v43 = vld [vmem:[#allocation11 + $0x74] sm:$0xf0]  ;;  %v7565_v49 = vld [vmem:[#allocation8 + $0x3ac] sm:$0xf] }
 0x268   :  { %v6931_v50 = vor.u32 %v7719_v43, %v6930_v40  ;;  %v7561_v60 = vld [vmem:[#allocation8 + $0x38c] sm:$0xf]  ;;  %v6644_v43 = vld [vmem:[#allocation8 + $0x638] sm:$0xf0] }
 0x269   :  { %4088 = vmatpush.bf16.msrb.mxu0 %v6471_v35  ;;  %4101 = vmatpush.bf16.msrb.mxu1 %v6599_v5  ;;  %v7613_v35 = vld [vmem:[#allocation8 + $0x52c] sm:$0xf]  ;;  %v3838_v5 = vpop.f32.mrf.mxu0  ;;  %v6311_v2 = vor.u32 %v7561_v60, %v6308_v9 }
 0x26a   :  { %v6519_v22 = vor.u32 %v7613_v35, %v6516_v7  ;;  %v6695_v35 = vor.u32 %v7657_v6, %v6692_v4  ;;  %v7557_v5 = vld [vmem:[#allocation8 + $0x36c] sm:$0xf]  ;;  %v6962_v6 = vld [vmem:[#allocation11 + $0xb0] sm:$0xf]  ;;  %v6868_v4 = vld [vmem:[#allocation8 + $0x7f8] sm:$0xf0] }
 0x26b   :  { %4027 = vmatpush.bf16.msrb.mxu3 %v6787_v55  ;;  %4066 = vmatpush.bf16.msra.mxu2 %v6151_v56  ;;  %v7717_v55 = vld [vmem:[#allocation11 + $0x64] sm:$0xf0]  ;;  %v6327_v56 = vor.u32 %v7565_v49, %v6324_v58 }
 0x26c   :  { %v6923_v62 = vor.u32 %v7717_v55, %v6922_v54  ;;  %v6244_v54 = vld [vmem:[#allocation8 + $0x318] sm:$0xf0]  ;;  %v7641_v55 = vld [vmem:[#allocation8 + $0x60c] sm:$0xf] }
 0x26d   :  { %4089 = vmatpush.bf16.msrb.mxu0 %v6455_v18  ;;  %4102 = vmatpush.bf16.msrb.mxu1 %v6583_v19  ;;  %v6740_v18 = vld [vmem:[#allocation8 + $0x6f8] sm:$0xf0]  ;;  %v3849_v19 = vpop.f32.mrf.mxu1  ;;  %v7701_v9 = vld [vmem:[#allocation8 + $0x7ec] sm:$0xf] }
 0x26e   :  { %v8260_v36 = vadd.f32 %v3849_v19, %v3837_v16  ;;  %v6743_v41 = vor.u32 %v7669_v27, %v6740_v18  ;;  %v7553_v18 = vld [vmem:[#allocation8 + $0x34c] sm:$0xf]  ;;  %v6276_v19 = vld [vmem:[#allocation8 + $0x358] sm:$0xf0] }
 0x26f   :  { %4028 = vmatpush.bf16.msrb.mxu3 %v6771_v14  ;;  %4067 = vmatpush.bf16.msra.mxu2 %v6135_v3  ;;  %v6292_v14 = vld [vmem:[#allocation8 + $0x378] sm:$0xf0]  ;;  %v7653_v3 = vld [vmem:[#allocation8 + $0x66c] sm:$0xf] }
 0x270   :  { %v6295_v25 = vor.u32 %v7557_v5, %v6292_v14  ;;  %v6679_v27 = vor.u32 %v7653_v3, %v6676_v34  ;;  %v7697_v5 = vld [vmem:[#allocation8 + $0x7cc] sm:$0xf]  ;;  %v6954_v14 = vld [vmem:[#allocation11 + $0xa0] sm:$0xf] }
 0x271   :  { %4090 = vmatpush.bf16.msrb.mxu0 %v6439_v31  ;;  %4103 = vmatpush.bf16.msrb.mxu1 %v6567_v32  ;;  %v6500_v31 = vld [vmem:[#allocation8 + $0x518] sm:$0xf0]  ;;  %v7569_v32 = vld [vmem:[#allocation8 + $0x3cc] sm:$0xf]  ;;  %v6874_v34 = vld [vmem:[#allocation11] sm:$0xf] }
 0x272   :  { %v6503_v45 = vor.u32 %v7609_v30, %v6500_v31  ;;  %v6343_v47 = vor.u32 %v7569_v32, %v6340_v33  ;;  %v6979_v30 = vor.u32 %v7731_v15, %v6978_v28  ;;  %v6279_v31 = vor.u32 %v7553_v18, %v6276_v19  ;;  %v7549_v33 = vld [vmem:[#allocation8 + $0x32c] sm:$0xf]  ;;  %v6946_v18 = vld [vmem:[#allocation11 + $0x90] sm:$0xf]  ;;  %v7723_v19 = vld [vmem:[#allocation11 + $0x94] sm:$0xf0] }
 0x273   :  { %4029 = vmatpush.bf16.msrb.mxu3 %v6755_v23  ;;  %4068 = vmatpush.bf16.msra.mxu2 %v6119_v24  ;;  %v6660_v24 = vld [vmem:[#allocation8 + $0x658] sm:$0xf0]  ;;  %v7725_v3 = vld [vmem:[#allocation11 + $0xa4] sm:$0xf0]  ;;  %v7716_v28 = vld [vmem:[#allocation11 + $0x64] sm:$0xf]  ;;  %v6947_v15 = vor.u32 %v7723_v19, %v6946_v18 }
 0x274   :  { %v7705_v10 = vld [vmem:[#allocation11 + $0x4] sm:$0xf0]  ;;  %v6955_v37 = vor.u32 %v7725_v3, %v6954_v14  ;;  %v7710_v14 = vld [vmem:[#allocation11 + $0x34] sm:$0xf]  ;;  %v6900_v3 = vld [vmem:[#allocation11 + $0x38] sm:$0xf0] }
 0x275   :  { %4091 = vmatpush.bf16.msrb.mxu0 %v6423_v51  ;;  %4104 = vmatpush.bf16.msrb.mxu1 %v6551_v52  ;;  %v7661_v51 = vld [vmem:[#allocation8 + $0x6ac] sm:$0xf]  ;;  %v6708_v52 = vld [vmem:[#allocation8 + $0x6b8] sm:$0xf0]  ;;  %v3851_v53 = vpop.f32.mrf.mxu1  ;;  %v7708_v18 = vld [vmem:[#allocation11 + $0x24] sm:$0xf] }
 0x276   :  { %4030 = vmatmul.bf16.vlgmr.msrb.gmra.mxu3 %v8234_v61  ;;  %4069 = vmatmul.bf16.vlgmr.msra.gmra.mxu2 %v8206_v42  ;;  %v6711_v59 = vor.u32 %v7661_v51, %v6708_v52  ;;  %v6914_v42 = vld [vmem:[#allocation11 + $0x50] sm:$0xf]  ;;  %v6263_v52 = vor.u32 %v7549_v33, %v6260_v57  ;;  %v6647_v53 = vor.u32 %v7645_v38, %v6644_v43  ;;  %v6820_v57 = vld [vmem:[#allocation8 + $0x798] sm:$0xf0]  ;;  %v6996_v43 = vld [vmem:[#allocation11 + $0xf8] sm:$0xf0] }
 0x277   :  { %4074 = vmatpush.bf16.msra.mxu3 %v6359_v29  ;;  %4113 = vmatpush.bf16.msrb.mxu2 %v6743_v41  ;;  %v6898_v29 = vld [vmem:[#allocation11 + $0x30] sm:$0xf]  ;;  %v7711_v41 = vld [vmem:[#allocation11 + $0x34] sm:$0xf0]  ;;  %v6892_v19 = vld [vmem:[#allocation11 + $0x28] sm:$0xf0] }
 0x278   :  { %v6899_v40 = vor.u32 %v7711_v41, %v6898_v29  ;;  %v6924_v29 = vld [vmem:[#allocation11 + $0x68] sm:$0xf0]  ;;  %v6938_v41 = vld [vmem:[#allocation11 + $0x80] sm:$0xf] }
 0x279   :  { %4092 = vmatpush.bf16.msrb.mxu0 %v6407_v63  ;;  %4105 = vmatpush.bf16.msrb.mxu1 %v6535_v0  ;;  %v7735_v63 = vld [vmem:[#allocation11 + $0xf4] sm:$0xf0]  ;;  %v6927_v33 = vor.u32 %v7716_v28, %v6924_v29  ;;  %v7726_v29 = vld [vmem:[#allocation11 + $0xb4] sm:$0xf] }
 0x27a   :  { %v7715_v0 = vld [vmem:[#allocation11 + $0x54] sm:$0xf0]  ;;  %v6995_v1 = vor.u32 %v7735_v63, %v6994_v39  ;;  %v6882_v39 = vld [vmem:[#allocation11 + $0x10] sm:$0xf] }
 0x27b   :  { %4075 = vmatpush.bf16.msra.mxu3 %v6343_v47  ;;  %4114 = vmatpush.bf16.msrb.mxu2 %v6727_v48  ;;  %v6915_v7 = vor.u32 %v7715_v0, %v6914_v42  ;;  %v6890_v47 = vld [vmem:[#allocation11 + $0x20] sm:$0xf]  ;;  %v7709_v48 = vld [vmem:[#allocation11 + $0x24] sm:$0xf0]  ;;  %v7707_v63 = vld [vmem:[#allocation11 + $0x14] sm:$0xf0] }
 0x27c   :  { %v6891_v60 = vor.u32 %v7709_v48, %v6890_v47  ;;  %v7685_v48 = vld [vmem:[#allocation8 + $0x76c] sm:$0xf] }
 0x27d   :  { %4093 = vmatpush.bf16.msrb.mxu0 %v6391_v21  ;;  %4106 = vmatpush.bf16.msrb.mxu1 %v6519_v22  ;;  %v7649_v21 = vld [vmem:[#allocation8 + $0x64c] sm:$0xf]  ;;  %v8270_v22 = vpop.f32.mrf.mxu2 }
 0x27e   :  { %v6663_v32 = vor.u32 %v7649_v21, %v6660_v24  ;;  %v6836_v24 = vld [vmem:[#allocation8 + $0x7b8] sm:$0xf0] }
 0x27f   :  { %4076 = vmatpush.bf16.msra.mxu3 %v6327_v56  ;;  %4115 = vmatpush.bf16.msrb.mxu2 %v6711_v59  ;;  %v6628_v56 = vld [vmem:[#allocation8 + $0x618] sm:$0xf0] }
 0x281   :  { %4094 = vmatpush.bf16.msrb.mxu0 %v6375_v8  ;;  %4107 = vmatpush.bf16.msrb.mxu1 %v6503_v45  ;;  %v8268_v16 = vpop.f32.mrf.mxu1  ;;  %v6970_v8 = vld [vmem:[#allocation11 + $0xc0] sm:$0xf]  ;;  %v7729_v45 = vld [vmem:[#allocation11 + $0xc4] sm:$0xf0] }
 0x282   :  { %v6971_v49 = vor.u32 %v7729_v45, %v6970_v8  ;;  %v7714_v8 = vld [vmem:[#allocation11 + $0x54] sm:$0xf]  ;;  %v6916_v45 = vld [vmem:[#allocation11 + $0x58] sm:$0xf0] }
 0x283   :  { %4077 = vmatpush.bf16.msra.mxu3 %v6311_v2  ;;  %4116 = vmatpush.bf16.msrb.mxu2 %v6695_v35  ;;  %v6871_v2 = vor.u32 %v7701_v9, %v6868_v4  ;;  %v6883_v35 = vor.u32 %v7707_v63, %v6882_v39  ;;  %v7681_v9 = vld [vmem:[#allocation8 + $0x74c] sm:$0xf]  ;;  %v6788_v63 = vld [vmem:[#allocation8 + $0x758] sm:$0xf0] }
 0x284   :  { %4095 = vmatmul.bf16.vlgmr.msrb.gmra.mxu0 %v8215_v12  ;;  %4108 = vmatmul.bf16.vlgmr.msrb.gmra.mxu1 %v8221_v46  ;;  %v7713_v12 = vld [vmem:[#allocation11 + $0x44] sm:$0xf0]  ;;  %v8266_v46 = vpop.f32.mrf.mxu0 }
 0x285   :  { %4537 = vmatpush.bf16.msra.mxu0 %v6931_v50  ;;  %4550 = vmatpush.bf16.msra.mxu1 %v6995_v1  ;;  %v6907_v23 = vor.u32 %v7713_v12, %v6906_v11  ;;  %v7545_v50 = vld [vmem:[#allocation8 + $0x30c] sm:$0xf]  ;;  %v3812_v59 = vpop.f32.mrf.mxu2  ;;  %v6631_v1 = vor.u32 %v7641_v55, %v6628_v56  ;;  %v7718_v11 = vld [vmem:[#allocation11 + $0x74] sm:$0xf]  ;;  %v6932_v12 = vld [vmem:[#allocation11 + $0x78] sm:$0xf0] }
 0x286   :  { %v6247_v0 = vor.u32 %v7545_v50, %v6244_v54  ;;  %v6935_v21 = vor.u32 %v7718_v11, %v6932_v12  ;;  %v6804_v50 = vld [vmem:[#allocation8 + $0x778] sm:$0xf0]  ;;  %v7712_v54 = vld [vmem:[#allocation11 + $0x44] sm:$0xf]  ;;  %v6908_v55 = vld [vmem:[#allocation11 + $0x48] sm:$0xf0]  ;;  %v3798_v59 = vadd.f32 %v8257_v17, %v8251_v26  ;;  %v6903_v12 = vor.u32 %v7710_v14, %v6900_v3 }
 0x287   :  { %4078 = vmatpush.bf16.msra.mxu3 %v6295_v25  ;;  %4117 = vmatpush.bf16.msrb.mxu2 %v6679_v27  ;;  %v6875_v27 = vor.u32 %v7705_v10, %v6874_v34  ;;  %v6911_v39 = vor.u32 %v7712_v54, %v6908_v55  ;;  %v6772_v34 = vld [vmem:[#allocation8 + $0x738] sm:$0xf0]  ;;  %v6972_v11 = vld [vmem:[#allocation11 + $0xc8] sm:$0xf0]  ;;  %v7745_v14 = vld [vmem:[#allocation11 + $0x144] sm:$0xf0] }
 0x289   :  { %4538 = vmatpush.bf16.msra.mxu0 %v6923_v62  ;;  %4551 = vmatpush.bf16.msra.mxu1 %v6987_v13  ;;  %v3903_v51 = vpop.f32.mrf.mxu1  ;;  %v7727_v62 = vld [vmem:[#allocation11 + $0xb4] sm:$0xf0] }
 0x28a   :  { %v6963_v42 = vor.u32 %v7727_v62, %v6962_v6  ;;  %v6988_v51 = vld [vmem:[#allocation11 + $0xe8] sm:$0xf0]  ;;  %v3811_v6 = vadd.f32 %v8270_v22, %v3798_v59  ;;  %v6791_v22 = vor.u32 %v7681_v9, %v6788_v63  ;;  %v7720_v59 = vld [vmem:[#allocation11 + $0x84] sm:$0xf] }
 0x28b   :  { %4079 = vmatpush.bf16.msra.mxu3 %v6279_v31  ;;  %4118 = vmatpush.bf16.msrb.mxu2 %v6663_v32  ;;  %v7689_v32 = vld [vmem:[#allocation8 + $0x78c] sm:$0xf] }
 0x28c   :  { %v3890_v58 = vpop.f32.mrf.mxu0 }
 0x28d   :  { %4539 = vmatpush.bf16.msra.mxu0 %v6915_v7  ;;  %4552 = vmatpush.bf16.msra.mxu1 %v6979_v30  ;;  %v6852_v7 = vld [vmem:[#allocation8 + $0x7d8] sm:$0xf0]  ;;  %v8272_v13 = vpop.f32.mrf.mxu2  ;;  %v7721_v30 = vld [vmem:[#allocation11 + $0x84] sm:$0xf0]  ;;  %v7732_v58 = vld [vmem:[#allocation11 + $0xe4] sm:$0xf] }
 0x28e   :  { %v6855_v25 = vor.u32 %v7697_v5, %v6852_v7  ;;  %v6939_v38 = vor.u32 %v7721_v30, %v6938_v41  ;;  %v6991_v56 = vor.u32 %v7732_v58, %v6988_v51  ;;  %v7677_v7 = vld [vmem:[#allocation8 + $0x72c] sm:$0xf]  ;;  %v6964_v41 = vld [vmem:[#allocation11 + $0xb8] sm:$0xf0]  ;;  %v7722_v58 = vld [vmem:[#allocation11 + $0x94] sm:$0xf] }
 0x28f   :  { %4080 = vmatpush.bf16.msra.mxu3 %v6263_v52  ;;  %4119 = vmatpush.bf16.msrb.mxu2 %v6647_v53  ;;  %v8276_v52 = vld [vmem:[#allocation10] sm:$0xf] }
 0x290   :  { %v2437_v53 = vperm.slane %v8276_v52, 2  ;;  %v6948_v51 = vld [vmem:[#allocation11 + $0x98] sm:$0xf0] }
 0x291   :  { %4540 = vmatpush.bf16.msra.mxu0 %v6907_v23  ;;  %4553 = vmatpush.bf16.msra.mxu1 %v6971_v49  ;;  %v7693_v23 = vld [vmem:[#allocation8 + $0x7ac] sm:$0xf]  ;;  %v6919_v49 = vor.u32 %v7714_v8, %v6916_v45  ;;  %v7751_v8 = vld [vmem:[#allocation11 + $0x174] sm:$0xf0]  ;;  %v6951_v55 = vor.u32 %v7722_v58, %v6948_v51 }
 0x292   :  { %v6839_v31 = vor.u32 %v7693_v23, %v6836_v24  ;;  %v7673_v23 = vld [vmem:[#allocation8 + $0x70c] sm:$0xf] }
 0x293   :  { %4081 = vmatpush.bf16.msra.mxu3 %v6247_v0  ;;  %4120 = vmatpush.bf16.msrb.mxu2 %v6631_v1  ;;  %v6980_v0 = vld [vmem:[#allocation11 + $0xd8] sm:$0xf0] }
 0x295   :  { %4541 = vmatpush.bf16.msra.mxu0 %v6899_v40  ;;  %4554 = vmatpush.bf16.msra.mxu1 %v6963_v42  ;;  %v7734_v40 = vld [vmem:[#allocation11 + $0xf4] sm:$0xf] }
 0x296   :  { %4082 = vmatmul.bf16.vlgmr.msra.gmra.mxu3 %v8208_v44  ;;  %4121 = vmatmul.bf16.vlgmr.msrb.gmra.mxu2 %v8227_v20  ;;  %v6999_v47 = vor.u32 %v7734_v40, %v6996_v43  ;;  %v3864_v44 = vpop.f32.mrf.mxu2  ;;  %v6823_v20 = vor.u32 %v7689_v32, %v6820_v57  ;;  %v7730_v42 = vld [vmem:[#allocation11 + $0xd4] sm:$0xf]  ;;  %v6967_v57 = vor.u32 %v7726_v29, %v6964_v41  ;;  %v6956_v40 = vld [vmem:[#allocation11 + $0xa8] sm:$0xf0]  ;;  %v7058_v43 = vld [vmem:[#allocation11 + $0x170] sm:$0xf] }
 0x297   :  { %4126 = vmatpush.bf16.msrb.mxu3 %v6871_v2  ;;  %v3823_v2 = vpop.f32.mrf.mxu3  ;;  %v7706_v32 = vld [vmem:[#allocation11 + $0x14] sm:$0xf]  ;;  %v7059_v44 = vor.u32 %v7751_v8, %v7058_v43  ;;  %v7737_v29 = vld [vmem:[#allocation11 + $0x104] sm:$0xf0]  ;;  %v7044_v8 = vld [vmem:[#allocation11 + $0x158] sm:$0xf0] }
 0x298   :  { %v3824_v5 = vadd.f32 %v3823_v2, %v3811_v6  ;;  %v7750_v41 = vld [vmem:[#allocation11 + $0x174] sm:$0xf] }
 0x299   :  { %4542 = vmatpush.bf16.msra.mxu0 %v6891_v60  ;;  %4555 = vmatpush.bf16.msra.mxu1 %v6955_v37  ;;  %v6807_v60 = vor.u32 %v7685_v48, %v6804_v50  ;;  %v7728_v37 = vld [vmem:[#allocation11 + $0xc4] sm:$0xf]  ;;  %v6876_v50 = vld [vmem:[#allocation11 + $0x8] sm:$0xf0]  ;;  %v7746_v43 = vld [vmem:[#allocation11 + $0x154] sm:$0xf] }
 0x29a   :  { %v4139_v10 = vmax.f32 %v3824_v5, 0.0  ;;  %v7704_v48 = vld [vmem:[#allocation11 + $0x4] sm:$0xf]  ;;  %4563 = vmatpush.bf16.msra.mxu2 %v7059_v44  ;;  %v7034_v5 = vld [vmem:[#allocation11 + $0x140] sm:$0xf] }
 0x29b   :  { %4127 = vmatpush.bf16.msrb.mxu3 %v6855_v25  ;;  %v6975_v25 = vor.u32 %v7728_v37, %v6972_v11  ;;  %v6879_v54 = vor.u32 %v7704_v48, %v6876_v50  ;;  %v7036_v50 = vld [vmem:[#allocation11 + $0x148] sm:$0xf0] }
 0x29d   :  { %4543 = vmatpush.bf16.msra.mxu0 %v6883_v35  ;;  %4556 = vmatpush.bf16.msra.mxu1 %v6947_v15  ;;  %v6983_v35 = vor.u32 %v7730_v42, %v6980_v0  ;;  %v6756_v15 = vld [vmem:[#allocation8 + $0x718] sm:$0xf0] }
 0x29e   :  { %v8284_v17 = vpop.f32.mrf.mxu2 }
 0x29f   :  { %4128 = vmatpush.bf16.msrb.mxu3 %v6839_v31  ;;  %v3825_v30 = vpop.f32.mrf.mxu3  ;;  %v6895_v31 = vor.u32 %v7708_v18, %v6892_v19  ;;  %v7741_v18 = vld [vmem:[#allocation11 + $0x124] sm:$0xf0] }
 0x2a0   :  { %v7060_v30 = vld [vmem:[#allocation11 + $0x178] sm:$0xf0] }
 0x2a1   :  { %4544 = vmatpush.bf16.msra.mxu0 %v6875_v27  ;;  %4557 = vmatpush.bf16.msra.mxu1 %v6939_v38  ;;  %v3940_v62 = vpop.f32.mrf.mxu0  ;;  %v3953_v4 = vpop.f32.mrf.mxu1  ;;  %v4143_v27 = vpack.c.bf16 %v4139_v10, %v4139_v10  ;;  %v7724_v38 = vld [vmem:[#allocation11 + $0xa4] sm:$0xf]  ;;  %v7743_v10 = vld [vmem:[#allocation11 + $0x134] sm:$0xf0] }
 0x2a2   :  { %v3941_v1 = vadd.f32 %v3940_v62, %v2437_v53 }
 0x2a3   :  { %4129 = vmatpush.bf16.msrb.mxu3 %v6823_v20 }
 0x2a4   :  { %v8282_v26 = vadd.f32 %v3953_v4, %v3941_v1  ;;  %4545 = vmatmul.bf16.vlgmr.msra.gmra.mxu0 %v4143_v27  ;;  %v7050_v4 = vld [vmem:[#allocation11 + $0x160] sm:$0xf] }
 0x2a5   :  { %4589 = vmatpush.bf16.msrb.mxu0 %v6935_v21  ;;  %4602 = vmatpush.bf16.msrb.mxu1 %v6999_v47  ;;  %v6775_v21 = vor.u32 %v7677_v7, %v6772_v34  ;;  %v6759_v47 = vor.u32 %v7673_v23, %v6756_v15  ;;  %v7739_v23 = vld [vmem:[#allocation11 + $0x114] sm:$0xf0]  ;;  %v7002_v15 = vld [vmem:[#allocation11 + $0x100] sm:$0xf] }
 0x2a6   :  { %v3916_v45 = vpop.f32.mrf.mxu2 }
 0x2a7   :  { %4130 = vmatpush.bf16.msrb.mxu3 %v6807_v60  ;;  %v3875_v53 = vpop.f32.mrf.mxu3  ;;  %v6940_v60 = vld [vmem:[#allocation11 + $0x88] sm:$0xf0]  ;;  %v7047_v45 = vor.u32 %v7746_v43, %v7044_v8  ;;  %v7066_v43 = vld [vmem:[#allocation11 + $0x180] sm:$0xf] }
 0x2a8   :  { %v6943_v6 = vor.u32 %v7720_v59, %v6940_v60  ;;  %v7740_v60 = vld [vmem:[#allocation11 + $0x124] sm:$0xf] }
 0x2a9   :  { %4590 = vmatpush.bf16.msrb.mxu0 %v6927_v33  ;;  %4603 = vmatpush.bf16.msrb.mxu1 %v6991_v56  ;;  %v3942_v24 = vpop.f32.mrf.mxu0  ;;  %v3955_v28 = vpop.f32.mrf.mxu1  ;;  %v6884_v33 = vld [vmem:[#allocation11 + $0x18] sm:$0xf0]  ;;  %v3863_v56 = vadd.f32 %v8272_v13, %v8260_v36  ;;  %v7042_v36 = vld [vmem:[#allocation11 + $0x150] sm:$0xf]  ;;  %v7747_v13 = vld [vmem:[#allocation11 + $0x154] sm:$0xf0] }
 0x2aa   :  { %v6887_v20 = vor.u32 %v7706_v32, %v6884_v33  ;;  %v7043_v1 = vor.u32 %v7747_v13, %v7042_v36  ;;  %v7063_v32 = vor.u32 %v7750_v41, %v7060_v30  ;;  %v7748_v33 = vld [vmem:[#allocation11 + $0x164] sm:$0xf]  ;;  %v7757_v41 = vld [vmem:[#allocation11 + $0x1a4] sm:$0xf0] }
 0x2ab   :  { %4131 = vmatpush.bf16.msrb.mxu3 %v6791_v22  ;;  %v3876_v9 = vadd.f32 %v3875_v53, %v3863_v56  ;;  %v7035_v22 = vor.u32 %v7745_v14, %v7034_v5 }
 0x2ad   :  { %4591 = vmatpush.bf16.msrb.mxu0 %v6919_v49  ;;  %4604 = vmatpush.bf16.msrb.mxu1 %v6983_v35  ;;  %v6959_v49 = vor.u32 %v7724_v38, %v6956_v40  ;;  %v3889_v62 = vadd.f32 %v8266_v46, %v3876_v9  ;;  %v2438_v40 = vperm.slane %v8276_v52, 3  ;;  %v7020_v9 = vld [vmem:[#allocation11 + $0x128] sm:$0xf0] }
 0x2af   :  { %4132 = vmatpush.bf16.msrb.mxu3 %v6775_v21  ;;  %v3877_v63 = vpop.f32.mrf.mxu3  ;;  %v3902_v0 = vadd.f32 %v8268_v16, %v3889_v62  ;;  %v7026_v16 = vld [vmem:[#allocation11 + $0x130] sm:$0xf]  ;;  %v7738_v62 = vld [vmem:[#allocation11 + $0x114] sm:$0xf] }
 0x2b0   :  { %v7027_v11 = vor.u32 %v7743_v10, %v7026_v16  ;;  %v7122_v63 = vld [vmem:[#allocation11 + $0x1f0] sm:$0xf] }
 0x2b1   :  { %4592 = vmatpush.bf16.msrb.mxu0 %v6911_v39  ;;  %4605 = vmatpush.bf16.msrb.mxu1 %v6975_v25  ;;  %v7749_v39 = vld [vmem:[#allocation11 + $0x164] sm:$0xf0]  ;;  %v3915_v46 = vadd.f32 %v8284_v17, %v3902_v0  ;;  %v7010_v17 = vld [vmem:[#allocation11 + $0x110] sm:$0xf] }
 0x2b2   :  { %v7051_v42 = vor.u32 %v7749_v39, %v7050_v4  ;;  %v7011_v28 = vor.u32 %v7739_v23, %v7010_v17  ;;  %v7012_v39 = vld [vmem:[#allocation11 + $0x118] sm:$0xf0] }
 0x2b3   :  { %4133 = vmatpush.bf16.msrb.mxu3 %v6759_v47  ;;  %v7015_v13 = vor.u32 %v7738_v62, %v7012_v39  ;;  %v7092_v62 = vld [vmem:[#allocation11 + $0x1b8] sm:$0xf0]  ;;  %v7756_v39 = vld [vmem:[#allocation11 + $0x1a4] sm:$0xf] }
 0x2b4   :  { %4564 = vmatpush.bf16.msra.mxu2 %v7051_v42  ;;  %v7767_v42 = vld [vmem:[#allocation11 + $0x1f4] sm:$0xf0] }
 0x2b5   :  { %4593 = vmatpush.bf16.msrb.mxu0 %v6903_v12  ;;  %4606 = vmatpush.bf16.msrb.mxu1 %v6967_v57  ;;  %v7052_v57 = vld [vmem:[#allocation11 + $0x168] sm:$0xf0]  ;;  %v7123_v36 = vor.u32 %v7767_v42, %v7122_v63 }
 0x2b6   :  { %4134 = vmatmul.bf16.vlgmr.msrb.gmra.mxu3 %v8234_v61  ;;  %v7055_v38 = vor.u32 %v7748_v33, %v7052_v57  ;;  %v7084_v63 = vld [vmem:[#allocation11 + $0x1a8] sm:$0xf0] }
 0x2b7   :  { %4576 = vmatpush.bf16.msra.mxu3 %v7123_v36  ;;  %v7087_v42 = vor.u32 %v7756_v39, %v7084_v63  ;;  %v7076_v36 = vld [vmem:[#allocation11 + $0x198] sm:$0xf0] }
 0x2b8   :  { %4565 = vmatpush.bf16.msra.mxu2 %v7043_v1  ;;  %v7736_v1 = vld [vmem:[#allocation11 + $0x104] sm:$0xf] }
 0x2b9   :  { %4594 = vmatpush.bf16.msrb.mxu0 %v6895_v31  ;;  %4607 = vmatpush.bf16.msrb.mxu1 %v6959_v49  ;;  %v8295_v35 = vpop.f32.mrf.mxu2  ;;  %v7003_v31 = vor.u32 %v7737_v29, %v7002_v15  ;;  %v7744_v49 = vld [vmem:[#allocation11 + $0x144] sm:$0xf]  ;;  %v7082_v29 = vld [vmem:[#allocation11 + $0x1a0] sm:$0xf] }
 0x2ba   :  { %v3927_v3 = vpop.f32.mrf.mxu3  ;;  %v7039_v53 = vor.u32 %v7744_v49, %v7036_v50  ;;  %v3967_v5 = vadd.f32 %v8295_v35, %v8282_v26  ;;  %v7098_v35 = vld [vmem:[#allocation11 + $0x1c0] sm:$0xf]  ;;  %v7764_v49 = vld [vmem:[#allocation11 + $0x1e4] sm:$0xf]  ;;  %v7116_v50 = vld [vmem:[#allocation11 + $0x1e8] sm:$0xf0] }
 0x2bb   :  { %v3928_v7 = vadd.f32 %v3927_v3, %v3915_v46  ;;  %v7004_v46 = vld [vmem:[#allocation11 + $0x108] sm:$0xf0] }
 0x2bc   :  { %4566 = vmatpush.bf16.msra.mxu2 %v7035_v22  ;;  %v7007_v14 = vor.u32 %v7736_v1, %v7004_v46 }
 0x2bd   :  { %4595 = vmatpush.bf16.msrb.mxu0 %v6887_v20  ;;  %4608 = vmatpush.bf16.msrb.mxu1 %v6951_v55  ;;  %v4140_v34 = vmax.f32 %v3928_v7, 0.0  ;;  %v7028_v55 = vld [vmem:[#allocation11 + $0x138] sm:$0xf0]  ;;  %v7114_v7 = vld [vmem:[#allocation11 + $0x1e0] sm:$0xf] }
 0x2bf   :  { %v4144_v12 = vpack.c.bf16 %v4140_v34, %v4140_v34  ;;  %v7765_v34 = vld [vmem:[#allocation11 + $0x1e4] sm:$0xf0] }
 0x2c0   :  { %4567 = vmatpush.bf16.msra.mxu2 %v7027_v11  ;;  %v7115_v16 = vor.u32 %v7765_v34, %v7114_v7  ;;  %v7763_v11 = vld [vmem:[#allocation11 + $0x1d4] sm:$0xf0] }
 0x2c1   :  { %4596 = vmatpush.bf16.msrb.mxu0 %v6879_v54  ;;  %4609 = vmatpush.bf16.msrb.mxu1 %v6943_v6  ;;  %v8291_v61 = vpop.f32.mrf.mxu0  ;;  %v8293_v2 = vpop.f32.mrf.mxu1  ;;  %v7742_v54 = vld [vmem:[#allocation11 + $0x134] sm:$0xf]  ;;  %v7023_v6 = vor.u32 %v7740_v60, %v7020_v9 }
 0x2c2   :  { %v3968_v21 = vpop.f32.mrf.mxu2  ;;  %4558 = vmatmul.bf16.vlgmr.msra.gmra.mxu1 %v4144_v12  ;;  %v3929_v24 = vpop.f32.mrf.mxu3  ;;  %v7031_v56 = vor.u32 %v7742_v54, %v7028_v55  ;;  %4577 = vmatpush.bf16.msra.mxu3 %v7115_v16  ;;  %v7108_v54 = vld [vmem:[#allocation11 + $0x1d8] sm:$0xf0] }
 0x2c3   :  { %v7090_v24 = vld [vmem:[#allocation11 + $0x1b0] sm:$0xf] }
 0x2c4   :  { %4597 = vmatmul.bf16.vlgmr.msrb.gmra.mxu0 %v4143_v27  ;;  %v7018_v27 = vld [vmem:[#allocation11 + $0x120] sm:$0xf] }
 0x2c5   :  { %v7019_v19 = vor.u32 %v7741_v18, %v7018_v27  ;;  %v7761_v18 = vld [vmem:[#allocation11 + $0x1c4] sm:$0xf0] }
 0x2c7   :  { %4568 = vmatpush.bf16.msra.mxu2 %v7019_v19 }
 0x2c9   :  { %v3994_v37 = vpop.f32.mrf.mxu0  ;;  %v4007_v25 = vpop.f32.mrf.mxu1 }
 0x2ca   :  { %v7106_v37 = vld [vmem:[#allocation11 + $0x1d0] sm:$0xf] }
 0x2cb   :  { %4569 = vmatpush.bf16.msra.mxu2 %v7011_v28  ;;  %v7759_v28 = vld [vmem:[#allocation11 + $0x1b4] sm:$0xf0] }
 0x2cf   :  { %4570 = vmatpush.bf16.msra.mxu2 %v7003_v31 }
 0x2d2   :  { %4610 = vmatmul.bf16.vlgmr.msrb.gmra.mxu1 %v4144_v12  ;;  %v7107_v12 = vor.u32 %v7763_v11, %v7106_v37 }
 0x2d3   :  { %4615 = vmatpush.bf16.msrb.mxu2 %v7063_v32  ;;  %v7083_v32 = vor.u32 %v7757_v41, %v7082_v29 }
 0x2d4   :  { %4578 = vmatpush.bf16.msra.mxu3 %v7107_v12 }
 0x2d7   :  { %4616 = vmatpush.bf16.msrb.mxu2 %v7055_v38  ;;  %v7074_v38 = vld [vmem:[#allocation11 + $0x190] sm:$0xf] }
 0x2d9   :  { %v4018_v51 = vpop.f32.mrf.mxu2 }
 0x2da   :  { %v3979_v48 = vpop.f32.mrf.mxu3 }
 0x2db   :  { %4617 = vmatpush.bf16.msrb.mxu2 %v7047_v45  ;;  %v3980_v3 = vadd.f32 %v3979_v48, %v3967_v5  ;;  %v7753_v45 = vld [vmem:[#allocation11 + $0x184] sm:$0xf0] }
 0x2dd   :  { %v3993_v22 = vadd.f32 %v8291_v61, %v3980_v3  ;;  %v7099_v61 = vor.u32 %v7761_v18, %v7098_v35  ;;  %v7752_v3 = vld [vmem:[#allocation11 + $0x184] sm:$0xf] }
 0x2df   :  { %4618 = vmatpush.bf16.msrb.mxu2 %v7039_v53  ;;  %v4006_v10 = vadd.f32 %v8293_v2, %v3993_v22  ;;  %4579 = vmatpush.bf16.msra.mxu3 %v7099_v61  ;;  %v7091_v2 = vor.u32 %v7759_v28, %v7090_v24  ;;  %v7762_v53 = vld [vmem:[#allocation11 + $0x1d4] sm:$0xf]  ;;  %v7068_v22 = vld [vmem:[#allocation11 + $0x188] sm:$0xf0] }
 0x2e0   :  { %v7111_v55 = vor.u32 %v7762_v53, %v7108_v54  ;;  %v7071_v7 = vor.u32 %v7752_v3, %v7068_v22  ;;  %v7778_v53 = vld [vmem:[#allocation13 + $0x50] sm:$0xff]  ;;  %v7777_v54 = vld [vmem:[#allocation13 + $0x48] sm:$0xff] }
 0x2e1   :  { %v4044_v47 = vpop.f32.mrf.mxu0  ;;  %v4057_v44 = vpop.f32.mrf.mxu1  ;;  %v4019_v26 = vadd.f32 %v4018_v51, %v4006_v10  ;;  %v7119_v51 = vor.u32 %v7764_v49, %v7116_v50  ;;  %v7768_v49 = vld [vmem:[#allocation13] sm:$0xff] }
 0x2e2   :  { %v4045_v20 = vadd.f32 %v4044_v47, %v2438_v40  ;;  %v3981_v4 = vpop.f32.mrf.mxu3  ;;  %v4020_v0 = vpop.f32.mrf.mxu2  ;;  %v7755_v40 = vld [vmem:[#allocation11 + $0x194] sm:$0xf0]  ;;  %v7766_v47 = vld [vmem:[#allocation11 + $0x1f4] sm:$0xf]  ;;  %v7780_v50 = vld [vmem:[#allocation13 + $0x60] sm:$0xff] }
 0x2e3   :  { %4619 = vmatpush.bf16.msrb.mxu2 %v7031_v56  ;;  %4580 = vmatpush.bf16.msra.mxu3 %v7091_v2  ;;  %v7075_v8 = vor.u32 %v7755_v40, %v7074_v38  ;;  %v7760_v56 = vld [vmem:[#allocation11 + $0x1c4] sm:$0xf]  ;;  %v7754_v0 = vld [vmem:[#allocation11 + $0x194] sm:$0xf] }
 0x2e4   :  { %v8299_v58 = vadd.f32 %v4057_v44, %v4045_v20  ;;  %v7124_v44 = vld [vmem:[#allocation11 + $0x1f8] sm:$0xf0]  ;;  %v7067_v20 = vor.u32 %v7753_v45, %v7066_v43  ;;  %v7079_v46 = vor.u32 %v7754_v0, %v7076_v36  ;;  %v7772_v40 = vld [vmem:[#allocation13 + $0x20] sm:$0xff]  ;;  %v7770_v45 = vld [vmem:[#allocation13 + $0x10] sm:$0xff] }
 0x2e5   :  { %v7127_v48 = vor.u32 %v7766_v47, %v7124_v44  ;;  %v7771_v43 = vld [vmem:[#allocation13 + $0x18] sm:$0xff] }
 0x2e7   :  { %4620 = vmatpush.bf16.msrb.mxu2 %v7023_v6  ;;  %4581 = vmatpush.bf16.msra.mxu3 %v7083_v32  ;;  %v7758_v6 = vld [vmem:[#allocation11 + $0x1b4] sm:$0xf] }
 0x2e8   :  { %v7095_v4 = vor.u32 %v7758_v6, %v7092_v62  ;;  %v7774_v32 = vld [vmem:[#allocation13 + $0x30] sm:$0xff] }
 0x2e9   :  { %v4046_v52 = vpop.f32.mrf.mxu0  ;;  %v4059_v59 = vpop.f32.mrf.mxu1 }
 0x2ea   :  { %v7100_v52 = vld [vmem:[#allocation11 + $0x1c8] sm:$0xf0] }
 0x2eb   :  { %4621 = vmatpush.bf16.msrb.mxu2 %v7015_v13  ;;  %4582 = vmatpush.bf16.msra.mxu3 %v7075_v8  ;;  %v7103_v9 = vor.u32 %v7760_v56, %v7100_v52 }
 0x2ef   :  { %4622 = vmatpush.bf16.msrb.mxu2 %v7007_v14  ;;  %4583 = vmatpush.bf16.msra.mxu3 %v7067_v20  ;;  %v7769_v20 = vld [vmem:[#allocation13 + $0x8] sm:$0xff] }
 0x2f3   :  { %4628 = vmatpush.bf16.msrb.mxu3 %v7127_v48  ;;  %v7781_v48 = vld [vmem:[#allocation13 + $0x68] sm:$0xff] }
 0x2f7   :  { %4629 = vmatpush.bf16.msrb.mxu3 %v7119_v51  ;;  %v7779_v51 = vld [vmem:[#allocation13 + $0x58] sm:$0xff] }
 0x2f9   :  { %v4031_v19 = vpop.f32.mrf.mxu3  ;;  %v4070_v21 = vpop.f32.mrf.mxu2 }
 0x2fa   :  { %v4032_v17 = vadd.f32 %v4031_v19, %v4019_v26  ;;  %v4071_v14 = vadd.f32 %v4070_v21, %v8299_v58  ;;  %v4211_v58 = vld [vmem:[%s8327_s6] sm:$0x3] }
 0x2fb   :  { %4630 = vmatpush.bf16.msrb.mxu3 %v7111_v55  ;;  %v7776_v55 = vld [vmem:[#allocation13 + $0x40] sm:$0xff] }
 0x2fc   :  { %v4141_v23 = vmax.f32 %v4032_v17, 0.0  ;;  %v4213_v17 = vperm.slane %v4211_v58, 0 }
 0x2fe   :  { %v4145_v15 = vpack.c.bf16 %v4141_v23, %v4141_v23 }
 0x2ff   :  { %4631 = vmatpush.bf16.msrb.mxu3 %v7103_v9 }
 0x300   :  { %4571 = vmatmul.bf16.vlgmr.msra.gmra.mxu2 %v4145_v15 }
 0x301   :  { %v8305_v25 = vpop.f32.mrf.mxu0  ;;  %v8307_v27 = vpop.f32.mrf.mxu1 }
 0x302   :  { %v4033_v33 = vpop.f32.mrf.mxu3  ;;  %v4072_v57 = vpop.f32.mrf.mxu2 }
 0x303   :  { %4632 = vmatpush.bf16.msrb.mxu3 %v7095_v4  ;;  %v7782_v33 = vld [vmem:[#allocation13 + $0x70] sm:$0xff]  ;;  %v7773_v57 = vld [vmem:[#allocation13 + $0x28] sm:$0xff] }
 0x307   :  { %4633 = vmatpush.bf16.msrb.mxu3 %v7087_v42 }
 0x309   :  { %v4098_v30 = vpop.f32.mrf.mxu0  ;;  %v4111_v31 = vpop.f32.mrf.mxu1 }
 0x30a   :  { %v7775_v30 = vld [vmem:[#allocation13 + $0x38] sm:$0xff] }
 0x30b   :  { %4634 = vmatpush.bf16.msrb.mxu3 %v7079_v46  ;;  %v7783_v31 = vld [vmem:[#allocation13 + $0x78] sm:$0xff]  ;;  %4777 = vmatpush.bf16.msra.mxu0 %v7775_v30 }
 0x30c   :  { %4790 = vmatpush.bf16.msra.mxu1 %v7783_v31 }
 0x30f   :  { %4635 = vmatpush.bf16.msrb.mxu3 %v7071_v7  ;;  %4778 = vmatpush.bf16.msra.mxu0 %v7774_v32 }
 0x310   :  { %4623 = vmatmul.bf16.vlgmr.msrb.gmra.mxu2 %v4145_v15  ;;  %4791 = vmatpush.bf16.msra.mxu1 %v7782_v33 }
 0x313   :  { %4779 = vmatpush.bf16.msra.mxu0 %v7773_v57 }
 0x314   :  { %4792 = vmatpush.bf16.msra.mxu1 %v7781_v48 }
 0x317   :  { %4780 = vmatpush.bf16.msra.mxu0 %v7772_v40 }
 0x318   :  { %4793 = vmatpush.bf16.msra.mxu1 %v7780_v50 }
 0x319   :  { %v4083_v59 = vpop.f32.mrf.mxu3  ;;  %v4122_v60 = vpop.f32.mrf.mxu2 }
 0x31a   :  { %v4084_v34 = vadd.f32 %v4083_v59, %v4071_v14 }
 0x31b   :  { %4781 = vmatpush.bf16.msra.mxu0 %v7771_v43 }
 0x31c   :  { %v4097_v16 = vadd.f32 %v8305_v25, %v4084_v34  ;;  %4794 = vmatpush.bf16.msra.mxu1 %v7779_v51 }
 0x31e   :  { %v4110_v37 = vadd.f32 %v8307_v27, %v4097_v16  ;;  %v4214_v27 = vperm.slane %v4211_v58, 1 }
 0x31f   :  { %4782 = vmatpush.bf16.msra.mxu0 %v7770_v45 }
 0x320   :  { %v4123_v11 = vadd.f32 %v4122_v60, %v4110_v37  ;;  %4795 = vmatpush.bf16.msra.mxu1 %v7778_v53 }
 0x321   :  { %v4085_v13 = vpop.f32.mrf.mxu3  ;;  %v4124_v1 = vpop.f32.mrf.mxu2 }
 0x322   :  { %v4546_v5 = vpop.f32.mrf.mxu0  ;;  %v7801_v1 = vld [vmem:[%s8329_s8] ss:$0 sm:$0xff] }
 0x323   :  { %v4547_v23 = vadd.f32 %v4546_v5, %v4213_v17  ;;  %4783 = vmatpush.bf16.msra.mxu0 %v7769_v20 }
 0x324   :  { %4796 = vmatpush.bf16.msra.mxu1 %v7777_v54 }
 0x327   :  { %4784 = vmatpush.bf16.msra.mxu0 %v7768_v49 }
 0x328   :  { %4797 = vmatpush.bf16.msra.mxu1 %v7776_v55 }
 0x32a   :  { %v4548_v10 = vpop.f32.mrf.mxu0 }
 0x339   :  { %v4135_v12 = vpop.f32.mrf.mxu3 }
 0x33a   :  { %v4136_v35 = vadd.f32 %v4135_v12, %v4123_v11 }
 0x33c   :  { %v4142_v18 = vmax.f32 %v4136_v35, 0.0 }
 0x33e   :  { %v4146_v19 = vpack.c.bf16 %v4142_v18, %v4142_v18 }
 0x33f   :  { %v4559_v24 = vpop.f32.mrf.mxu1 }
 0x340   :  { %4584 = vmatmul.bf16.vlgmr.msra.gmra.mxu3 %v4146_v19  ;;  %v4560_v25 = vadd.f32 %v4559_v24, %v4547_v23 }
 0x341   :  { %v4598_v26 = vpop.f32.mrf.mxu0  ;;  %v4137_v21 = vpop.f32.mrf.mxu3 }
 0x342   :  { %v4599_v2 = vadd.f32 %v4598_v26, %v4214_v27 }
 0x347   :  { %v4561_v28 = vpop.f32.mrf.mxu1 }
 0x349   :  { %v4600_v61 = vpop.f32.mrf.mxu0 }
 0x34f   :  { %v4611_v15 = vpop.f32.mrf.mxu1 }
 0x350   :  { %4636 = vmatmul.bf16.vlgmr.msrb.gmra.mxu3 %v4146_v19  ;;  %v4612_v29 = vadd.f32 %v4611_v15, %v4599_v2 }
 0x357   :  { %v4613_v41 = vpop.f32.mrf.mxu1 }
 0x383   :  { %v4572_v38 = vpop.f32.mrf.mxu2 }
 0x384   :  { %v4573_v56 = vadd.f32 %v4572_v38, %v4560_v25 }
 0x38b   :  { %v4574_v8 = vpop.f32.mrf.mxu2 }
 0x393   :  { %v4624_v47 = vpop.f32.mrf.mxu2 }
 0x394   :  { %v4625_v62 = vadd.f32 %v4624_v47, %v4612_v29 }
 0x39b   :  { %v4626_v44 = vpop.f32.mrf.mxu2 }
 0x3c3   :  { %v4585_v52 = vpop.f32.mrf.mxu3 }
 0x3c4   :  { %v4586_v59 = vadd.f32 %v4585_v52, %v4573_v56 }
 0x3c6   :  { %v4641_v60 = vmax.f32 %v4586_v59, 0.0 }
 0x3c8   :  { %v4643_v9 = vpack.c.bf16 %v4641_v60, %v4641_v60 }
 0x3ca   :  { %4785 = vmatmul.bf16.vlgmr.msra.gmra.mxu0 %v4643_v9 }
 0x3cb   :  { %v4587_v6 = vpop.f32.mrf.mxu3 }
 0x3d3   :  { %v4637_v4 = vpop.f32.mrf.mxu3 }
 0x3d4   :  { %v4638_v39 = vadd.f32 %v4637_v4, %v4625_v62 }
 0x3d6   :  { %v4642_v63 = vmax.f32 %v4638_v39, 0.0 }
 0x3d8   :  { %v4644_v42 = vpack.c.bf16 %v4642_v63, %v4642_v63 }
 0x3da   :  { %4798 = vmatmul.bf16.vlgmr.msra.gmra.mxu1 %v4644_v42 }
 0x3db   :  { %v4639_v0 = vpop.f32.mrf.mxu3 }
 0x447   :  { %v4786_v36 = vpop.f32.mrf.mxu0 }
 0x448   :  { %v4787_v46 = vadd.f32 %v7801_v1, %v4786_v36 }
 0x44f   :  { %v4788_v13 = vpop.f32.mrf.mxu0 }
 0x457   :  { %v4799_v5 = vpop.f32.mrf.mxu1 }
 0x458   :  { %v4800_v14 = vadd.f32 %v4799_v5, %v4787_v46 }
 0x45a   :  { %4803 = vst [vmem:[#allocation14] sm:$0xff] %v4800_v14 }
 0x45b   :  { %4814 = dma.vmem_to_hbm [thread:$0]  %s4810_s27, 128, %s4812_s29, [#allocation4]  }
 0x45f   :  { %v4801_v3 = vpop.f32.mrf.mxu1 }
 0x460   :  { %8008 = dma.done.wait [#allocation4], 128  }
 0x461   :  { %8009 = vsyncadd [#allocation4], 4294967168 }
 0x462   :  { %4819 = vsyncpa [#allocation3], 1 }
 0x463   :  { %4820 = vsyncpa [#allocation6], 1 }
 0x464   :  { %4821 = vsyncpa [#allocation9], 1 }
 0x465   :  { %4822 = vsyncpa [#allocation12], 1 }
 0x466   :  { %4823 = vsyncpa [#allocation4], 1 }

</bundles_post_ra>
